<compile_context>
chip_gen: v6e
topology: v6e:2x2x1
jax: 0.10.0
libtpu: 0.0.40
codegen_flags: <defaults>
</compile_context>

<pallas_src>
import functools

import jax
import jax.numpy as jnp
from jax import lax
from jax.experimental import pallas as pl
from jax.experimental.pallas import tpu as pltpu


# ---------------------------------------------------------------------------
# Pallas kernel: segment mean over points sorted by segment id.
# ---------------------------------------------------------------------------
def _segment_mean_kernel(out_t_ref, in_t_ref, first_ref, last_ref, valid_ref,  # SMEM
                         seg_ref, feat_ref,                                    # VMEM in
                         out_ref,                                              # VMEM out
                         fpad_ref, acc_ref,                                    # scratch
                         *, cnt_col, kc, approx_recip):
    del in_t_ref  # only used by the BlockSpec index_maps
    s = pl.program_id(0)
    tm = acc_ref.shape[0]
    tn = seg_ref.shape[1]
    c1 = feat_ref.shape[1]          # C + 1 (fused ones/count column)

    # Zero the lane-padding columns of the staging slab exactly once; they are
    # never written again, so every later matmul sees zeros there.
    @pl.when(s == 0)
    def _():
        fpad_ref[...] = jnp.zeros_like(fpad_ref)

    # first == valid & (local step == 0): reset the f32 accumulator.
    @pl.when(first_ref[s] == 1)
    def _():
        acc_ref[...] = jnp.zeros_like(acc_ref)

    @pl.when(valid_ref[s] == 1)
    def _():
        # Stage the narrow (tn, C+1) HBM feature block into a 128-lane VMEM
        # slab so the MXU RHS is lane-dense without inflating HBM traffic.
        fpad_ref[:, :c1] = feat_ref[...]

        base = out_t_ref[s] * tm
        row_ids = lax.broadcasted_iota(jnp.int32, (tm, 1), 0)      # (tm, 1)

        # K-chunked one-hot + matmul: caps the live one-hot at ~32 vregs.
        def chunk(k, carry):
            off = pl.multiple_of(k * kc, kc)
            seg_local = seg_ref[:, pl.ds(off, kc)] - base          # (1, kc) i32
            onehot = (seg_local == row_ids).astype(fpad_ref.dtype)  # (tm, kc)
            acc_ref[...] += jnp.dot(onehot, fpad_ref[pl.ds(off, kc), :],
                                    preferred_element_type=jnp.float32)
            return carry

        lax.fori_loop(0, tn // kc, chunk, 0, unroll=True)

    # last == valid & (local step == nsteps-1): divide by count and emit.
    @pl.when(last_ref[s] == 1)
    def _():
        cnt = acc_ref[:, cnt_col:cnt_col + 1]                      # (tm, 1)
        inv = pl.reciprocal(jnp.maximum(cnt, 1.0), approx=approx_recip)
        out_ref[...] = (acc_ref[:, :c1] * inv).astype(out_ref.dtype)


def _segment_mean_sorted(seg_sorted, feats_sorted, *, tm=128, tn=2048,
                         compute_dtype=jnp.float32, out_dtype=None):
    """Per-segment mean of `feats_sorted`; `seg_sorted` must be non-decreasing.

    Returns a (m_pad, C+1) array; rows >= num_segments are padding / garbage
    (never written for fully-empty tiles) and column C is the fused count
    column. Callers slice `[:num_segments, :C]`.
    """
    n, c = feats_sorted.shape
    if out_dtype is None:
        out_dtype = feats_sorted.dtype
    assert tm % 8 == 0 and tn % 128 == 0

    # K-chunk size for the in-kernel one-hot (vreg-pressure cap).
    kc = 512 if jnp.dtype(compute_dtype).itemsize <= 2 else 256
    kc = min(kc, tn)
    if tn % kc != 0:
        kc = 128

    m_pad = pl.cdiv(max(n, 1), tm) * tm
    m_tiles = m_pad // tm
    n_tiles = pl.cdiv(max(n, 1), tn)
    n_pad = n_tiles * tn
    cnt_col = c
    c1 = c + 1                                  # narrow HBM stream width
    c_pad = pl.cdiv(c1, 128) * 128              # lane-dense staging slab width

    # --- pad inputs; sentinel segment id == m_pad never matches any local row id
    seg_p = jnp.pad(seg_sorted.astype(jnp.int32), (0, n_pad - n),
                    constant_values=m_pad).reshape(1, n_pad)
    feat_aug = jnp.concatenate(
        [feats_sorted.astype(compute_dtype),
         jnp.ones((n, 1), compute_dtype)], axis=1)                  # (n, C+1)
    feat_p = jnp.pad(feat_aug, ((0, n_pad - n), (0, 0)))            # rows only

    # --- data-dependent step schedule (built on device, scalar-prefetched) ---
    # Output tile i owns points [pts[i], pts[i+1]); it gets one step per input
    # tile it touches. Tiles with no points get ZERO steps; trailing invalid
    # steps are flagged and their block indices pinned (no DMA, no writeback).
    seg_flat = seg_p[0]
    bounds = jnp.arange(m_tiles + 1, dtype=jnp.int32) * tm
    pts = jnp.searchsorted(seg_flat, bounds, side="left").astype(jnp.int32)
    start_tile = (pts[:-1] // tn).astype(jnp.int32)
    end_tile = ((pts[1:] + tn - 1) // tn).astype(jnp.int32)
    nonempty = (pts[1:] - pts[:-1]) > 0
    nsteps = jnp.where(nonempty, end_tile - start_tile, 0).astype(jnp.int32)
    offsets = jnp.concatenate(
        [jnp.zeros((1,), jnp.int32), jnp.cumsum(nsteps).astype(jnp.int32)])
    total = offsets[-1]

    max_steps = m_tiles + n_tiles               # static upper bound on `total`
    s_idx = jnp.arange(max_steps, dtype=jnp.int32)
    ot_all = jnp.clip(
        jnp.searchsorted(offsets, s_idx, side="right").astype(jnp.int32) - 1,
        0, m_tiles - 1)
    local = s_idx - offsets[ot_all]
    valid = s_idx < total
    # Pin invalid trailing steps to the last valid step's block indices.
    last_step = jnp.maximum(total - 1, 0)
    pin_ot = jnp.clip(
        jnp.searchsorted(offsets, last_step, side="right").astype(jnp.int32) - 1,
        0, m_tiles - 1)
    pin_it = start_tile[pin_ot] + (last_step - offsets[pin_ot])
    out_t = jnp.where(valid, ot_all, pin_ot).astype(jnp.int32)
    in_t = jnp.where(valid, start_tile[ot_all] + local, pin_it).astype(jnp.int32)
    first = (valid & (local == 0)).astype(jnp.int32)
    last = (valid & (local == nsteps[ot_all] - 1)).astype(jnp.int32)
    validi = valid.astype(jnp.int32)

    kernel = functools.partial(
        _segment_mean_kernel, cnt_col=cnt_col, kc=kc,
        approx_recip=(jnp.dtype(compute_dtype) == jnp.dtype(jnp.bfloat16)))

    return pl.pallas_call(
        kernel,
        out_shape=jax.ShapeDtypeStruct((m_pad, c1), out_dtype),
        grid_spec=pltpu.PrefetchScalarGridSpec(
            num_scalar_prefetch=5,
            grid=(max_steps,),
            in_specs=[
                # seg ids: (1, tn) lane-dense block chosen by in_t.
                pl.BlockSpec((1, tn),
                             lambda s, ot, it, fi, la, va: (0, it[s])),
                # features: narrow (tn, C+1) stream (last dim == full dim).
                # TODO(synk): on v7x consider pipeline_mode=pl.Buffered(3) here
                # if xprof shows exposed DMA at schedule discontinuities.
                pl.BlockSpec((tn, c1),
                             lambda s, ot, it, fi, la, va: (it[s], 0)),
            ],
            out_specs=pl.BlockSpec((tm, c1),
                                   lambda s, ot, it, fi, la, va: (ot[s], 0)),
            scratch_shapes=[
                pltpu.VMEM((tn, c_pad), compute_dtype),   # lane-dense RHS slab
                pltpu.VMEM((tm, c_pad), jnp.float32),     # f32 accumulator
            ]),
        # Single flattened axis carries the accumulator -> "arbitrary".
        compiler_params=pltpu.CompilerParams(
            dimension_semantics=("arbitrary",)),
    )(out_t, in_t, first, last, validi, seg_p, feat_p)


# ---------------------------------------------------------------------------
# GlobalMergeLayer.forward
# ---------------------------------------------------------------------------
@functools.partial(jax.jit, static_argnames=("dimension", "full_scale", "tm",
                                             "tn", "compute_dtype"))
def _merge_impl(coords1, feats1, coords2, feats2, *, dimension, full_scale,
                tm=128, tn=2048, compute_dtype=jnp.float32):
    """Jittable, sync-free body: returns (coords_padded, feats_padded, n_unique)."""
    batch_size = jnp.max(coords1[:, -1]) + 1
    c2 = coords2.at[:, -1].add(batch_size.astype(coords2.dtype))
    tmp_c = jnp.concatenate([coords1, c2], axis=0).astype(jnp.int32)
    tmp_f = jnp.concatenate([feats1, feats2], axis=0)

    n, d1 = tmp_c.shape
    c = tmp_f.shape[1]

    # scn.InputLayer(mode=4): voxels sharing (spatial coords, batch) are merged
    # and features averaged. Sort so identical voxels become contiguous,
    # yielding the non-decreasing segment ids the kernel schedule needs.
    if full_scale ** dimension <= (1 << 16):
        # Fast path: single packed int32 radix key (batch in the high bits;
        # assumes coords in [0, full_scale) as scn requires and combined batch
        # count < 2**15). Static decision, collision-free when in range.
        key = tmp_c[:, -1]
        for d in range(dimension):
            key = key * full_scale + tmp_c[:, d]
        order = jnp.argsort(key)
        sk = key[order]
        is_new = jnp.concatenate(
            [jnp.ones((1,), jnp.bool_), sk[1:] != sk[:-1]])
        sc = tmp_c[order]
    else:
        # Collision-free multi-key lexsort fallback (batch primary, then x0..).
        keys = tuple(tmp_c[:, d] for d in range(dimension - 1, -1, -1)) \
            + (tmp_c[:, -1],)
        order = jnp.lexsort(keys)
        sc = tmp_c[order]
        is_new = jnp.concatenate(
            [jnp.ones((1,), jnp.bool_), jnp.any(sc[1:] != sc[:-1], axis=1)])

    # Gather features in the compute dtype (halves gather bytes for bf16).
    sf = tmp_f.astype(compute_dtype)[order]
    seg = (jnp.cumsum(is_new.astype(jnp.int32)) - 1).astype(jnp.int32)
    num_unique = seg[-1] + 1

    out_p = _segment_mean_sorted(seg, sf, tm=tm, tn=tn,
                                 compute_dtype=compute_dtype,
                                 out_dtype=tmp_f.dtype)
    m_pad = out_p.shape[0]
    out_feats = out_p[:, :c]

    # Representative (identical within a voxel) coordinates per output voxel.
    rep_coords = jnp.zeros((m_pad, d1), tmp_c.dtype).at[seg].set(sc)
    return rep_coords, out_feats, num_unique


def global_merge_forward(coords1, feats1, coords2, feats2, *, dimension=3,
                         full_scale=16, frames=2, tm=128, tn=2048,
                         compute_dtype=jnp.float32):
    """JAX/Pallas equivalent of GlobalMergeLayer.forward.

    TODO(synk): scn's internal hash-table ordering of output voxels is not
    reproduced; voxels are emitted in lexicographic (batch, x0..xD-1) order.
    """
    # Mirrors the module's host-side `.item()` + assert (max batch index of
    # input1 must NOT be a multiple of `frames`, as written in the original).
    max_idx = int(jnp.max(coords1[:, -1]))
    assert max_idx % frames
    rep_coords, out_feats, num_unique = _merge_impl(
        coords1, feats1, coords2, feats2, dimension=dimension,
        full_scale=full_scale, tm=tm, tn=tn, compute_dtype=compute_dtype)
    n_u = int(num_unique)   # single device->host sync, only to unpad the result
    return rep_coords[:n_u], out_feats[:n_u]


# ---------------------------------------------------------------------------
# Pure-JAX reference (no Pallas) for correctness checking.
# ---------------------------------------------------------------------------
def _reference_forward(coords1, feats1, coords2, feats2, *, dimension=3,
                       full_scale=16):
    batch_size = int(jnp.max(coords1[:, -1])) + 1
    tmp_f = jnp.concatenate([feats1, feats2], axis=0)
    c2 = coords2.at[:, -1].add(batch_size)
    tmp_c = jnp.concatenate([coords1, c2], axis=0)
    key = tmp_c[:, -1].astype(jnp.int32)
    for d in range(dimension):
        key = key * full_scale + tmp_c[:, d].astype(jnp.int32)
    _, idx0, inv = jnp.unique(key, return_index=True, return_inverse=True)
    inv = inv.reshape(-1)
    m = int(idx0.shape[0])
    ssum = jax.ops.segment_sum(tmp_f, inv, num_segments=m)
    cnt = jax.ops.segment_sum(jnp.ones((tmp_f.shape[0],), tmp_f.dtype), inv,
                              num_segments=m)
    return tmp_c[idx0], ssum / cnt[:, None]


if __name__ == "__main__":
    dimension, full_scale, frames = 3, 16, 2

    def make_inputs(key, n1, n2, c, coord_range):
        k1, k2, k3, k4, k5, k6 = jax.random.split(key, 6)
        sp1 = jax.random.randint(k1, (n1, dimension), 0, coord_range, dtype=jnp.int32)
        b1 = jax.random.randint(k2, (n1, 1), 0, 2, dtype=jnp.int32)
        b1 = b1.at[0, 0].set(1)      # max batch idx = 1 (odd -> module assert passes)
        coords1 = jnp.concatenate([sp1, b1], axis=1)
        sp2 = jax.random.randint(k3, (n2, dimension), 0, coord_range, dtype=jnp.int32)
        b2 = jax.random.randint(k4, (n2, 1), 0, 2, dtype=jnp.int32)
        coords2 = jnp.concatenate([sp2, b2], axis=1)
        feats1 = jax.random.normal(k5, (n1, c), dtype=jnp.float32)
        feats2 = jax.random.normal(k6, (n2, c), dtype=jnp.float32)
        return coords1, feats1, coords2, feats2

    key = jax.random.PRNGKey(0)
    kA, kB = jax.random.split(key)

    # --- small case (duplicate-heavy, single tile) -------------------------
    c1a, f1a, c2a, f2a = make_inputs(kA, 20, 24, 8, 4)
    ref_c, ref_f = _reference_forward(c1a, f1a, c2a, f2a,
                                      dimension=dimension, full_scale=full_scale)

    out_c, out_f = global_merge_forward(c1a, f1a, c2a, f2a, dimension=dimension,
                                        full_scale=full_scale, frames=frames,
                                        compute_dtype=jnp.float32)
    jax.block_until_ready(out_f)
    assert out_c.shape == ref_c.shape and out_f.shape == ref_f.shape
    assert jnp.array_equal(out_c, ref_c)
    assert jnp.allclose(out_f, ref_f, atol=5e-4, rtol=5e-4)

    out_c_bf, out_f_bf = global_merge_forward(c1a, f1a, c2a, f2a,
                                              dimension=dimension,
                                              full_scale=full_scale,
                                              frames=frames,
                                              compute_dtype=jnp.bfloat16)
    jax.block_until_ready(out_f_bf)
    assert jnp.array_equal(out_c_bf, ref_c)
    assert jnp.allclose(out_f_bf, ref_f, atol=5e-2, rtol=5e-2)

    # --- medium case: multiple input tiles, multiple output tiles, skipped
    #     empty trailing tiles, and boundary input tiles shared between
    #     consecutive output tiles.
    c1b, f1b, c2b, f2b = make_inputs(kB, 1500, 1700, 8, 8)
    ref_c2, ref_f2 = _reference_forward(c1b, f1b, c2b, f2b,
                                        dimension=dimension, full_scale=full_scale)
    out_c2, out_f2 = global_merge_forward(c1b, f1b, c2b, f2b, dimension=dimension,
                                          full_scale=full_scale, frames=frames,
                                          compute_dtype=jnp.float32)
    jax.block_until_ready(out_f2)
    assert out_c2.shape == ref_c2.shape and out_f2.shape == ref_f2.shape
    assert jnp.array_equal(out_c2, ref_c2)
    assert jnp.allclose(out_f2, ref_f2, atol=5e-4, rtol=5e-4)

    print("KERNEL_OK")
</pallas_src>

<mosaic_0001>
module attributes {stable_mosaic.version = 11 : i64} {
  func.func @_segment_mean_kernel(%arg0: i32, %arg1: memref<2xi32, #tpu.memory_space<smem>>, %arg2: memref<2xi32, #tpu.memory_space<smem>>, %arg3: memref<2xi32, #tpu.memory_space<smem>>, %arg4: memref<2xi32, #tpu.memory_space<smem>>, %arg5: memref<2xi32, #tpu.memory_space<smem>>, %arg6: memref<1x2048xi32, #tpu.memory_space<vmem>>, %arg7: memref<2048x9xf32, #tpu.memory_space<vmem>>, %arg8: memref<128x9xf32, #tpu.memory_space<vmem>>, %arg9: memref<2048x128xf32, #tpu.memory_space<vmem>>, %arg10: memref<128x128xf32, #tpu.memory_space<vmem>>) attributes {dimension_semantics = [#tpu.dimension_semantics<arbitrary>], iteration_bounds = array<i64: 2>, scalar_prefetch = 5 : i64, scratch_operands = 2 : i64, tpu.core_type = #tpu.core_type<tc>, window_params = [{transform_indices = @transform_0, window_bounds = array<i64: 1, 2048>}, {transform_indices = @transform_1, window_bounds = array<i64: 2048, 9>}, {transform_indices = @transform_2, window_bounds = array<i64: 128, 9>}]} {
    %c0_i32 = arith.constant 0 : i32
    %0 = arith.cmpi eq, %arg0, %c0_i32 : i32
    %1 = arith.extui %0 : i1 to i32
    %c0_i32_0 = arith.constant 0 : i32
    %2 = arith.cmpi ne, %1, %c0_i32_0 : i32
    scf.if %2 {
      %cst = arith.constant 0.000000e+00 : f32
      %18 = vector.broadcast %cst : f32 to vector<2048x128xf32>
      %c0 = arith.constant 0 : index
      %c0_6 = arith.constant 0 : index
      %19 = vector.load %arg9[%c0, %c0_6] : memref<2048x128xf32, #tpu.memory_space<vmem>>, vector<2048x128xf32>
      tpu.vector_store %arg9[%c0, %c0_6], %18 {strides = array<i32>} : memref<2048x128xf32, #tpu.memory_space<vmem>>, vector<2048x128xf32>,
    } else {
    }
    %3 = arith.index_cast %arg0 : i32 to index
    %4 = memref.load %arg3[%3] : memref<2xi32, #tpu.memory_space<smem>>
    %c1_i32 = arith.constant 1 : i32
    %5 = arith.cmpi eq, %4, %c1_i32 : i32
    %6 = arith.extui %5 : i1 to i32
    %c0_i32_1 = arith.constant 0 : i32
    %7 = arith.cmpi ne, %6, %c0_i32_1 : i32
    scf.if %7 {
      %cst = arith.constant 0.000000e+00 : f32
      %18 = vector.broadcast %cst : f32 to vector<128x128xf32>
      %c0 = arith.constant 0 : index
      %c0_6 = arith.constant 0 : index
      %19 = vector.load %arg10[%c0, %c0_6] : memref<128x128xf32, #tpu.memory_space<vmem>>, vector<128x128xf32>
      tpu.vector_store %arg10[%c0, %c0_6], %18 {strides = array<i32>} : memref<128x128xf32, #tpu.memory_space<vmem>>, vector<128x128xf32>,
    } else {
    }
    %8 = arith.index_cast %arg0 : i32 to index
    %9 = memref.load %arg5[%8] : memref<2xi32, #tpu.memory_space<smem>>
    %c1_i32_2 = arith.constant 1 : i32
    %10 = arith.cmpi eq, %9, %c1_i32_2 : i32
    %11 = arith.extui %10 : i1 to i32
    %c0_i32_3 = arith.constant 0 : i32
    %12 = arith.cmpi ne, %11, %c0_i32_3 : i32
    scf.if %12 {
      %c0 = arith.constant 0 : index
      %c0_6 = arith.constant 0 : index
      %18 = vector.load %arg7[%c0, %c0_6] : memref<2048x9xf32, #tpu.memory_space<vmem>>, vector<2048x9xf32>
      %c0_7 = arith.constant 0 : index
      %c0_8 = arith.constant 0 : index
      %19 = vector.load %arg9[%c0_7, %c0_8] : memref<2048x128xf32, #tpu.memory_space<vmem>>, vector<2048x9xf32>
      tpu.vector_store %arg9[%c0_7, %c0_8], %18 {strides = array<i32>} : memref<2048x128xf32, #tpu.memory_space<vmem>>, vector<2048x9xf32>,
      %20 = arith.index_cast %arg0 : i32 to index
      %21 = memref.load %arg1[%20] : memref<2xi32, #tpu.memory_space<smem>>
      %c128_i32 = arith.constant 128 : i32
      %22 = arith.muli %21, %c128_i32 : i32
      %23 = tpu.iota {dimensions = array<i32: 0>} : vector<128x1xi32>
      %c0_i32_9 = arith.constant 0 : i32
      %c256_i32 = arith.constant 256 : i32
      %24 = arith.muli %c0_i32_9, %c256_i32 : i32
      %25 = tpu.assume_multiple %24, 256 : i32
      %c0_10 = arith.constant 0 : index
      %26 = arith.index_cast %25 : i32 to index
      %27 = vector.load %arg6[%c0_10, %26] : memref<1x2048xi32, #tpu.memory_space<vmem>>, vector<1x256xi32>
      %28 = vector.broadcast %22 : i32 to vector<1x256xi32>
      %29 = arith.subi %27, %28 : vector<1x256xi32>
      %30 = vector.broadcast %29 : vector<1x256xi32> to vector<128x256xi32>
      %31 = vector.broadcast %23 : vector<128x1xi32> to vector<128x256xi32>
      %32 = arith.cmpi eq, %30, %31 : vector<128x256xi32>
      %33 = arith.extui %32 : vector<128x256xi1> to vector<128x256xi32>
      %34 = arith.sitofp %33 : vector<128x256xi32> to vector<128x256xf32>
      %c0_11 = arith.constant 0 : index
      %c0_12 = arith.constant 0 : index
      %35 = vector.load %arg10[%c0_11, %c0_12] : memref<128x128xf32, #tpu.memory_space<vmem>>, vector<128x128xf32>
      %36 = arith.index_cast %25 : i32 to index
      %c0_13 = arith.constant 0 : index
      %37 = vector.load %arg9[%36, %c0_13] : memref<2048x128xf32, #tpu.memory_space<vmem>>, vector<256x128xf32>
      %cst = arith.constant dense<0.000000e+00> : vector<128x128xf32>
      %38 = tpu.matmul %34, %37, %cst {dimension_numbers = #tpu.dot_dimension_numbers<[1], [0], [0], [1], [0, 0, 1, 1], [], []>} : vector<128x256xf32>, vector<256x128xf32>, vector<128x128xf32> -> vector<128x128xf32>
      %39 = arith.addf %35, %38 : vector<128x128xf32>
      %c0_14 = arith.constant 0 : index
      %c0_15 = arith.constant 0 : index
      %40 = vector.load %arg10[%c0_14, %c0_15] : memref<128x128xf32, #tpu.memory_space<vmem>>, vector<128x128xf32>
      tpu.vector_store %arg10[%c0_14, %c0_15], %39 {strides = array<i32>} : memref<128x128xf32, #tpu.memory_space<vmem>>, vector<128x128xf32>,
      %c1_i32_16 = arith.constant 1 : i32
      %c256_i32_17 = arith.constant 256 : i32
      %41 = arith.muli %c1_i32_16, %c256_i32_17 : i32
      %42 = tpu.assume_multiple %41, 256 : i32
      %c0_18 = arith.constant 0 : index
      %43 = arith.index_cast %42 : i32 to index
      %44 = vector.load %arg6[%c0_18, %43] : memref<1x2048xi32, #tpu.memory_space<vmem>>, vector<1x256xi32>
      %45 = vector.broadcast %22 : i32 to vector<1x256xi32>
      %46 = arith.subi %44, %45 : vector<1x256xi32>
      %47 = vector.broadcast %46 : vector<1x256xi32> to vector<128x256xi32>
      %48 = vector.broadcast %23 : vector<128x1xi32> to vector<128x256xi32>
      %49 = arith.cmpi eq, %47, %48 : vector<128x256xi32>
      %50 = arith.extui %49 : vector<128x256xi1> to vector<128x256xi32>
      %51 = arith.sitofp %50 : vector<128x256xi32> to vector<128x256xf32>
      %c0_19 = arith.constant 0 : index
      %c0_20 = arith.constant 0 : index
      %52 = vector.load %arg10[%c0_19, %c0_20] : memref<128x128xf32, #tpu.memory_space<vmem>>, vector<128x128xf32>
      %53 = arith.index_cast %42 : i32 to index
      %c0_21 = arith.constant 0 : index
      %54 = vector.load %arg9[%53, %c0_21] : memref<2048x128xf32, #tpu.memory_space<vmem>>, vector<256x128xf32>
      %cst_22 = arith.constant dense<0.000000e+00> : vector<128x128xf32>
      %55 = tpu.matmul %51, %54, %cst_22 {dimension_numbers = #tpu.dot_dimension_numbers<[1], [0], [0], [1], [0, 0, 1, 1], [], []>} : vector<128x256xf32>, vector<256x128xf32>, vector<128x128xf32> -> vector<128x128xf32>
      %56 = arith.addf %52, %55 : vector<128x128xf32>
      %c0_23 = arith.constant 0 : index
      %c0_24 = arith.constant 0 : index
      %57 = vector.load %arg10[%c0_23, %c0_24] : memref<128x128xf32, #tpu.memory_space<vmem>>, vector<128x128xf32>
      tpu.vector_store %arg10[%c0_23, %c0_24], %56 {strides = array<i32>} : memref<128x128xf32, #tpu.memory_space<vmem>>, vector<128x128xf32>,
      %c2_i32 = arith.constant 2 : i32
      %c256_i32_25 = arith.constant 256 : i32
      %58 = arith.muli %c2_i32, %c256_i32_25 : i32
      %59 = tpu.assume_multiple %58, 256 : i32
      %c0_26 = arith.constant 0 : index
      %60 = arith.index_cast %59 : i32 to index
      %61 = vector.load %arg6[%c0_26, %60] : memref<1x2048xi32, #tpu.memory_space<vmem>>, vector<1x256xi32>
      %62 = vector.broadcast %22 : i32 to vector<1x256xi32>
      %63 = arith.subi %61, %62 : vector<1x256xi32>
      %64 = vector.broadcast %63 : vector<1x256xi32> to vector<128x256xi32>
      %65 = vector.broadcast %23 : vector<128x1xi32> to vector<128x256xi32>
      %66 = arith.cmpi eq, %64, %65 : vector<128x256xi32>
      %67 = arith.extui %66 : vector<128x256xi1> to vector<128x256xi32>
      %68 = arith.sitofp %67 : vector<128x256xi32> to vector<128x256xf32>
      %c0_27 = arith.constant 0 : index
      %c0_28 = arith.constant 0 : index
      %69 = vector.load %arg10[%c0_27, %c0_28] : memref<128x128xf32, #tpu.memory_space<vmem>>, vector<128x128xf32>
      %70 = arith.index_cast %59 : i32 to index
      %c0_29 = arith.constant 0 : index
      %71 = vector.load %arg9[%70, %c0_29] : memref<2048x128xf32, #tpu.memory_space<vmem>>, vector<256x128xf32>
      %cst_30 = arith.constant dense<0.000000e+00> : vector<128x128xf32>
      %72 = tpu.matmul %68, %71, %cst_30 {dimension_numbers = #tpu.dot_dimension_numbers<[1], [0], [0], [1], [0, 0, 1, 1], [], []>} : vector<128x256xf32>, vector<256x128xf32>, vector<128x128xf32> -> vector<128x128xf32>
      %73 = arith.addf %69, %72 : vector<128x128xf32>
      %c0_31 = arith.constant 0 : index
      %c0_32 = arith.constant 0 : index
      %74 = vector.load %arg10[%c0_31, %c0_32] : memref<128x128xf32, #tpu.memory_space<vmem>>, vector<128x128xf32>
      tpu.vector_store %arg10[%c0_31, %c0_32], %73 {strides = array<i32>} : memref<128x128xf32, #tpu.memory_space<vmem>>, vector<128x128xf32>,
      %c3_i32 = arith.constant 3 : i32
      %c256_i32_33 = arith.constant 256 : i32
      %75 = arith.muli %c3_i32, %c256_i32_33 : i32
      %76 = tpu.assume_multiple %75, 256 : i32
      %c0_34 = arith.constant 0 : index
      %77 = arith.index_cast %76 : i32 to index
      %78 = vector.load %arg6[%c0_34, %77] : memref<1x2048xi32, #tpu.memory_space<vmem>>, vector<1x256xi32>
      %79 = vector.broadcast %22 : i32 to vector<1x256xi32>
      %80 = arith.subi %78, %79 : vector<1x256xi32>
      %81 = vector.broadcast %80 : vector<1x256xi32> to vector<128x256xi32>
      %82 = vector.broadcast %23 : vector<128x1xi32> to vector<128x256xi32>
      %83 = arith.cmpi eq, %81, %82 : vector<128x256xi32>
      %84 = arith.extui %83 : vector<128x256xi1> to vector<128x256xi32>
      %85 = arith.sitofp %84 : vector<128x256xi32> to vector<128x256xf32>
      %c0_35 = arith.constant 0 : index
      %c0_36 = arith.constant 0 : index
      %86 = vector.load %arg10[%c0_35, %c0_36] : memref<128x128xf32, #tpu.memory_space<vmem>>, vector<128x128xf32>
      %87 = arith.index_cast %76 : i32 to index
      %c0_37 = arith.constant 0 : index
      %88 = vector.load %arg9[%87, %c0_37] : memref<2048x128xf32, #tpu.memory_space<vmem>>, vector<256x128xf32>
      %cst_38 = arith.constant dense<0.000000e+00> : vector<128x128xf32>
      %89 = tpu.matmul %85, %88, %cst_38 {dimension_numbers = #tpu.dot_dimension_numbers<[1], [0], [0], [1], [0, 0, 1, 1], [], []>} : vector<128x256xf32>, vector<256x128xf32>, vector<128x128xf32> -> vector<128x128xf32>
      %90 = arith.addf %86, %89 : vector<128x128xf32>
      %c0_39 = arith.constant 0 : index
      %c0_40 = arith.constant 0 : index
      %91 = vector.load %arg10[%c0_39, %c0_40] : memref<128x128xf32, #tpu.memory_space<vmem>>, vector<128x128xf32>
      tpu.vector_store %arg10[%c0_39, %c0_40], %90 {strides = array<i32>} : memref<128x128xf32, #tpu.memory_space<vmem>>, vector<128x128xf32>,
      %c4_i32 = arith.constant 4 : i32
      %c256_i32_41 = arith.constant 256 : i32
      %92 = arith.muli %c4_i32, %c256_i32_41 : i32
      %93 = tpu.assume_multiple %92, 256 : i32
      %c0_42 = arith.constant 0 : index
      %94 = arith.index_cast %93 : i32 to index
      %95 = vector.load %arg6[%c0_42, %94] : memref<1x2048xi32, #tpu.memory_space<vmem>>, vector<1x256xi32>
      %96 = vector.broadcast %22 : i32 to vector<1x256xi32>
      %97 = arith.subi %95, %96 : vector<1x256xi32>
      %98 = vector.broadcast %97 : vector<1x256xi32> to vector<128x256xi32>
      %99 = vector.broadcast %23 : vector<128x1xi32> to vector<128x256xi32>
      %100 = arith.cmpi eq, %98, %99 : vector<128x256xi32>
      %101 = arith.extui %100 : vector<128x256xi1> to vector<128x256xi32>
      %102 = arith.sitofp %101 : vector<128x256xi32> to vector<128x256xf32>
      %c0_43 = arith.constant 0 : index
      %c0_44 = arith.constant 0 : index
      %103 = vector.load %arg10[%c0_43, %c0_44] : memref<128x128xf32, #tpu.memory_space<vmem>>, vector<128x128xf32>
      %104 = arith.index_cast %93 : i32 to index
      %c0_45 = arith.constant 0 : index
      %105 = vector.load %arg9[%104, %c0_45] : memref<2048x128xf32, #tpu.memory_space<vmem>>, vector<256x128xf32>
      %cst_46 = arith.constant dense<0.000000e+00> : vector<128x128xf32>
      %106 = tpu.matmul %102, %105, %cst_46 {dimension_numbers = #tpu.dot_dimension_numbers<[1], [0], [0], [1], [0, 0, 1, 1], [], []>} : vector<128x256xf32>, vector<256x128xf32>, vector<128x128xf32> -> vector<128x128xf32>
      %107 = arith.addf %103, %106 : vector<128x128xf32>
      %c0_47 = arith.constant 0 : index
      %c0_48 = arith.constant 0 : index
      %108 = vector.load %arg10[%c0_47, %c0_48] : memref<128x128xf32, #tpu.memory_space<vmem>>, vector<128x128xf32>
      tpu.vector_store %arg10[%c0_47, %c0_48], %107 {strides = array<i32>} : memref<128x128xf32, #tpu.memory_space<vmem>>, vector<128x128xf32>,
      %c5_i32 = arith.constant 5 : i32
      %c256_i32_49 = arith.constant 256 : i32
      %109 = arith.muli %c5_i32, %c256_i32_49 : i32
      %110 = tpu.assume_multiple %109, 256 : i32
      %c0_50 = arith.constant 0 : index
      %111 = arith.index_cast %110 : i32 to index
      %112 = vector.load %arg6[%c0_50, %111] : memref<1x2048xi32, #tpu.memory_space<vmem>>, vector<1x256xi32>
      %113 = vector.broadcast %22 : i32 to vector<1x256xi32>
      %114 = arith.subi %112, %113 : vector<1x256xi32>
      %115 = vector.broadcast %114 : vector<1x256xi32> to vector<128x256xi32>
      %116 = vector.broadcast %23 : vector<128x1xi32> to vector<128x256xi32>
      %117 = arith.cmpi eq, %115, %116 : vector<128x256xi32>
      %118 = arith.extui %117 : vector<128x256xi1> to vector<128x256xi32>
      %119 = arith.sitofp %118 : vector<128x256xi32> to vector<128x256xf32>
      %c0_51 = arith.constant 0 : index
      %c0_52 = arith.constant 0 : index
      %120 = vector.load %arg10[%c0_51, %c0_52] : memref<128x128xf32, #tpu.memory_space<vmem>>, vector<128x128xf32>
      %121 = arith.index_cast %110 : i32 to index
      %c0_53 = arith.constant 0 : index
      %122 = vector.load %arg9[%121, %c0_53] : memref<2048x128xf32, #tpu.memory_space<vmem>>, vector<256x128xf32>
      %cst_54 = arith.constant dense<0.000000e+00> : vector<128x128xf32>
      %123 = tpu.matmul %119, %122, %cst_54 {dimension_numbers = #tpu.dot_dimension_numbers<[1], [0], [0], [1], [0, 0, 1, 1], [], []>} : vector<128x256xf32>, vector<256x128xf32>, vector<128x128xf32> -> vector<128x128xf32>
      %124 = arith.addf %120, %123 : vector<128x128xf32>
      %c0_55 = arith.constant 0 : index
      %c0_56 = arith.constant 0 : index
      %125 = vector.load %arg10[%c0_55, %c0_56] : memref<128x128xf32, #tpu.memory_space<vmem>>, vector<128x128xf32>
      tpu.vector_store %arg10[%c0_55, %c0_56], %124 {strides = array<i32>} : memref<128x128xf32, #tpu.memory_space<vmem>>, vector<128x128xf32>,
      %c6_i32 = arith.constant 6 : i32
      %c256_i32_57 = arith.constant 256 : i32
      %126 = arith.muli %c6_i32, %c256_i32_57 : i32
      %127 = tpu.assume_multiple %126, 256 : i32
      %c0_58 = arith.constant 0 : index
      %128 = arith.index_cast %127 : i32 to index
      %129 = vector.load %arg6[%c0_58, %128] : memref<1x2048xi32, #tpu.memory_space<vmem>>, vector<1x256xi32>
      %130 = vector.broadcast %22 : i32 to vector<1x256xi32>
      %131 = arith.subi %129, %130 : vector<1x256xi32>
      %132 = vector.broadcast %131 : vector<1x256xi32> to vector<128x256xi32>
      %133 = vector.broadcast %23 : vector<128x1xi32> to vector<128x256xi32>
      %134 = arith.cmpi eq, %132, %133 : vector<128x256xi32>
      %135 = arith.extui %134 : vector<128x256xi1> to vector<128x256xi32>
      %136 = arith.sitofp %135 : vector<128x256xi32> to vector<128x256xf32>
      %c0_59 = arith.constant 0 : index
      %c0_60 = arith.constant 0 : index
      %137 = vector.load %arg10[%c0_59, %c0_60] : memref<128x128xf32, #tpu.memory_space<vmem>>, vector<128x128xf32>
      %138 = arith.index_cast %127 : i32 to index
      %c0_61 = arith.constant 0 : index
      %139 = vector.load %arg9[%138, %c0_61] : memref<2048x128xf32, #tpu.memory_space<vmem>>, vector<256x128xf32>
      %cst_62 = arith.constant dense<0.000000e+00> : vector<128x128xf32>
      %140 = tpu.matmul %136, %139, %cst_62 {dimension_numbers = #tpu.dot_dimension_numbers<[1], [0], [0], [1], [0, 0, 1, 1], [], []>} : vector<128x256xf32>, vector<256x128xf32>, vector<128x128xf32> -> vector<128x128xf32>
      %141 = arith.addf %137, %140 : vector<128x128xf32>
      %c0_63 = arith.constant 0 : index
      %c0_64 = arith.constant 0 : index
      %142 = vector.load %arg10[%c0_63, %c0_64] : memref<128x128xf32, #tpu.memory_space<vmem>>, vector<128x128xf32>
      tpu.vector_store %arg10[%c0_63, %c0_64], %141 {strides = array<i32>} : memref<128x128xf32, #tpu.memory_space<vmem>>, vector<128x128xf32>,
      %c7_i32 = arith.constant 7 : i32
      %c256_i32_65 = arith.constant 256 : i32
      %143 = arith.muli %c7_i32, %c256_i32_65 : i32
      %144 = tpu.assume_multiple %143, 256 : i32
      %c0_66 = arith.constant 0 : index
      %145 = arith.index_cast %144 : i32 to index
      %146 = vector.load %arg6[%c0_66, %145] : memref<1x2048xi32, #tpu.memory_space<vmem>>, vector<1x256xi32>
      %147 = vector.broadcast %22 : i32 to vector<1x256xi32>
      %148 = arith.subi %146, %147 : vector<1x256xi32>
      %149 = vector.broadcast %148 : vector<1x256xi32> to vector<128x256xi32>
      %150 = vector.broadcast %23 : vector<128x1xi32> to vector<128x256xi32>
      %151 = arith.cmpi eq, %149, %150 : vector<128x256xi32>
      %152 = arith.extui %151 : vector<128x256xi1> to vector<128x256xi32>
      %153 = arith.sitofp %152 : vector<128x256xi32> to vector<128x256xf32>
      %c0_67 = arith.constant 0 : index
      %c0_68 = arith.constant 0 : index
      %154 = vector.load %arg10[%c0_67, %c0_68] : memref<128x128xf32, #tpu.memory_space<vmem>>, vector<128x128xf32>
      %155 = arith.index_cast %144 : i32 to index
      %c0_69 = arith.constant 0 : index
      %156 = vector.load %arg9[%155, %c0_69] : memref<2048x128xf32, #tpu.memory_space<vmem>>, vector<256x128xf32>
      %cst_70 = arith.constant dense<0.000000e+00> : vector<128x128xf32>
      %157 = tpu.matmul %153, %156, %cst_70 {dimension_numbers = #tpu.dot_dimension_numbers<[1], [0], [0], [1], [0, 0, 1, 1], [], []>} : vector<128x256xf32>, vector<256x128xf32>, vector<128x128xf32> -> vector<128x128xf32>
      %158 = arith.addf %154, %157 : vector<128x128xf32>
      %c0_71 = arith.constant 0 : index
      %c0_72 = arith.constant 0 : index
      %159 = vector.load %arg10[%c0_71, %c0_72] : memref<128x128xf32, #tpu.memory_space<vmem>>, vector<128x128xf32>
      tpu.vector_store %arg10[%c0_71, %c0_72], %158 {strides = array<i32>} : memref<128x128xf32, #tpu.memory_space<vmem>>, vector<128x128xf32>,
      %c8_i32 = arith.constant 8 : i32
    } else {
    }
    %13 = arith.index_cast %arg0 : i32 to index
    %14 = memref.load %arg4[%13] : memref<2xi32, #tpu.memory_space<smem>>
    %c1_i32_4 = arith.constant 1 : i32
    %15 = arith.cmpi eq, %14, %c1_i32_4 : i32
    %16 = arith.extui %15 : i1 to i32
    %c0_i32_5 = arith.constant 0 : i32
    %17 = arith.cmpi ne, %16, %c0_i32_5 : i32
    scf.if %17 {
      %c0 = arith.constant 0 : index
      %c8 = arith.constant 8 : index
      %18 = vector.load %arg10[%c0, %c8] : memref<128x128xf32, #tpu.memory_space<vmem>>, vector<128x1xf32>
      %cst = arith.constant 1.000000e+00 : f32
      %19 = vector.broadcast %cst : f32 to vector<128x1xf32>
      %20 = arith.maximumf %18, %19 : vector<128x1xf32>
      %21 = tpu.reciprocal %20 : vector<128x1xf32> -> vector<128x1xf32>
      %c0_6 = arith.constant 0 : index
      %c0_7 = arith.constant 0 : index
      %22 = vector.load %arg10[%c0_6, %c0_7] : memref<128x128xf32, #tpu.memory_space<vmem>>, vector<128x9xf32>
      %23 = vector.broadcast %21 : vector<128x1xf32> to vector<128x9xf32>
      %24 = arith.mulf %22, %23 : vector<128x9xf32>
      %c0_8 = arith.constant 0 : index
      %c0_9 = arith.constant 0 : index
      %25 = vector.load %arg8[%c0_8, %c0_9] : memref<128x9xf32, #tpu.memory_space<vmem>>, vector<128x9xf32>
      tpu.vector_store %arg8[%c0_8, %c0_9], %24 {strides = array<i32>} : memref<128x9xf32, #tpu.memory_space<vmem>>, vector<128x9xf32>,
    } else {
    }
    return
  }
  func.func @transform_0(%arg0: i32, %arg1: memref<2xi32, #tpu.memory_space<smem>>, %arg2: memref<2xi32, #tpu.memory_space<smem>>, %arg3: memref<2xi32, #tpu.memory_space<smem>>, %arg4: memref<2xi32, #tpu.memory_space<smem>>, %arg5: memref<2xi32, #tpu.memory_space<smem>>) -> (i32, i32) {
    %0 = arith.index_cast %arg0 : i32 to index
    %1 = memref.load %arg2[%0] : memref<2xi32, #tpu.memory_space<smem>>
    %c0_i32 = arith.constant 0 : i32
    %c0_i32_0 = arith.constant 0 : i32
    return %c0_i32, %1 : i32, i32
  }
  func.func @transform_1(%arg0: i32, %arg1: memref<2xi32, #tpu.memory_space<smem>>, %arg2: memref<2xi32, #tpu.memory_space<smem>>, %arg3: memref<2xi32, #tpu.memory_space<smem>>, %arg4: memref<2xi32, #tpu.memory_space<smem>>, %arg5: memref<2xi32, #tpu.memory_space<smem>>) -> (i32, i32) {
    %0 = arith.index_cast %arg0 : i32 to index
    %1 = memref.load %arg2[%0] : memref<2xi32, #tpu.memory_space<smem>>
    %c0_i32 = arith.constant 0 : i32
    %c0_i32_0 = arith.constant 0 : i32
    return %1, %c0_i32 : i32, i32
  }
  func.func @transform_2(%arg0: i32, %arg1: memref<2xi32, #tpu.memory_space<smem>>, %arg2: memref<2xi32, #tpu.memory_space<smem>>, %arg3: memref<2xi32, #tpu.memory_space<smem>>, %arg4: memref<2xi32, #tpu.memory_space<smem>>, %arg5: memref<2xi32, #tpu.memory_space<smem>>) -> (i32, i32) {
    %0 = arith.index_cast %arg0 : i32 to index
    %1 = memref.load %arg1[%0] : memref<2xi32, #tpu.memory_space<smem>>
    %c0_i32 = arith.constant 0 : i32
    %c0_i32_0 = arith.constant 0 : i32
    return %1, %c0_i32 : i32, i32
  }
}

</mosaic_0001>

<bundles_post_ra>
// kernel: custom-call.3
= control target key start
LH: loop header
LB: loop body
LE: loop exit
PB: predicated region body
PF: predicated region fallthrough
CT: control target
= control target key end

     0   :  { %s6_s0 = inlined_call_operand.vmem [shape: u32[2], index: 0, kind: output, shape index: {}]  }

// kernel: _merge_impl.1
= control target key start
LH: loop header
LB: loop body
LE: loop exit
PB: predicated region body
PF: predicated region fallthrough
CT: control target
= control target key end

     0   :  { %s7633_s0 = inlined_call_operand.vmem [shape: s32[2], index: 0, kind: input, shape index: {}]   ;;  %s7634_s5 = inlined_call_operand.vmem [shape: s32[1,2048], index: 5, kind: input, shape index: {}]   ;;  %s7635_s6 = inlined_call_operand.vmem [shape: f32[2048,9], index: 6, kind: input, shape index: {}]   ;;  %s7636_s7 = inlined_call_operand.vmem [shape: f32[128,9], index: 7, kind: output, shape index: {}]   ;;  %s7637_s1 = inlined_call_operand.vmem [shape: s32[2], index: 1, kind: input, shape index: {}]   ;;  %s7638_s2 = inlined_call_operand.vmem [shape: s32[2], index: 2, kind: input, shape index: {}]   ;;  %s7639_s3 = inlined_call_operand.vmem [shape: s32[2], index: 3, kind: input, shape index: {}]   ;;  %s7640_s4 = inlined_call_operand.vmem [shape: s32[2], index: 4, kind: input, shape index: {}]  }
   0x1   :  { %s12_s26 = sshll.u32 %s7633_s0, 4  ;;  %s16_s29 = sshll.u32 %s7637_s1, 4  ;;  %s13_s26 = int_to_ptr.vmem [resolvable:$true] %s12_s26  ;;  %s17_s29 = int_to_ptr.vmem [resolvable:$true] %s16_s29 }
   0x2   :  { %s5154_s30 = scalar_lea.vmem %s13_s26, 16  ;;  %p5159_p1 = scmp.lt.s32.totalorder %s13_s26, %s13_s26 }
   0x3   :  { %p5155_p0 = scmp.ne.s32.totalorder %s13_s26, %s5154_s30  ;;  %p5160_p2 = scmp.lt.s32.totalorder %s5154_s30, %s5154_s30 }
   0x5   :  { %p5161_p3 = por %p5160_p2, %p5159_p1 }
   0x7   :  { %p5162_p4 = pnand %p5161_p3, %p5155_p0 }
   0x9   :  { %5165 = shalt.err (!%p5162_p4)  }
   0xa   :  { %s5224_s8 = smov [#allocation5]   ;;  %s5166_s9 = scalar_lea.vmem %s17_s29, 16 }
   0xb   :  { %15 = dma.vmem_to_smem %s13_s26, 16, %s5224_s8, [#allocation4] }
   0xc   :  { %p5167_p5 = scmp.ne.s32.totalorder %s17_s29, %s5166_s9  ;;  %p5171_p6 = scmp.lt.s32.totalorder %s17_s29, %s17_s29 }
   0xd   :  { %p5172_p7 = scmp.lt.s32.totalorder %s5166_s9, %s5166_s9 }
   0xf   :  { %p5173_p8 = por %p5172_p7, %p5171_p6 }
  0x11   :  { %p5174_p9 = pnand %p5173_p8, %p5167_p5 }
  0x13   :  { %5177 = shalt.err (!%p5174_p9)  }
  0x14   :  { %s5225_s0 = smov [#allocation6]   ;;  %s20_s11 = sshll.u32 %s7638_s2, 4  ;;  %s21_s11 = int_to_ptr.vmem [resolvable:$true] %s20_s11 }
  0x15   :  { %19 = dma.vmem_to_smem %s17_s29, 16, %s5225_s0, [#allocation4] }
  0x16   :  { %s24_s14 = sshll.u32 %s7639_s3, 4  ;;  %s5178_s15 = scalar_lea.vmem %s21_s11, 16  ;;  %s25_s14 = int_to_ptr.vmem [resolvable:$true] %s24_s14 }
  0x17   :  { %p5179_p10 = scmp.ne.s32.totalorder %s21_s11, %s5178_s15  ;;  %p5183_p11 = scmp.lt.s32.totalorder %s21_s11, %s21_s11 }
  0x18   :  { %p5184_p12 = scmp.lt.s32.totalorder %s5178_s15, %s5178_s15 }
  0x1a   :  { %p5185_p13 = por %p5184_p12, %p5183_p11 }
  0x1c   :  { %p5186_p0 = pnand %p5185_p13, %p5179_p10 }
  0x1e   :  { %5189 = shalt.err (!%p5186_p0)  }
  0x1f   :  { %s5226_s16 = smov [#allocation7]   ;;  %s5190_s17 = scalar_lea.vmem %s25_s14, 16 }
  0x20   :  { %23 = dma.vmem_to_smem %s21_s11, 16, %s5226_s16, [#allocation4] }
  0x21   :  { %p5191_p1 = scmp.ne.s32.totalorder %s25_s14, %s5190_s17  ;;  %p5195_p2 = scmp.lt.s32.totalorder %s25_s14, %s25_s14 }
  0x22   :  { %p5196_p3 = scmp.lt.s32.totalorder %s5190_s17, %s5190_s17 }
  0x24   :  { %p5197_p4 = por %p5196_p3, %p5195_p2 }
  0x26   :  { %p5198_p5 = pnand %p5197_p4, %p5191_p1 }
  0x28   :  { %5201 = shalt.err (!%p5198_p5)  }
  0x29   :  { %s5227_s2 = smov [#allocation8]   ;;  %s28_s19 = sshll.u32 %s7640_s4, 4  ;;  %s29_s19 = int_to_ptr.vmem [resolvable:$true] %s28_s19 }
  0x2a   :  { %27 = dma.vmem_to_smem %s25_s14, 16, %s5227_s2, [#allocation4] }
  0x2b   :  { %s5202_s20 = scalar_lea.vmem %s29_s19, 16  ;;  %p5207_p7 = scmp.lt.s32.totalorder %s29_s19, %s29_s19 }
  0x2c   :  { %p5203_p6 = scmp.ne.s32.totalorder %s29_s19, %s5202_s20  ;;  %p5208_p8 = scmp.lt.s32.totalorder %s5202_s20, %s5202_s20 }
  0x2e   :  { %p5209_p9 = por %p5208_p8, %p5207_p7 }
  0x30   :  { %p5210_p10 = pnand %p5209_p9, %p5203_p6 }
  0x32   :  { %5213 = shalt.err (!%p5210_p10)  }
  0x33   :  { %s5228_s21 = smov [#allocation9]  }
  0x34   :  { %31 = dma.vmem_to_smem %s29_s19, 16, %s5228_s21, [#allocation4] }
  0x35   :  { %5218 = dma.done.wait [#allocation4], 80 }
  0x36   :  { %5219 = vsyncadd [#allocation4], 4294967216 }
  0x37   :  { %33 = sfence }
  0x38   :  { %s5288_s22 = smov 0  }
  0x39 LB: > { %s5294_s4 = sadd.s32 4294967295, %s5222_s22   ;;  %p3931_p11 = scmp.ge.s32.totalorder %s5222_s22, 1  ;;  %s5222_s22 = sphi %s5288_s22, %s39_s22  }
  0x3a   : > { %p160_p12 = scmp.lt.s32.totalorder %s5222_s22, 3 }
  0x3c   : > { %p161_p13 = pnand %p3931_p11, %p160_p12 }
  0x3d   : > { %s189_s23 = sld [smem:[#allocation6 + %s5294_s4]] (!%p161_p13)  ;;  %p3937_p3 = scmp.ne.s32.totalorder (!%p161_p13), %s5294_s4, 0 }
  0x3e   : > { %164 = sbr.rel (%p161_p13) target bundleno = 948 (0x3b4), region = 28  ;;  %s196_s24 = sld [smem:[#allocation6 + %s5294_s4]] (!%p161_p13) }
  0x3f   : > { %s204_s25 = sld [smem:[#allocation5 + %s5294_s4]] (!%p161_p13) }
  0x43   : > { %s3932_s26 = sshll.u32 %s189_s23, 4 }
  0x44   : > { %p191_p0 = scmp.lt.s32.totalorder %s3932_s26, 15  ;;  %s3933_s27 = sshll.u32 %s196_s24, 8 }
  0x45   : > { %p198_p1 = scmp.lt.s32.totalorder %s3933_s27, 255  ;;  %s3935_s28 = sshll.u32 %s204_s25, 4 }
  0x46   : > { %s7700_s26 = smov (!%p191_p0, %s3932_s26), 15  ;;  %p206_p2 = scmp.lt.s32.totalorder %s3935_s28, 15 }
  0x47   : > { %s7702_s27 = smov (!%p198_p1, %s3933_s27), 255  ;;  %s5304_s8 = scalar_lea.vmem %s7634_s5, %s7700_s26 }
  0x48   : > { %s3934_s9 = sshll.u32 %s7702_s27, 3  ;;  %s7704_s28 = smov (!%p206_p2, %s3935_s28), 15 }
  0x49   : > { %s5309_s10 = scalar_lea.vmem %s7635_s6, %s3934_s9  ;;  %s3936_s11 = sshll.u32 %s7704_s28, 3 }
  0x4a   : > { %s5314_s14 = scalar_lea.vmem %s7636_s7, %s3936_s11  ;;  %215 = sbr.rel (%p3937_p3) target bundleno = 208 (0xd0), region = 32 }
  0x4f   : > { %v5229_v0 = vmov 0.0  }
  0x50   : > { %216 = vst [vmem:[#allocation2] sm:$0xff] %v5229_v0  ;;  %217 = vst [vmem:[#allocation2 + $0x8] sm:$0xff] %v5229_v0 }
  0x51   : > { %218 = vst [vmem:[#allocation2 + $0x10] sm:$0xff] %v5229_v0  ;;  %219 = vst [vmem:[#allocation2 + $0x18] sm:$0xff] %v5229_v0 }
  0x52   : > { %220 = vst [vmem:[#allocation2 + $0x20] sm:$0xff] %v5229_v0  ;;  %221 = vst [vmem:[#allocation2 + $0x28] sm:$0xff] %v5229_v0 }
  0x53   : > { %222 = vst [vmem:[#allocation2 + $0x30] sm:$0xff] %v5229_v0  ;;  %223 = vst [vmem:[#allocation2 + $0x38] sm:$0xff] %v5229_v0 }
  0x54   : > { %224 = vst [vmem:[#allocation2 + $0x40] sm:$0xff] %v5229_v0  ;;  %225 = vst [vmem:[#allocation2 + $0x48] sm:$0xff] %v5229_v0 }
  0x55   : > { %226 = vst [vmem:[#allocation2 + $0x50] sm:$0xff] %v5229_v0  ;;  %227 = vst [vmem:[#allocation2 + $0x58] sm:$0xff] %v5229_v0 }
  0x56   : > { %228 = vst [vmem:[#allocation2 + $0x60] sm:$0xff] %v5229_v0  ;;  %229 = vst [vmem:[#allocation2 + $0x68] sm:$0xff] %v5229_v0 }
  0x57   : > { %230 = vst [vmem:[#allocation2 + $0x70] sm:$0xff] %v5229_v0  ;;  %231 = vst [vmem:[#allocation2 + $0x78] sm:$0xff] %v5229_v0 }
  0x58   : > { %232 = vst [vmem:[#allocation2 + $0x80] sm:$0xff] %v5229_v0  ;;  %233 = vst [vmem:[#allocation2 + $0x88] sm:$0xff] %v5229_v0 }
  0x59   : > { %234 = vst [vmem:[#allocation2 + $0x90] sm:$0xff] %v5229_v0  ;;  %235 = vst [vmem:[#allocation2 + $0x98] sm:$0xff] %v5229_v0 }
  0x5a   : > { %236 = vst [vmem:[#allocation2 + $0xa0] sm:$0xff] %v5229_v0  ;;  %237 = vst [vmem:[#allocation2 + $0xa8] sm:$0xff] %v5229_v0 }
  0x5b   : > { %238 = vst [vmem:[#allocation2 + $0xb0] sm:$0xff] %v5229_v0  ;;  %239 = vst [vmem:[#allocation2 + $0xb8] sm:$0xff] %v5229_v0 }
  0x5c   : > { %240 = vst [vmem:[#allocation2 + $0xc0] sm:$0xff] %v5229_v0  ;;  %241 = vst [vmem:[#allocation2 + $0xc8] sm:$0xff] %v5229_v0 }
  0x5d   : > { %242 = vst [vmem:[#allocation2 + $0xd0] sm:$0xff] %v5229_v0  ;;  %243 = vst [vmem:[#allocation2 + $0xd8] sm:$0xff] %v5229_v0 }
  0x5e   : > { %244 = vst [vmem:[#allocation2 + $0xe0] sm:$0xff] %v5229_v0  ;;  %245 = vst [vmem:[#allocation2 + $0xe8] sm:$0xff] %v5229_v0 }
  0x5f   : > { %246 = vst [vmem:[#allocation2 + $0xf0] sm:$0xff] %v5229_v0  ;;  %247 = vst [vmem:[#allocation2 + $0xf8] sm:$0xff] %v5229_v0 }
  0x60   : > { %248 = vst [vmem:[#allocation2 + $0x100] sm:$0xff] %v5229_v0  ;;  %249 = vst [vmem:[#allocation2 + $0x108] sm:$0xff] %v5229_v0 }
  0x61   : > { %250 = vst [vmem:[#allocation2 + $0x110] sm:$0xff] %v5229_v0  ;;  %251 = vst [vmem:[#allocation2 + $0x118] sm:$0xff] %v5229_v0 }
  0x62   : > { %252 = vst [vmem:[#allocation2 + $0x120] sm:$0xff] %v5229_v0  ;;  %253 = vst [vmem:[#allocation2 + $0x128] sm:$0xff] %v5229_v0 }
  0x63   : > { %254 = vst [vmem:[#allocation2 + $0x130] sm:$0xff] %v5229_v0  ;;  %255 = vst [vmem:[#allocation2 + $0x138] sm:$0xff] %v5229_v0 }
  0x64   : > { %256 = vst [vmem:[#allocation2 + $0x140] sm:$0xff] %v5229_v0  ;;  %257 = vst [vmem:[#allocation2 + $0x148] sm:$0xff] %v5229_v0 }
  0x65   : > { %258 = vst [vmem:[#allocation2 + $0x150] sm:$0xff] %v5229_v0  ;;  %259 = vst [vmem:[#allocation2 + $0x158] sm:$0xff] %v5229_v0 }
  0x66   : > { %260 = vst [vmem:[#allocation2 + $0x160] sm:$0xff] %v5229_v0  ;;  %261 = vst [vmem:[#allocation2 + $0x168] sm:$0xff] %v5229_v0 }
  0x67   : > { %262 = vst [vmem:[#allocation2 + $0x170] sm:$0xff] %v5229_v0  ;;  %263 = vst [vmem:[#allocation2 + $0x178] sm:$0xff] %v5229_v0 }
  0x68   : > { %264 = vst [vmem:[#allocation2 + $0x180] sm:$0xff] %v5229_v0  ;;  %265 = vst [vmem:[#allocation2 + $0x188] sm:$0xff] %v5229_v0 }
  0x69   : > { %266 = vst [vmem:[#allocation2 + $0x190] sm:$0xff] %v5229_v0  ;;  %267 = vst [vmem:[#allocation2 + $0x198] sm:$0xff] %v5229_v0 }
  0x6a   : > { %268 = vst [vmem:[#allocation2 + $0x1a0] sm:$0xff] %v5229_v0  ;;  %269 = vst [vmem:[#allocation2 + $0x1a8] sm:$0xff] %v5229_v0 }
  0x6b   : > { %270 = vst [vmem:[#allocation2 + $0x1b0] sm:$0xff] %v5229_v0  ;;  %271 = vst [vmem:[#allocation2 + $0x1b8] sm:$0xff] %v5229_v0 }
  0x6c   : > { %272 = vst [vmem:[#allocation2 + $0x1c0] sm:$0xff] %v5229_v0  ;;  %273 = vst [vmem:[#allocation2 + $0x1c8] sm:$0xff] %v5229_v0 }
  0x6d   : > { %274 = vst [vmem:[#allocation2 + $0x1d0] sm:$0xff] %v5229_v0  ;;  %275 = vst [vmem:[#allocation2 + $0x1d8] sm:$0xff] %v5229_v0 }
  0x6e   : > { %276 = vst [vmem:[#allocation2 + $0x1e0] sm:$0xff] %v5229_v0  ;;  %277 = vst [vmem:[#allocation2 + $0x1e8] sm:$0xff] %v5229_v0 }
  0x6f   : > { %278 = vst [vmem:[#allocation2 + $0x1f0] sm:$0xff] %v5229_v0  ;;  %279 = vst [vmem:[#allocation2 + $0x1f8] sm:$0xff] %v5229_v0 }
  0x70   : > { %280 = vst [vmem:[#allocation2 + $0x200] sm:$0xff] %v5229_v0  ;;  %281 = vst [vmem:[#allocation2 + $0x208] sm:$0xff] %v5229_v0 }
  0x71   : > { %282 = vst [vmem:[#allocation2 + $0x210] sm:$0xff] %v5229_v0  ;;  %283 = vst [vmem:[#allocation2 + $0x218] sm:$0xff] %v5229_v0 }
  0x72   : > { %284 = vst [vmem:[#allocation2 + $0x220] sm:$0xff] %v5229_v0  ;;  %285 = vst [vmem:[#allocation2 + $0x228] sm:$0xff] %v5229_v0 }
  0x73   : > { %286 = vst [vmem:[#allocation2 + $0x230] sm:$0xff] %v5229_v0  ;;  %287 = vst [vmem:[#allocation2 + $0x238] sm:$0xff] %v5229_v0 }
  0x74   : > { %288 = vst [vmem:[#allocation2 + $0x240] sm:$0xff] %v5229_v0  ;;  %289 = vst [vmem:[#allocation2 + $0x248] sm:$0xff] %v5229_v0 }
  0x75   : > { %290 = vst [vmem:[#allocation2 + $0x250] sm:$0xff] %v5229_v0  ;;  %291 = vst [vmem:[#allocation2 + $0x258] sm:$0xff] %v5229_v0 }
  0x76   : > { %292 = vst [vmem:[#allocation2 + $0x260] sm:$0xff] %v5229_v0  ;;  %293 = vst [vmem:[#allocation2 + $0x268] sm:$0xff] %v5229_v0 }
  0x77   : > { %294 = vst [vmem:[#allocation2 + $0x270] sm:$0xff] %v5229_v0  ;;  %295 = vst [vmem:[#allocation2 + $0x278] sm:$0xff] %v5229_v0 }
  0x78   : > { %296 = vst [vmem:[#allocation2 + $0x280] sm:$0xff] %v5229_v0  ;;  %297 = vst [vmem:[#allocation2 + $0x288] sm:$0xff] %v5229_v0 }
  0x79   : > { %298 = vst [vmem:[#allocation2 + $0x290] sm:$0xff] %v5229_v0  ;;  %299 = vst [vmem:[#allocation2 + $0x298] sm:$0xff] %v5229_v0 }
  0x7a   : > { %300 = vst [vmem:[#allocation2 + $0x2a0] sm:$0xff] %v5229_v0  ;;  %301 = vst [vmem:[#allocation2 + $0x2a8] sm:$0xff] %v5229_v0 }
  0x7b   : > { %302 = vst [vmem:[#allocation2 + $0x2b0] sm:$0xff] %v5229_v0  ;;  %303 = vst [vmem:[#allocation2 + $0x2b8] sm:$0xff] %v5229_v0 }
  0x7c   : > { %304 = vst [vmem:[#allocation2 + $0x2c0] sm:$0xff] %v5229_v0  ;;  %305 = vst [vmem:[#allocation2 + $0x2c8] sm:$0xff] %v5229_v0 }
  0x7d   : > { %306 = vst [vmem:[#allocation2 + $0x2d0] sm:$0xff] %v5229_v0  ;;  %307 = vst [vmem:[#allocation2 + $0x2d8] sm:$0xff] %v5229_v0 }
  0x7e   : > { %308 = vst [vmem:[#allocation2 + $0x2e0] sm:$0xff] %v5229_v0  ;;  %309 = vst [vmem:[#allocation2 + $0x2e8] sm:$0xff] %v5229_v0 }
  0x7f   : > { %310 = vst [vmem:[#allocation2 + $0x2f0] sm:$0xff] %v5229_v0  ;;  %311 = vst [vmem:[#allocation2 + $0x2f8] sm:$0xff] %v5229_v0 }
  0x80   : > { %312 = vst [vmem:[#allocation2 + $0x300] sm:$0xff] %v5229_v0  ;;  %313 = vst [vmem:[#allocation2 + $0x308] sm:$0xff] %v5229_v0 }
  0x81   : > { %314 = vst [vmem:[#allocation2 + $0x310] sm:$0xff] %v5229_v0  ;;  %315 = vst [vmem:[#allocation2 + $0x318] sm:$0xff] %v5229_v0 }
  0x82   : > { %316 = vst [vmem:[#allocation2 + $0x320] sm:$0xff] %v5229_v0  ;;  %317 = vst [vmem:[#allocation2 + $0x328] sm:$0xff] %v5229_v0 }
  0x83   : > { %318 = vst [vmem:[#allocation2 + $0x330] sm:$0xff] %v5229_v0  ;;  %319 = vst [vmem:[#allocation2 + $0x338] sm:$0xff] %v5229_v0 }
  0x84   : > { %320 = vst [vmem:[#allocation2 + $0x340] sm:$0xff] %v5229_v0  ;;  %321 = vst [vmem:[#allocation2 + $0x348] sm:$0xff] %v5229_v0 }
  0x85   : > { %322 = vst [vmem:[#allocation2 + $0x350] sm:$0xff] %v5229_v0  ;;  %323 = vst [vmem:[#allocation2 + $0x358] sm:$0xff] %v5229_v0 }
  0x86   : > { %324 = vst [vmem:[#allocation2 + $0x360] sm:$0xff] %v5229_v0  ;;  %325 = vst [vmem:[#allocation2 + $0x368] sm:$0xff] %v5229_v0 }
  0x87   : > { %326 = vst [vmem:[#allocation2 + $0x370] sm:$0xff] %v5229_v0  ;;  %327 = vst [vmem:[#allocation2 + $0x378] sm:$0xff] %v5229_v0 }
  0x88   : > { %328 = vst [vmem:[#allocation2 + $0x380] sm:$0xff] %v5229_v0  ;;  %329 = vst [vmem:[#allocation2 + $0x388] sm:$0xff] %v5229_v0 }
  0x89   : > { %330 = vst [vmem:[#allocation2 + $0x390] sm:$0xff] %v5229_v0  ;;  %331 = vst [vmem:[#allocation2 + $0x398] sm:$0xff] %v5229_v0 }
  0x8a   : > { %332 = vst [vmem:[#allocation2 + $0x3a0] sm:$0xff] %v5229_v0  ;;  %333 = vst [vmem:[#allocation2 + $0x3a8] sm:$0xff] %v5229_v0 }
  0x8b   : > { %334 = vst [vmem:[#allocation2 + $0x3b0] sm:$0xff] %v5229_v0  ;;  %335 = vst [vmem:[#allocation2 + $0x3b8] sm:$0xff] %v5229_v0 }
  0x8c   : > { %336 = vst [vmem:[#allocation2 + $0x3c0] sm:$0xff] %v5229_v0  ;;  %337 = vst [vmem:[#allocation2 + $0x3c8] sm:$0xff] %v5229_v0 }
  0x8d   : > { %338 = vst [vmem:[#allocation2 + $0x3d0] sm:$0xff] %v5229_v0  ;;  %339 = vst [vmem:[#allocation2 + $0x3d8] sm:$0xff] %v5229_v0 }
  0x8e   : > { %340 = vst [vmem:[#allocation2 + $0x3e0] sm:$0xff] %v5229_v0  ;;  %341 = vst [vmem:[#allocation2 + $0x3e8] sm:$0xff] %v5229_v0 }
  0x8f   : > { %342 = vst [vmem:[#allocation2 + $0x3f0] sm:$0xff] %v5229_v0  ;;  %343 = vst [vmem:[#allocation2 + $0x3f8] sm:$0xff] %v5229_v0 }
  0x90   : > { %344 = vst [vmem:[#allocation2 + $0x400] sm:$0xff] %v5229_v0  ;;  %345 = vst [vmem:[#allocation2 + $0x408] sm:$0xff] %v5229_v0 }
  0x91   : > { %346 = vst [vmem:[#allocation2 + $0x410] sm:$0xff] %v5229_v0  ;;  %347 = vst [vmem:[#allocation2 + $0x418] sm:$0xff] %v5229_v0 }
  0x92   : > { %348 = vst [vmem:[#allocation2 + $0x420] sm:$0xff] %v5229_v0  ;;  %349 = vst [vmem:[#allocation2 + $0x428] sm:$0xff] %v5229_v0 }
  0x93   : > { %350 = vst [vmem:[#allocation2 + $0x430] sm:$0xff] %v5229_v0  ;;  %351 = vst [vmem:[#allocation2 + $0x438] sm:$0xff] %v5229_v0 }
  0x94   : > { %352 = vst [vmem:[#allocation2 + $0x440] sm:$0xff] %v5229_v0  ;;  %353 = vst [vmem:[#allocation2 + $0x448] sm:$0xff] %v5229_v0 }
  0x95   : > { %354 = vst [vmem:[#allocation2 + $0x450] sm:$0xff] %v5229_v0  ;;  %355 = vst [vmem:[#allocation2 + $0x458] sm:$0xff] %v5229_v0 }
  0x96   : > { %356 = vst [vmem:[#allocation2 + $0x460] sm:$0xff] %v5229_v0  ;;  %357 = vst [vmem:[#allocation2 + $0x468] sm:$0xff] %v5229_v0 }
  0x97   : > { %358 = vst [vmem:[#allocation2 + $0x470] sm:$0xff] %v5229_v0  ;;  %359 = vst [vmem:[#allocation2 + $0x478] sm:$0xff] %v5229_v0 }
  0x98   : > { %360 = vst [vmem:[#allocation2 + $0x480] sm:$0xff] %v5229_v0  ;;  %361 = vst [vmem:[#allocation2 + $0x488] sm:$0xff] %v5229_v0 }
  0x99   : > { %362 = vst [vmem:[#allocation2 + $0x490] sm:$0xff] %v5229_v0  ;;  %363 = vst [vmem:[#allocation2 + $0x498] sm:$0xff] %v5229_v0 }
  0x9a   : > { %364 = vst [vmem:[#allocation2 + $0x4a0] sm:$0xff] %v5229_v0  ;;  %365 = vst [vmem:[#allocation2 + $0x4a8] sm:$0xff] %v5229_v0 }
  0x9b   : > { %366 = vst [vmem:[#allocation2 + $0x4b0] sm:$0xff] %v5229_v0  ;;  %367 = vst [vmem:[#allocation2 + $0x4b8] sm:$0xff] %v5229_v0 }
  0x9c   : > { %368 = vst [vmem:[#allocation2 + $0x4c0] sm:$0xff] %v5229_v0  ;;  %369 = vst [vmem:[#allocation2 + $0x4c8] sm:$0xff] %v5229_v0 }
  0x9d   : > { %370 = vst [vmem:[#allocation2 + $0x4d0] sm:$0xff] %v5229_v0  ;;  %371 = vst [vmem:[#allocation2 + $0x4d8] sm:$0xff] %v5229_v0 }
  0x9e   : > { %372 = vst [vmem:[#allocation2 + $0x4e0] sm:$0xff] %v5229_v0  ;;  %373 = vst [vmem:[#allocation2 + $0x4e8] sm:$0xff] %v5229_v0 }
  0x9f   : > { %374 = vst [vmem:[#allocation2 + $0x4f0] sm:$0xff] %v5229_v0  ;;  %375 = vst [vmem:[#allocation2 + $0x4f8] sm:$0xff] %v5229_v0 }
  0xa0   : > { %376 = vst [vmem:[#allocation2 + $0x500] sm:$0xff] %v5229_v0  ;;  %377 = vst [vmem:[#allocation2 + $0x508] sm:$0xff] %v5229_v0 }
  0xa1   : > { %378 = vst [vmem:[#allocation2 + $0x510] sm:$0xff] %v5229_v0  ;;  %379 = vst [vmem:[#allocation2 + $0x518] sm:$0xff] %v5229_v0 }
  0xa2   : > { %380 = vst [vmem:[#allocation2 + $0x520] sm:$0xff] %v5229_v0  ;;  %381 = vst [vmem:[#allocation2 + $0x528] sm:$0xff] %v5229_v0 }
  0xa3   : > { %382 = vst [vmem:[#allocation2 + $0x530] sm:$0xff] %v5229_v0  ;;  %383 = vst [vmem:[#allocation2 + $0x538] sm:$0xff] %v5229_v0 }
  0xa4   : > { %384 = vst [vmem:[#allocation2 + $0x540] sm:$0xff] %v5229_v0  ;;  %385 = vst [vmem:[#allocation2 + $0x548] sm:$0xff] %v5229_v0 }
  0xa5   : > { %386 = vst [vmem:[#allocation2 + $0x550] sm:$0xff] %v5229_v0  ;;  %387 = vst [vmem:[#allocation2 + $0x558] sm:$0xff] %v5229_v0 }
  0xa6   : > { %388 = vst [vmem:[#allocation2 + $0x560] sm:$0xff] %v5229_v0  ;;  %389 = vst [vmem:[#allocation2 + $0x568] sm:$0xff] %v5229_v0 }
  0xa7   : > { %390 = vst [vmem:[#allocation2 + $0x570] sm:$0xff] %v5229_v0  ;;  %391 = vst [vmem:[#allocation2 + $0x578] sm:$0xff] %v5229_v0 }
  0xa8   : > { %392 = vst [vmem:[#allocation2 + $0x580] sm:$0xff] %v5229_v0  ;;  %393 = vst [vmem:[#allocation2 + $0x588] sm:$0xff] %v5229_v0 }
  0xa9   : > { %394 = vst [vmem:[#allocation2 + $0x590] sm:$0xff] %v5229_v0  ;;  %395 = vst [vmem:[#allocation2 + $0x598] sm:$0xff] %v5229_v0 }
  0xaa   : > { %396 = vst [vmem:[#allocation2 + $0x5a0] sm:$0xff] %v5229_v0  ;;  %397 = vst [vmem:[#allocation2 + $0x5a8] sm:$0xff] %v5229_v0 }
  0xab   : > { %398 = vst [vmem:[#allocation2 + $0x5b0] sm:$0xff] %v5229_v0  ;;  %399 = vst [vmem:[#allocation2 + $0x5b8] sm:$0xff] %v5229_v0 }
  0xac   : > { %400 = vst [vmem:[#allocation2 + $0x5c0] sm:$0xff] %v5229_v0  ;;  %401 = vst [vmem:[#allocation2 + $0x5c8] sm:$0xff] %v5229_v0 }
  0xad   : > { %402 = vst [vmem:[#allocation2 + $0x5d0] sm:$0xff] %v5229_v0  ;;  %403 = vst [vmem:[#allocation2 + $0x5d8] sm:$0xff] %v5229_v0 }
  0xae   : > { %404 = vst [vmem:[#allocation2 + $0x5e0] sm:$0xff] %v5229_v0  ;;  %405 = vst [vmem:[#allocation2 + $0x5e8] sm:$0xff] %v5229_v0 }
  0xaf   : > { %406 = vst [vmem:[#allocation2 + $0x5f0] sm:$0xff] %v5229_v0  ;;  %407 = vst [vmem:[#allocation2 + $0x5f8] sm:$0xff] %v5229_v0 }
  0xb0   : > { %408 = vst [vmem:[#allocation2 + $0x600] sm:$0xff] %v5229_v0  ;;  %409 = vst [vmem:[#allocation2 + $0x608] sm:$0xff] %v5229_v0 }
  0xb1   : > { %410 = vst [vmem:[#allocation2 + $0x610] sm:$0xff] %v5229_v0  ;;  %411 = vst [vmem:[#allocation2 + $0x618] sm:$0xff] %v5229_v0 }
  0xb2   : > { %412 = vst [vmem:[#allocation2 + $0x620] sm:$0xff] %v5229_v0  ;;  %413 = vst [vmem:[#allocation2 + $0x628] sm:$0xff] %v5229_v0 }
  0xb3   : > { %414 = vst [vmem:[#allocation2 + $0x630] sm:$0xff] %v5229_v0  ;;  %415 = vst [vmem:[#allocation2 + $0x638] sm:$0xff] %v5229_v0 }
  0xb4   : > { %416 = vst [vmem:[#allocation2 + $0x640] sm:$0xff] %v5229_v0  ;;  %417 = vst [vmem:[#allocation2 + $0x648] sm:$0xff] %v5229_v0 }
  0xb5   : > { %418 = vst [vmem:[#allocation2 + $0x650] sm:$0xff] %v5229_v0  ;;  %419 = vst [vmem:[#allocation2 + $0x658] sm:$0xff] %v5229_v0 }
  0xb6   : > { %420 = vst [vmem:[#allocation2 + $0x660] sm:$0xff] %v5229_v0  ;;  %421 = vst [vmem:[#allocation2 + $0x668] sm:$0xff] %v5229_v0 }
  0xb7   : > { %422 = vst [vmem:[#allocation2 + $0x670] sm:$0xff] %v5229_v0  ;;  %423 = vst [vmem:[#allocation2 + $0x678] sm:$0xff] %v5229_v0 }
  0xb8   : > { %424 = vst [vmem:[#allocation2 + $0x680] sm:$0xff] %v5229_v0  ;;  %425 = vst [vmem:[#allocation2 + $0x688] sm:$0xff] %v5229_v0 }
  0xb9   : > { %426 = vst [vmem:[#allocation2 + $0x690] sm:$0xff] %v5229_v0  ;;  %427 = vst [vmem:[#allocation2 + $0x698] sm:$0xff] %v5229_v0 }
  0xba   : > { %428 = vst [vmem:[#allocation2 + $0x6a0] sm:$0xff] %v5229_v0  ;;  %429 = vst [vmem:[#allocation2 + $0x6a8] sm:$0xff] %v5229_v0 }
  0xbb   : > { %430 = vst [vmem:[#allocation2 + $0x6b0] sm:$0xff] %v5229_v0  ;;  %431 = vst [vmem:[#allocation2 + $0x6b8] sm:$0xff] %v5229_v0 }
  0xbc   : > { %432 = vst [vmem:[#allocation2 + $0x6c0] sm:$0xff] %v5229_v0  ;;  %433 = vst [vmem:[#allocation2 + $0x6c8] sm:$0xff] %v5229_v0 }
  0xbd   : > { %434 = vst [vmem:[#allocation2 + $0x6d0] sm:$0xff] %v5229_v0  ;;  %435 = vst [vmem:[#allocation2 + $0x6d8] sm:$0xff] %v5229_v0 }
  0xbe   : > { %436 = vst [vmem:[#allocation2 + $0x6e0] sm:$0xff] %v5229_v0  ;;  %437 = vst [vmem:[#allocation2 + $0x6e8] sm:$0xff] %v5229_v0 }
  0xbf   : > { %438 = vst [vmem:[#allocation2 + $0x6f0] sm:$0xff] %v5229_v0  ;;  %439 = vst [vmem:[#allocation2 + $0x6f8] sm:$0xff] %v5229_v0 }
  0xc0   : > { %440 = vst [vmem:[#allocation2 + $0x700] sm:$0xff] %v5229_v0  ;;  %441 = vst [vmem:[#allocation2 + $0x708] sm:$0xff] %v5229_v0 }
  0xc1   : > { %442 = vst [vmem:[#allocation2 + $0x710] sm:$0xff] %v5229_v0  ;;  %443 = vst [vmem:[#allocation2 + $0x718] sm:$0xff] %v5229_v0 }
  0xc2   : > { %444 = vst [vmem:[#allocation2 + $0x720] sm:$0xff] %v5229_v0  ;;  %445 = vst [vmem:[#allocation2 + $0x728] sm:$0xff] %v5229_v0 }
  0xc3   : > { %446 = vst [vmem:[#allocation2 + $0x730] sm:$0xff] %v5229_v0  ;;  %447 = vst [vmem:[#allocation2 + $0x738] sm:$0xff] %v5229_v0 }
  0xc4   : > { %448 = vst [vmem:[#allocation2 + $0x740] sm:$0xff] %v5229_v0  ;;  %449 = vst [vmem:[#allocation2 + $0x748] sm:$0xff] %v5229_v0 }
  0xc5   : > { %450 = vst [vmem:[#allocation2 + $0x750] sm:$0xff] %v5229_v0  ;;  %451 = vst [vmem:[#allocation2 + $0x758] sm:$0xff] %v5229_v0 }
  0xc6   : > { %452 = vst [vmem:[#allocation2 + $0x760] sm:$0xff] %v5229_v0  ;;  %453 = vst [vmem:[#allocation2 + $0x768] sm:$0xff] %v5229_v0 }
  0xc7   : > { %454 = vst [vmem:[#allocation2 + $0x770] sm:$0xff] %v5229_v0  ;;  %455 = vst [vmem:[#allocation2 + $0x778] sm:$0xff] %v5229_v0 }
  0xc8   : > { %456 = vst [vmem:[#allocation2 + $0x780] sm:$0xff] %v5229_v0  ;;  %457 = vst [vmem:[#allocation2 + $0x788] sm:$0xff] %v5229_v0 }
  0xc9   : > { %458 = vst [vmem:[#allocation2 + $0x790] sm:$0xff] %v5229_v0  ;;  %459 = vst [vmem:[#allocation2 + $0x798] sm:$0xff] %v5229_v0 }
  0xca   : > { %460 = vst [vmem:[#allocation2 + $0x7a0] sm:$0xff] %v5229_v0  ;;  %461 = vst [vmem:[#allocation2 + $0x7a8] sm:$0xff] %v5229_v0 }
  0xcb   : > { %462 = vst [vmem:[#allocation2 + $0x7b0] sm:$0xff] %v5229_v0  ;;  %463 = vst [vmem:[#allocation2 + $0x7b8] sm:$0xff] %v5229_v0 }
  0xcc   : > { %464 = vst [vmem:[#allocation2 + $0x7c0] sm:$0xff] %v5229_v0  ;;  %465 = vst [vmem:[#allocation2 + $0x7c8] sm:$0xff] %v5229_v0 }
  0xcd   : > { %466 = vst [vmem:[#allocation2 + $0x7d0] sm:$0xff] %v5229_v0  ;;  %467 = vst [vmem:[#allocation2 + $0x7d8] sm:$0xff] %v5229_v0 }
  0xce   : > { %468 = vst [vmem:[#allocation2 + $0x7e0] sm:$0xff] %v5229_v0  ;;  %469 = vst [vmem:[#allocation2 + $0x7e8] sm:$0xff] %v5229_v0 }
  0xcf   : > { %470 = vst [vmem:[#allocation2 + $0x7f0] sm:$0xff] %v5229_v0  ;;  %471 = vst [vmem:[#allocation2 + $0x7f8] sm:$0xff] %v5229_v0 }
  0xd0 PF: > { %s472_s15 = sld [smem:[#allocation7 + %s5294_s4]] }
  0xd6   : > { %p3938_p4 = scmp.ne.s32.totalorder %s472_s15, 1 }
  0xd8   : > { %476 = sbr.rel (%p3938_p4) target bundleno = 230 (0xe6), region = 36 }
  0xdd   : > { %v5230_v1 = vmov 0.0  }
  0xde   : > { %477 = vst [vmem:[#allocation3 + $0x30] sm:$0xff] %v5230_v1  ;;  %478 = vst [vmem:[#allocation3] sm:$0xff] %v5230_v1 }
  0xdf   : > { %479 = vst [vmem:[#allocation3 + $0x58] sm:$0xff] %v5230_v1  ;;  %480 = vst [vmem:[#allocation3 + $0x18] sm:$0xff] %v5230_v1 }
  0xe0   : > { %481 = vst [vmem:[#allocation3 + $0x50] sm:$0xff] %v5230_v1  ;;  %482 = vst [vmem:[#allocation3 + $0x68] sm:$0xff] %v5230_v1 }
  0xe1   : > { %483 = vst [vmem:[#allocation3 + $0x8] sm:$0xff] %v5230_v1  ;;  %484 = vst [vmem:[#allocation3 + $0x48] sm:$0xff] %v5230_v1 }
  0xe2   : > { %485 = vst [vmem:[#allocation3 + $0x40] sm:$0xff] %v5230_v1  ;;  %486 = vst [vmem:[#allocation3 + $0x20] sm:$0xff] %v5230_v1 }
  0xe3   : > { %487 = vst [vmem:[#allocation3 + $0x10] sm:$0xff] %v5230_v1  ;;  %488 = vst [vmem:[#allocation3 + $0x38] sm:$0xff] %v5230_v1 }
  0xe4   : > { %489 = vst [vmem:[#allocation3 + $0x60] sm:$0xff] %v5230_v1  ;;  %490 = vst [vmem:[#allocation3 + $0x70] sm:$0xff] %v5230_v1 }
  0xe5   : > { %491 = vst [vmem:[#allocation3 + $0x78] sm:$0xff] %v5230_v1  ;;  %492 = vst [vmem:[#allocation3 + $0x28] sm:$0xff] %v5230_v1 }
  0xe6 PF: > { %s493_s16 = sld [smem:[#allocation9 + %s5294_s4]] }
  0xec   : > { %p3939_p5 = scmp.ne.s32.totalorder %s493_s16, 1 }
  0xee   : > { %497 = sbr.rel (%p3939_p5) target bundleno = 762 (0x2fa), region = 40 }
  0xf3   : > { %v529_v2 = vld [vmem:[%s5309_s10 + $0xf8] sm:$0xff]  ;;  %vm754_vm0 = vcmask 72704   ;;  %v528_v4 = vld [vmem:[%s5309_s10 + $0xf0] sm:$0xff]  ;;  %v527_v6 = vld [vmem:[%s5309_s10 + $0xe8] sm:$0xff]  ;;  %s5657_s17 = sld [smem:[#allocation5 + %s5294_s4]] }
  0xf4   : > { %v513_v3 = vld [vmem:[%s5309_s10 + $0x78] sm:$0xff]  ;;  %786 = vst.msk [vmem:[#allocation2 + $0xf8] sm:$0xff] %vm754_vm0, %v529_v2  ;;  %785 = vst.msk [vmem:[#allocation2 + $0xf0] sm:$0xff] %vm754_vm0, %v528_v4  ;;  %v512_v5 = vld [vmem:[%s5309_s10 + $0x70] sm:$0xff] }
  0xf5   : > { %770 = vst.msk [vmem:[#allocation2 + $0x78] sm:$0xff] %vm754_vm0, %v513_v3  ;;  %v511_v7 = vld [vmem:[%s5309_s10 + $0x68] sm:$0xff]  ;;  %769 = vst.msk [vmem:[#allocation2 + $0x70] sm:$0xff] %vm754_vm0, %v512_v5  ;;  %v526_v8 = vld [vmem:[%s5309_s10 + $0xe0] sm:$0xff] }
  0xf6   : > { %784 = vst.msk [vmem:[#allocation2 + $0xe8] sm:$0xff] %vm754_vm0, %v527_v6  ;;  %768 = vst.msk [vmem:[#allocation2 + $0x68] sm:$0xff] %vm754_vm0, %v511_v7  ;;  %v510_v9 = vld [vmem:[%s5309_s10 + $0x60] sm:$0xff]  ;;  %v525_v10 = vld [vmem:[%s5309_s10 + $0xd8] sm:$0xff] }
  0xf7   : > { %783 = vst.msk [vmem:[#allocation2 + $0xe0] sm:$0xff] %vm754_vm0, %v526_v8  ;;  %767 = vst.msk [vmem:[#allocation2 + $0x60] sm:$0xff] %vm754_vm0, %v510_v9  ;;  %v509_v11 = vld [vmem:[%s5309_s10 + $0x58] sm:$0xff]  ;;  %v524_v13 = vld [vmem:[%s5309_s10 + $0xd0] sm:$0xff] }
  0xf8   : > { %782 = vst.msk [vmem:[#allocation2 + $0xd8] sm:$0xff] %vm754_vm0, %v525_v10  ;;  %v561_v12 = vld [vmem:[%s5309_s10 + $0x1f8] sm:$0xff]  ;;  %766 = vst.msk [vmem:[#allocation2 + $0x58] sm:$0xff] %vm754_vm0, %v509_v11  ;;  %v508_v15 = vld [vmem:[%s5309_s10 + $0x50] sm:$0xff] }
  0xf9   : > { %818 = vst.msk [vmem:[#allocation2 + $0x1f8] sm:$0xff] %vm754_vm0, %v561_v12  ;;  %781 = vst.msk [vmem:[#allocation2 + $0xd0] sm:$0xff] %vm754_vm0, %v524_v13  ;;  %v545_v14 = vld [vmem:[%s5309_s10 + $0x178] sm:$0xff]  ;;  %v560_v16 = vld [vmem:[%s5309_s10 + $0x1f0] sm:$0xff]  ;;  %s3940_s2 = sshll.u32 %s5657_s17, 7 }
  0xfa   : > { %802 = vst.msk [vmem:[#allocation2 + $0x178] sm:$0xff] %vm754_vm0, %v545_v14  ;;  %765 = vst.msk [vmem:[#allocation2 + $0x50] sm:$0xff] %vm754_vm0, %v508_v15  ;;  %v523_v17 = vld [vmem:[%s5309_s10 + $0xc8] sm:$0xff]  ;;  %v544_v18 = vld [vmem:[%s5309_s10 + $0x170] sm:$0xff] }
  0xfb   : > { %817 = vst.msk [vmem:[#allocation2 + $0x1f0] sm:$0xff] %vm754_vm0, %v560_v16  ;;  %v507_v19 = vld [vmem:[%s5309_s10 + $0x48] sm:$0xff]  ;;  %780 = vst.msk [vmem:[#allocation2 + $0xc8] sm:$0xff] %vm754_vm0, %v523_v17  ;;  %v522_v21 = vld [vmem:[%s5309_s10 + $0xc0] sm:$0xff]  ;;  %v1013_v16 = vlaneseq }
  0xfc   : > { %801 = vst.msk [vmem:[#allocation2 + $0x170] sm:$0xff] %vm754_vm0, %v544_v18  ;;  %764 = vst.msk [vmem:[#allocation2 + $0x48] sm:$0xff] %vm754_vm0, %v507_v19  ;;  %v559_v20 = vld [vmem:[%s5309_s10 + $0x1e8] sm:$0xff]  ;;  %v506_v23 = vld [vmem:[%s5309_s10 + $0x40] sm:$0xff] }
  0xfd   : > { %v543_v22 = vld [vmem:[%s5309_s10 + $0x168] sm:$0xff]  ;;  %816 = vst.msk [vmem:[#allocation2 + $0x1e8] sm:$0xff] %vm754_vm0, %v559_v20  ;;  %779 = vst.msk [vmem:[#allocation2 + $0xc0] sm:$0xff] %vm754_vm0, %v522_v21  ;;  %v558_v24 = vld [vmem:[%s5309_s10 + $0x1e0] sm:$0xff] }
  0xfe   : > { %800 = vst.msk [vmem:[#allocation2 + $0x168] sm:$0xff] %vm754_vm0, %v543_v22  ;;  %v521_v25 = vld [vmem:[%s5309_s10 + $0xb8] sm:$0xff]  ;;  %v1183_v28 = vld [vmem:[#allocation2 + $0xf0] sm:$0xff]  ;;  %763 = vst.msk [vmem:[#allocation2 + $0x40] sm:$0xff] %vm754_vm0, %v506_v23 }
  0xff   : > { %v1184_v26 = vld [vmem:[#allocation2 + $0xf8] sm:$0xff]  ;;  %815 = vst.msk [vmem:[#allocation2 + $0x1e0] sm:$0xff] %vm754_vm0, %v558_v24  ;;  %778 = vst.msk [vmem:[#allocation2 + $0xb8] sm:$0xff] %vm754_vm0, %v521_v25  ;;  %v1167_v29 = vld [vmem:[#allocation2 + $0x70] sm:$0xff] }
 0x100   : > { %v1168_v27 = vld [vmem:[#allocation2 + $0x78] sm:$0xff]  ;;  %4463 = vmatprep.subr.mxu0 %v1184_v26  ;;  %v1182_v30 = vld [vmem:[#allocation2 + $0xe8] sm:$0xff]  ;;  %v1181_v33 = vld [vmem:[#allocation2 + $0xe0] sm:$0xff] }
 0x101   : > { %4464 = vmatpush3.msra.mxu0 %v1168_v27  ;;  %v1166_v31 = vld [vmem:[#allocation2 + $0x68] sm:$0xff]  ;;  %v1517_v32 = vld [vmem:[#allocation2 + $0x1f8] sm:$0xff]  ;;  %v1165_v36 = vld [vmem:[#allocation2 + $0x60] sm:$0xff] }
 0x102   : > { %4465 = vmatprep.subr.mxu0 %v1183_v28  ;;  %4543 = vmatprep.subr.mxu1 %v1517_v32  ;;  %v1501_v34 = vld [vmem:[#allocation2 + $0x178] sm:$0xff]  ;;  %v1516_v35 = vld [vmem:[#allocation2 + $0x1f0] sm:$0xff]  ;;  %v1178_v45 = vld [vmem:[#allocation2 + $0xc8] sm:$0xff]  ;;  %v5675_v28 = vshrl.u32 %v1013_v16, 7 }
 0x103   : > { %4466 = vmatpush3.msra.mxu0 %v1167_v29  ;;  %v1180_v37 = vld [vmem:[#allocation2 + $0xd8] sm:$0xff]  ;;  %4544 = vmatpush3.msra.mxu1 %v1501_v34  ;;  %v1500_v38 = vld [vmem:[#allocation2 + $0x170] sm:$0xff]  ;;  %v542_v46 = vld [vmem:[%s5309_s10 + $0x160] sm:$0xff] }
 0x104   : > { %4467 = vmatprep.subr.mxu0 %v1182_v30  ;;  %v1164_v39 = vld [vmem:[#allocation2 + $0x58] sm:$0xff]  ;;  %4545 = vmatprep.subr.mxu1 %v1516_v35  ;;  %v1515_v40 = vld [vmem:[#allocation2 + $0x1e8] sm:$0xff]  ;;  %v1179_v42 = vld [vmem:[#allocation2 + $0xd0] sm:$0xff]  ;;  %799 = vst.msk [vmem:[#allocation2 + $0x160] sm:$0xff] %vm754_vm0, %v542_v46 }
 0x105   : > { %4468 = vmatpush3.msra.mxu0 %v1166_v31  ;;  %v1499_v41 = vld [vmem:[#allocation2 + $0x168] sm:$0xff]  ;;  %v1163_v43 = vld [vmem:[#allocation2 + $0x50] sm:$0xff]  ;;  %4546 = vmatpush3.msra.mxu1 %v1500_v38  ;;  %v505_v47 = vld [vmem:[%s5309_s10 + $0x38] sm:$0xff] }
 0x106   : > { %4469 = vmatprep.subr.mxu0 %v1181_v33  ;;  %v1514_v44 = vld [vmem:[#allocation2 + $0x1e0] sm:$0xff]  ;;  %4547 = vmatprep.subr.mxu1 %v1515_v40  ;;  %v557_v48 = vld [vmem:[%s5309_s10 + $0x1d8] sm:$0xff]  ;;  %v1162_v49 = vld [vmem:[#allocation2 + $0x48] sm:$0xff]  ;;  %762 = vst.msk [vmem:[#allocation2 + $0x38] sm:$0xff] %vm754_vm0, %v505_v47 }
 0x107   : > { %4470 = vmatpush3.msra.mxu0 %v1165_v36  ;;  %4548 = vmatpush3.msra.mxu1 %v1499_v41  ;;  %814 = vst.msk [vmem:[#allocation2 + $0x1d8] sm:$0xff] %vm754_vm0, %v557_v48  ;;  %v520_v50 = vld [vmem:[%s5309_s10 + $0xb0] sm:$0xff]  ;;  %v541_v51 = vld [vmem:[%s5309_s10 + $0x158] sm:$0xff]  ;;  %v1177_v53 = vld [vmem:[#allocation2 + $0xc0] sm:$0xff] }
 0x108   : > { %4471 = vmatprep.subr.mxu0 %v1180_v37  ;;  %v504_v52 = vld [vmem:[%s5309_s10 + $0x30] sm:$0xff]  ;;  %4549 = vmatprep.subr.mxu1 %v1514_v44  ;;  %777 = vst.msk [vmem:[#allocation2 + $0xb0] sm:$0xff] %vm754_vm0, %v520_v50  ;;  %798 = vst.msk [vmem:[#allocation2 + $0x158] sm:$0xff] %vm754_vm0, %v541_v51  ;;  %v519_v55 = vld [vmem:[%s5309_s10 + $0xa8] sm:$0xff]  ;;  %v5692_v44 = vsub.s32 0, %v5675_v28 }
 0x109   : > { %4472 = vmatpush3.msra.mxu0 %v1164_v39  ;;  %761 = vst.msk [vmem:[#allocation2 + $0x30] sm:$0xff] %vm754_vm0, %v504_v52  ;;  %v556_v54 = vld [vmem:[%s5309_s10 + $0x1d0] sm:$0xff]  ;;  %v1161_v57 = vld [vmem:[#allocation2 + $0x40] sm:$0xff]  ;;  %776 = vst.msk [vmem:[#allocation2 + $0xa8] sm:$0xff] %vm754_vm0, %v519_v55  ;;  %v5680_v39 = vstv %s3940_s2 }
 0x10a   : > { %v540_v56 = vld [vmem:[%s5309_s10 + $0x150] sm:$0xff]  ;;  %4473 = vmatprep.subr.mxu0 %v1179_v42  ;;  %813 = vst.msk [vmem:[#allocation2 + $0x1d0] sm:$0xff] %vm754_vm0, %v556_v54  ;;  %v503_v58 = vld [vmem:[%s5309_s10 + $0x28] sm:$0xff]  ;;  %v518_v60 = vld [vmem:[%s5309_s10 + $0xa0] sm:$0xff] }
 0x10b   : > { %797 = vst.msk [vmem:[#allocation2 + $0x150] sm:$0xff] %vm754_vm0, %v540_v56  ;;  %v555_v59 = vld [vmem:[%s5309_s10 + $0x1c8] sm:$0xff]  ;;  %4474 = vmatpush3.msra.mxu0 %v1163_v43  ;;  %v1176_v61 = vld [vmem:[#allocation2 + $0xb8] sm:$0xff]  ;;  %760 = vst.msk [vmem:[#allocation2 + $0x28] sm:$0xff] %vm754_vm0, %v503_v58  ;;  %v5689_v43 = vsub.s32 1, %v5675_v28 }
 0x10c   : > { %812 = vst.msk [vmem:[#allocation2 + $0x1c8] sm:$0xff] %vm754_vm0, %v555_v59  ;;  %775 = vst.msk [vmem:[#allocation2 + $0xa0] sm:$0xff] %vm754_vm0, %v518_v60  ;;  %v539_v62 = vld [vmem:[%s5309_s10 + $0x148] sm:$0xff]  ;;  %v502_v63 = vld [vmem:[%s5309_s10 + $0x20] sm:$0xff]  ;;  %4475 = vmatprep.subr.mxu0 %v1178_v45 }
 0x10d   : > { %v554_v0 = vld [vmem:[%s5309_s10 + $0x1c0] sm:$0xff]  ;;  %796 = vst.msk [vmem:[#allocation2 + $0x148] sm:$0xff] %vm754_vm0, %v539_v62  ;;  %759 = vst.msk [vmem:[#allocation2 + $0x20] sm:$0xff] %vm754_vm0, %v502_v63  ;;  %v517_v1 = vld [vmem:[%s5309_s10 + $0x98] sm:$0xff]  ;;  %4476 = vmatpush3.msra.mxu0 %v1162_v49 }
 0x10e   : > { %811 = vst.msk [vmem:[#allocation2 + $0x1c0] sm:$0xff] %vm754_vm0, %v554_v0  ;;  %v538_v2 = vld [vmem:[%s5309_s10 + $0x140] sm:$0xff]  ;;  %v501_v3 = vld [vmem:[%s5309_s10 + $0x18] sm:$0xff]  ;;  %774 = vst.msk [vmem:[#allocation2 + $0x98] sm:$0xff] %vm754_vm0, %v517_v1  ;;  %4477 = vmatprep.subr.mxu0 %v1177_v53 }
 0x10f   : > { %795 = vst.msk [vmem:[#allocation2 + $0x140] sm:$0xff] %vm754_vm0, %v538_v2  ;;  %758 = vst.msk [vmem:[#allocation2 + $0x18] sm:$0xff] %vm754_vm0, %v501_v3  ;;  %v553_v4 = vld [vmem:[%s5309_s10 + $0x1b8] sm:$0xff]  ;;  %v516_v5 = vld [vmem:[%s5309_s10 + $0x90] sm:$0xff]  ;;  %4478 = vmatpush3.msra.mxu0 %v1161_v57 }
 0x110   : > { %v537_v6 = vld [vmem:[%s5309_s10 + $0x138] sm:$0xff]  ;;  %810 = vst.msk [vmem:[#allocation2 + $0x1b8] sm:$0xff] %vm754_vm0, %v553_v4  ;;  %773 = vst.msk [vmem:[#allocation2 + $0x90] sm:$0xff] %vm754_vm0, %v516_v5  ;;  %v500_v7 = vld [vmem:[%s5309_s10 + $0x10] sm:$0xff]  ;;  %4479 = vmatprep.subr.mxu0 %v1176_v61  ;;  %v5231_v5 = vmov 1.0  }
 0x111   : > { %794 = vst.msk [vmem:[#allocation2 + $0x138] sm:$0xff] %vm754_vm0, %v537_v6  ;;  %v552_v8 = vld [vmem:[%s5309_s10 + $0x1b0] sm:$0xff]  ;;  %v515_v9 = vld [vmem:[%s5309_s10 + $0x88] sm:$0xff]  ;;  %v1498_v10 = vld [vmem:[#allocation2 + $0x160] sm:$0xff]  ;;  %v5740_v6 = vadd.s32 8, %v5675_v28 }
 0x112   : > { %v1160_v11 = vld [vmem:[#allocation2 + $0x38] sm:$0xff]  ;;  %757 = vst.msk [vmem:[#allocation2 + $0x10] sm:$0xff] %vm754_vm0, %v500_v7  ;;  %809 = vst.msk [vmem:[#allocation2 + $0x1b0] sm:$0xff] %vm754_vm0, %v552_v8  ;;  %4550 = vmatpush3.msra.mxu1 %v1498_v10  ;;  %v1175_v13 = vld [vmem:[#allocation2 + $0xb0] sm:$0xff] }
 0x113   : > { %v1513_v12 = vld [vmem:[#allocation2 + $0x1d8] sm:$0xff]  ;;  %772 = vst.msk [vmem:[#allocation2 + $0x88] sm:$0xff] %vm754_vm0, %v515_v9  ;;  %v1159_v15 = vld [vmem:[#allocation2 + $0x30] sm:$0xff]  ;;  %4480 = vmatpush3.msra.mxu0 %v1160_v11  ;;  %v1174_v18 = vld [vmem:[#allocation2 + $0xa8] sm:$0xff] }
 0x114   : > { %v1497_v14 = vld [vmem:[#allocation2 + $0x158] sm:$0xff]  ;;  %4551 = vmatprep.subr.mxu1 %v1513_v12  ;;  %v1512_v17 = vld [vmem:[#allocation2 + $0x1d0] sm:$0xff]  ;;  %4481 = vmatprep.subr.mxu0 %v1175_v13  ;;  %v1158_v20 = vld [vmem:[#allocation2 + $0x28] sm:$0xff] }
 0x115   : > { %v1496_v19 = vld [vmem:[#allocation2 + $0x150] sm:$0xff]  ;;  %4552 = vmatpush3.msra.mxu1 %v1497_v14  ;;  %v1511_v21 = vld [vmem:[#allocation2 + $0x1c8] sm:$0xff]  ;;  %4482 = vmatpush3.msra.mxu0 %v1159_v15  ;;  %v1173_v22 = vld [vmem:[#allocation2 + $0xa0] sm:$0xff] }
 0x116   : > { %4553 = vmatprep.subr.mxu1 %v1512_v17  ;;  %v1495_v23 = vld [vmem:[#allocation2 + $0x148] sm:$0xff]  ;;  %v1157_v24 = vld [vmem:[#allocation2 + $0x20] sm:$0xff]  ;;  %4483 = vmatprep.subr.mxu0 %v1174_v18  ;;  %v1172_v26 = vld [vmem:[#allocation2 + $0x98] sm:$0xff]  ;;  %v5753_v18 = vadd.s32 16, %v5675_v28 }
 0x117   : > { %4554 = vmatpush3.msra.mxu1 %v1496_v19  ;;  %v1510_v25 = vld [vmem:[#allocation2 + $0x1c0] sm:$0xff]  ;;  %4484 = vmatpush3.msra.mxu0 %v1158_v20  ;;  %v1156_v29 = vld [vmem:[#allocation2 + $0x18] sm:$0xff]  ;;  %v1171_v31 = vld [vmem:[#allocation2 + $0x90] sm:$0xff] }
 0x118   : > { %v1494_v27 = vld [vmem:[#allocation2 + $0x140] sm:$0xff]  ;;  %4555 = vmatprep.subr.mxu1 %v1511_v21  ;;  %v1509_v30 = vld [vmem:[#allocation2 + $0x1b8] sm:$0xff]  ;;  %4485 = vmatprep.subr.mxu0 %v1173_v22  ;;  %v536_v36 = vld [vmem:[%s5309_s10 + $0x130] sm:$0xff] }
 0x119   : > { %4556 = vmatpush3.msra.mxu1 %v1495_v23  ;;  %v1493_v32 = vld [vmem:[#allocation2 + $0x138] sm:$0xff]  ;;  %v1155_v33 = vld [vmem:[#allocation2 + $0x10] sm:$0xff]  ;;  %4486 = vmatpush3.msra.mxu0 %v1157_v24  ;;  %v499_v37 = vld [vmem:[%s5309_s10 + $0x8] sm:$0xff]  ;;  %793 = vst.msk [vmem:[#allocation2 + $0x130] sm:$0xff] %vm754_vm0, %v536_v36 }
 0x11a   : > { %v1508_v34 = vld [vmem:[#allocation2 + $0x1b0] sm:$0xff]  ;;  %4557 = vmatprep.subr.mxu1 %v1510_v25  ;;  %v1170_v35 = vld [vmem:[#allocation2 + $0x88] sm:$0xff]  ;;  %4487 = vmatprep.subr.mxu0 %v1172_v26  ;;  %756 = vst.msk [vmem:[#allocation2 + $0x8] sm:$0xff] %vm754_vm0, %v499_v37  ;;  %v514_v40 = vld [vmem:[%s5309_s10 + $0x80] sm:$0xff] }
 0x11b   : > { %v551_v38 = vld [vmem:[%s5309_s10 + $0x1a8] sm:$0xff]  ;;  %4558 = vmatpush3.msra.mxu1 %v1494_v27  ;;  %v498_v42 = vld [vmem:[%s5309_s10] sm:$0xff]  ;;  %4488 = vmatpush3.msra.mxu0 %v1156_v29  ;;  %771 = vst.msk [vmem:[#allocation2 + $0x80] sm:$0xff] %vm754_vm0, %v514_v40  ;;  %v593_v49 = vld [vmem:[%s5309_s10 + $0x2f8] sm:$0xff] }
 0x11c   : > { %808 = vst.msk [vmem:[#allocation2 + $0x1a8] sm:$0xff] %vm754_vm0, %v551_v38  ;;  %v535_v41 = vld [vmem:[%s5309_s10 + $0x128] sm:$0xff]  ;;  %4559 = vmatprep.subr.mxu1 %v1509_v30  ;;  %755 = vst.msk [vmem:[#allocation2] sm:$0xff] %vm754_vm0, %v498_v42  ;;  %v1030_v45 = vld [vmem:[%s5304_s8] sm:$0x3]  ;;  %4489 = vmatprep.subr.mxu0 %v1171_v31 }
 0x11d   : > { %792 = vst.msk [vmem:[#allocation2 + $0x128] sm:$0xff] %vm754_vm0, %v535_v41  ;;  %v550_v46 = vld [vmem:[%s5309_s10 + $0x1a0] sm:$0xff]  ;;  %4560 = vmatpush3.msra.mxu1 %v1493_v32  ;;  %v1032_v48 = vsub.s32 %v1030_v45, %v5680_v39  ;;  %v549_v50 = vld [vmem:[%s5309_s10 + $0x198] sm:$0xff]  ;;  %4490 = vmatpush3.msra.mxu0 %v1155_v33  ;;  %850 = vst.msk [vmem:[#allocation2 + $0x2f8] sm:$0xff] %vm754_vm0, %v593_v49 }
 0x11e   : > { %v534_v47 = vld [vmem:[%s5309_s10 + $0x120] sm:$0xff]  ;;  %807 = vst.msk [vmem:[#allocation2 + $0x1a0] sm:$0xff] %vm754_vm0, %v550_v46  ;;  %v577_v51 = vld [vmem:[%s5309_s10 + $0x278] sm:$0xff]  ;;  %4561 = vmatprep.subr.mxu1 %v1508_v34  ;;  %806 = vst.msk [vmem:[#allocation2 + $0x198] sm:$0xff] %vm754_vm0, %v549_v50  ;;  %4491 = vmatprep.subr.mxu0 %v1170_v35  ;;  %v5775_v35 = vadd.s32 24, %v5675_v28 }
 0x11f   : > { %791 = vst.msk [vmem:[#allocation2 + $0x120] sm:$0xff] %vm754_vm0, %v534_v47  ;;  %834 = vst.msk [vmem:[#allocation2 + $0x278] sm:$0xff] %vm754_vm0, %v577_v51  ;;  %v533_v52 = vld [vmem:[%s5309_s10 + $0x118] sm:$0xff]  ;;  %v548_v53 = vld [vmem:[%s5309_s10 + $0x190] sm:$0xff]  ;;  %v5713_v55 = vrot.slane %v1032_v48, %v5689_v43  ;;  %v5716_v56 = vrot.slane %v1032_v48, %v5692_v44 }
 0x120   : > { %v532_v54 = vld [vmem:[%s5309_s10 + $0x110] sm:$0xff]  ;;  %790 = vst.msk [vmem:[#allocation2 + $0x118] sm:$0xff] %vm754_vm0, %v533_v52  ;;  %805 = vst.msk [vmem:[#allocation2 + $0x190] sm:$0xff] %vm754_vm0, %v548_v53  ;;  %v547_v58 = vld [vmem:[%s5309_s10 + $0x188] sm:$0xff]  ;;  %v5818_v52 = vadd.s32 32, %v5675_v28 }
 0x121   : > { %789 = vst.msk [vmem:[#allocation2 + $0x110] sm:$0xff] %vm754_vm0, %v532_v54  ;;  %v592_v57 = vld [vmem:[%s5309_s10 + $0x2f0] sm:$0xff]  ;;  %804 = vst.msk [vmem:[#allocation2 + $0x188] sm:$0xff] %vm754_vm0, %v547_v58  ;;  %v531_v60 = vld [vmem:[%s5309_s10 + $0x108] sm:$0xff]  ;;  %vm1042_vm1 = vcmp.eq.s32.totalorder %v5713_v55, %v5675_v28  ;;  %vm1041_vm2 = vcmp.eq.s32.totalorder %v5716_v56, %v5675_v28  ;;  %vm1044_vm3 = vcmp.eq.s32.totalorder %v5713_v55, %v5740_v6 }
 0x122   : > { %v576_v59 = vld [vmem:[%s5309_s10 + $0x270] sm:$0xff]  ;;  %849 = vst.msk [vmem:[#allocation2 + $0x2f0] sm:$0xff] %vm754_vm0, %v592_v57  ;;  %v546_v61 = vld [vmem:[%s5309_s10 + $0x180] sm:$0xff]  ;;  %788 = vst.msk [vmem:[#allocation2 + $0x108] sm:$0xff] %vm754_vm0, %v531_v60  ;;  %3973 = vmatprep.mubr.msk.f32.mxu0 %vm1042_vm1, %v5231_v5  ;;  %vm1043_vm4 = vcmp.eq.s32.totalorder %v5716_v56, %v5740_v6  ;;  %vm1046_vm5 = vcmp.eq.s32.totalorder %v5713_v55, %v5753_v18  ;;  %vm1045_vm6 = vcmp.eq.s32.totalorder %v5716_v56, %v5753_v18 }
 0x123   : > { %833 = vst.msk [vmem:[#allocation2 + $0x270] sm:$0xff] %vm754_vm0, %v576_v59  ;;  %v530_v62 = vld [vmem:[%s5309_s10 + $0x100] sm:$0xff]  ;;  %803 = vst.msk [vmem:[#allocation2 + $0x180] sm:$0xff] %vm754_vm0, %v546_v61  ;;  %v591_v0 = vld [vmem:[%s5309_s10 + $0x2e8] sm:$0xff]  ;;  %vm1048_vm9 = vcmp.eq.s32.totalorder %v5713_v55, %v5775_v35  ;;  %vm1047_vm10 = vcmp.eq.s32.totalorder %v5716_v56, %v5775_v35  ;;  %vm1050_vm13 = vcmp.eq.s32.totalorder %v5713_v55, %v5818_v52 }
 0x124   : > { %787 = vst.msk [vmem:[#allocation2 + $0x100] sm:$0xff] %vm754_vm0, %v530_v62  ;;  %v4005_v63 = vld [vmem:[%s5304_s8 + $0x2] sm:$0x3]  ;;  %v575_v1 = vld [vmem:[%s5309_s10 + $0x268] sm:$0xff]  ;;  %v1492_v2 = vld [vmem:[#allocation2 + $0x130] sm:$0xff]  ;;  %vm1049_vm14 = vcmp.eq.s32.totalorder %v5716_v56, %v5818_v52 }
 0x125   : > { %v1154_v3 = vld [vmem:[#allocation2 + $0x8] sm:$0xff]  ;;  %848 = vst.msk [vmem:[#allocation2 + $0x2e8] sm:$0xff] %vm754_vm0, %v591_v0  ;;  %832 = vst.msk [vmem:[#allocation2 + $0x268] sm:$0xff] %vm754_vm0, %v575_v1  ;;  %4562 = vmatpush3.msra.mxu1 %v1492_v2  ;;  %v1169_v7 = vld [vmem:[#allocation2 + $0x80] sm:$0xff]  ;;  %v1364_v12 = vsub.s32 %v4005_v63, %v5680_v39 }
 0x126   : > { %v1507_v4 = vld [vmem:[#allocation2 + $0x1a8] sm:$0xff]  ;;  %4492 = vmatpush3.msra.mxu0 %v1154_v3  ;;  %v1153_v9 = vld [vmem:[#allocation2] sm:$0xff]  ;;  %v625_v13 = vld [vmem:[%s5309_s10 + $0x3f8] sm:$0xff] }
 0x127   : > { %v1491_v8 = vld [vmem:[#allocation2 + $0x128] sm:$0xff]  ;;  %4563 = vmatprep.subr.mxu1 %v1507_v4  ;;  %4493 = vmatprep.subr.mxu0 %v1169_v7  ;;  %v1506_v10 = vld [vmem:[#allocation2 + $0x1a0] sm:$0xff]  ;;  %v1850_v14 = vld [vmem:[#allocation2 + $0x2f8] sm:$0xff]  ;;  %882 = vst.msk [vmem:[#allocation2 + $0x3f8] sm:$0xff] %vm754_vm0, %v625_v13  ;;  %v5758_v24 = vrot.slane %v1364_v12, %v5689_v43  ;;  %v5762_v27 = vrot.slane %v1364_v12, %v5692_v44  ;;  %v5864_v4 = vadd.s32 40, %v5675_v28  ;;  %v5884_v12 = vadd.s32 48, %v5675_v28 }
 0x128   : > { %v1490_v11 = vld [vmem:[#allocation2 + $0x120] sm:$0xff]  ;;  %4564 = vmatpush3.msra.mxu1 %v1491_v8  ;;  %4494 = vmatpush3.msra.mxu0 %v1153_v9  ;;  %v1505_v15 = vld [vmem:[#allocation2 + $0x198] sm:$0xff]  ;;  %v1504_v19 = vld [vmem:[#allocation2 + $0x190] sm:$0xff] }
 0x129   : > { %v1834_v16 = vld [vmem:[#allocation2 + $0x278] sm:$0xff]  ;;  %4565 = vmatprep.subr.mxu1 %v1506_v10  ;;  %3974 = vmatmul.mubr.msk.f32.vlgmr.msra.gmra.mxu0 %vm1041_vm2, %v5231_v5  ;;  %v1488_v20 = vld [vmem:[#allocation2 + $0x110] sm:$0xff]  ;;  %v1503_v22 = vld [vmem:[#allocation2 + $0x188] sm:$0xff]  ;;  %vm1374_vm7 = vcmp.eq.s32.totalorder %v5758_v24, %v5675_v28  ;;  %vm1373_vm8 = vcmp.eq.s32.totalorder %v5762_v27, %v5675_v28  ;;  %vm1376_vm11 = vcmp.eq.s32.totalorder %v5758_v24, %v5740_v6 }
 0x12a   : > { %v1489_v17 = vld [vmem:[#allocation2 + $0x118] sm:$0xff]  ;;  %4566 = vmatpush3.msra.mxu1 %v1490_v11  ;;  %4623 = vmatprep.subr.mxu0 %v1850_v14  ;;  %v1849_v21 = vld [vmem:[#allocation2 + $0x2f0] sm:$0xff]  ;;  %v1487_v25 = vld [vmem:[#allocation2 + $0x108] sm:$0xff]  ;;  %vm1375_vm12 = vcmp.eq.s32.totalorder %v5762_v27, %v5740_v6  ;;  %vm1378_vm15 = vcmp.eq.s32.totalorder %v5758_v24, %v5753_v18  ;;  %vm1377_vm1 = vcmp.eq.s32.totalorder %v5762_v27, %v5753_v18 }
 0x12b   : > { %4567 = vmatprep.subr.mxu1 %v1505_v15  ;;  %4624 = vmatpush3.msra.mxu0 %v1834_v16  ;;  %v1833_v23 = vld [vmem:[#allocation2 + $0x270] sm:$0xff]  ;;  %v1502_v26 = vld [vmem:[#allocation2 + $0x180] sm:$0xff]  ;;  %v609_v29 = vld [vmem:[%s5309_s10 + $0x378] sm:$0xff]  ;;  %vm1052_vm2 = vcmp.eq.s32.totalorder %v5713_v55, %v5864_v4 }
 0x12c   : > { %4568 = vmatpush3.msra.mxu1 %v1489_v17  ;;  %3975 = vmatprep.mubr.msk.f32.mxu0 %vm1044_vm3, %v5231_v5  ;;  %v1486_v30 = vld [vmem:[#allocation2 + $0x100] sm:$0xff]  ;;  %866 = vst.msk [vmem:[#allocation2 + $0x378] sm:$0xff] %vm754_vm0, %v609_v29  ;;  %v624_v33 = vld [vmem:[%s5309_s10 + $0x3f0] sm:$0xff]  ;;  %v1848_v34 = vld [vmem:[#allocation2 + $0x2e8] sm:$0xff]  ;;  %vm1051_vm3 = vcmp.eq.s32.totalorder %v5716_v56, %v5864_v4 }
 0x12d   : > { %4569 = vmatprep.subr.mxu1 %v1504_v19  ;;  %3976 = vmatmul.mubr.msk.f32.gmra.mxu0 %vm1043_vm4, %v5231_v5  ;;  %v590_v31 = vld [vmem:[%s5309_s10 + $0x2e0] sm:$0xff]  ;;  %881 = vst.msk [vmem:[#allocation2 + $0x3f0] sm:$0xff] %vm754_vm0, %v624_v33  ;;  %v608_v36 = vld [vmem:[%s5309_s10 + $0x370] sm:$0xff]  ;;  %v589_v37 = vld [vmem:[%s5309_s10 + $0x2d8] sm:$0xff]  ;;  %vm1380_vm4 = vcmp.eq.s32.totalorder %v5758_v24, %v5775_v35 }
 0x12e   : > { %v574_v32 = vld [vmem:[%s5309_s10 + $0x260] sm:$0xff]  ;;  %4570 = vmatpush3.msra.mxu1 %v1488_v20  ;;  %4625 = vmatprep.subr.mxu0 %v1849_v21  ;;  %847 = vst.msk [vmem:[#allocation2 + $0x2e0] sm:$0xff] %vm754_vm0, %v590_v31  ;;  %v573_v38 = vld [vmem:[%s5309_s10 + $0x258] sm:$0xff]  ;;  %v1832_v40 = vld [vmem:[#allocation2 + $0x268] sm:$0xff] }
 0x12f   : > { %831 = vst.msk [vmem:[#allocation2 + $0x260] sm:$0xff] %vm754_vm0, %v574_v32  ;;  %4571 = vmatprep.subr.mxu1 %v1503_v22  ;;  %4626 = vmatpush3.msra.mxu0 %v1833_v23  ;;  %v2183_v41 = vld [vmem:[#allocation2 + $0x3f8] sm:$0xff]  ;;  %865 = vst.msk [vmem:[#allocation2 + $0x370] sm:$0xff] %vm754_vm0, %v608_v36  ;;  %v623_v42 = vld [vmem:[%s5309_s10 + $0x3e8] sm:$0xff]  ;;  %v5910_v23 = vadd.s32 56, %v5675_v28 }
 0x130   : > { %846 = vst.msk [vmem:[#allocation2 + $0x2d8] sm:$0xff] %vm754_vm0, %v589_v37  ;;  %830 = vst.msk [vmem:[#allocation2 + $0x258] sm:$0xff] %vm754_vm0, %v573_v38  ;;  %v607_v45 = vld [vmem:[%s5309_s10 + $0x368] sm:$0xff]  ;;  %4572 = vmatpush3.msra.mxu1 %v1487_v25  ;;  %3977 = vmatprep.mubr.msk.f32.mxu0 %vm1046_vm5, %v5231_v5  ;;  %v588_v46 = vld [vmem:[%s5309_s10 + $0x2d0] sm:$0xff]  ;;  %vm1379_vm5 = vcmp.eq.s32.totalorder %v5762_v27, %v5775_v35 }
 0x131   : > { %880 = vst.msk [vmem:[#allocation2 + $0x3e8] sm:$0xff] %vm754_vm0, %v623_v42  ;;  %864 = vst.msk [vmem:[#allocation2 + $0x368] sm:$0xff] %vm754_vm0, %v607_v45  ;;  %v572_v47 = vld [vmem:[%s5309_s10 + $0x250] sm:$0xff]  ;;  %v622_v48 = vld [vmem:[%s5309_s10 + $0x3e0] sm:$0xff]  ;;  %4573 = vmatprep.subr.mxu1 %v1502_v26  ;;  %3978 = vmatmul.mubr.msk.f32.gmra.mxu0 %vm1045_vm6, %v5231_v5  ;;  %vm1054_vm6 = vcmp.eq.s32.totalorder %v5713_v55, %v5884_v12  ;;  %v5959_v45 = vadd.s32 64, %v5675_v28 }
 0x132   : > { %845 = vst.msk [vmem:[#allocation2 + $0x2d0] sm:$0xff] %vm754_vm0, %v588_v46  ;;  %829 = vst.msk [vmem:[#allocation2 + $0x250] sm:$0xff] %vm754_vm0, %v572_v47  ;;  %v606_v49 = vld [vmem:[%s5309_s10 + $0x360] sm:$0xff]  ;;  %v587_v50 = vld [vmem:[%s5309_s10 + $0x2c8] sm:$0xff]  ;;  %4574 = vmatpush3.msra.mxu1 %v1486_v30  ;;  %4038 = vmatprep.mubr.msk.f32.mxu1 %vm1374_vm7, %v5231_v5  ;;  %vm1053_vm7 = vcmp.eq.s32.totalorder %v5716_v56, %v5884_v12 }
 0x133   : > { %879 = vst.msk [vmem:[#allocation2 + $0x3e0] sm:$0xff] %vm754_vm0, %v622_v48  ;;  %v571_v51 = vld [vmem:[%s5309_s10 + $0x248] sm:$0xff]  ;;  %863 = vst.msk [vmem:[#allocation2 + $0x360] sm:$0xff] %vm754_vm0, %v606_v49  ;;  %v621_v53 = vld [vmem:[%s5309_s10 + $0x3d8] sm:$0xff]  ;;  %4627 = vmatprep.subr.mxu0 %v1848_v34  ;;  %4039 = vmatmul.mubr.msk.f32.vlgmr.msra.gmra.mxu1 %vm1373_vm8, %v5231_v5  ;;  %vm1382_vm8 = vcmp.eq.s32.totalorder %v5758_v24, %v5818_v52 }
 0x134   : > { %844 = vst.msk [vmem:[#allocation2 + $0x2c8] sm:$0xff] %vm754_vm0, %v587_v50  ;;  %828 = vst.msk [vmem:[#allocation2 + $0x248] sm:$0xff] %vm754_vm0, %v571_v51  ;;  %v605_v54 = vld [vmem:[%s5309_s10 + $0x358] sm:$0xff]  ;;  %v586_v57 = vld [vmem:[%s5309_s10 + $0x2c0] sm:$0xff]  ;;  %4628 = vmatpush3.msra.mxu0 %v1832_v40  ;;  %4703 = vmatprep.subr.mxu1 %v2183_v41 }
 0x135   : > { %878 = vst.msk [vmem:[#allocation2 + $0x3d8] sm:$0xff] %vm754_vm0, %v621_v53  ;;  %862 = vst.msk [vmem:[#allocation2 + $0x358] sm:$0xff] %vm754_vm0, %v605_v54  ;;  %v570_v58 = vld [vmem:[%s5309_s10 + $0x240] sm:$0xff]  ;;  %v620_v59 = vld [vmem:[%s5309_s10 + $0x3d0] sm:$0xff]  ;;  %3979 = vmatprep.mubr.msk.f32.mxu0 %vm1048_vm9, %v5231_v5  ;;  %4040 = vmatprep.mubr.msk.f32.mxu1 %vm1376_vm11, %v5231_v5  ;;  %vm1381_vm9 = vcmp.eq.s32.totalorder %v5762_v27, %v5818_v52  ;;  %vm1055_vm11 = vcmp.eq.s32.totalorder %v5716_v56, %v5910_v23 }
 0x136   : > { %843 = vst.msk [vmem:[#allocation2 + $0x2c0] sm:$0xff] %vm754_vm0, %v586_v57  ;;  %v604_v60 = vld [vmem:[%s5309_s10 + $0x350] sm:$0xff]  ;;  %v2167_v61 = vld [vmem:[#allocation2 + $0x378] sm:$0xff]  ;;  %827 = vst.msk [vmem:[#allocation2 + $0x240] sm:$0xff] %vm754_vm0, %v570_v58  ;;  %3980 = vmatmul.mubr.msk.f32.gmra.mxu0 %vm1047_vm10, %v5231_v5  ;;  %vm1056_vm10 = vcmp.eq.s32.totalorder %v5713_v55, %v5910_v23 }
 0x137   : > { %877 = vst.msk [vmem:[#allocation2 + $0x3d0] sm:$0xff] %vm754_vm0, %v620_v59  ;;  %861 = vst.msk [vmem:[#allocation2 + $0x350] sm:$0xff] %vm754_vm0, %v604_v60  ;;  %v585_v62 = vld [vmem:[%s5309_s10 + $0x2b8] sm:$0xff]  ;;  %4704 = vmatpush3.msra.mxu1 %v2167_v61  ;;  %v1847_v0 = vld [vmem:[#allocation2 + $0x2e0] sm:$0xff]  ;;  %3981 = vmatprep.mubr.msk.f32.mxu0 %vm1050_vm13, %v5231_v5  ;;  %vm1383_vm13 = vcmp.eq.s32.totalorder %v5762_v27, %v5864_v4  ;;  %v6005_v61 = vadd.s32 72, %v5675_v28 }
 0x138   : > { %v569_v63 = vld [vmem:[%s5309_s10 + $0x238] sm:$0xff]  ;;  %v1831_v1 = vld [vmem:[#allocation2 + $0x260] sm:$0xff]  ;;  %v2182_v2 = vld [vmem:[#allocation2 + $0x3f0] sm:$0xff]  ;;  %842 = vst.msk [vmem:[#allocation2 + $0x2b8] sm:$0xff] %vm754_vm0, %v585_v62  ;;  %4629 = vmatprep.subr.mxu0 %v1847_v0  ;;  %4041 = vmatmul.mubr.msk.f32.gmra.mxu1 %vm1375_vm12, %v5231_v5  ;;  %vm1384_vm12 = vcmp.eq.s32.totalorder %v5758_v24, %v5864_v4 }
 0x139   : > { %826 = vst.msk [vmem:[#allocation2 + $0x238] sm:$0xff] %vm754_vm0, %v569_v63  ;;  %v2166_v3 = vld [vmem:[#allocation2 + $0x370] sm:$0xff]  ;;  %v619_v7 = vld [vmem:[%s5309_s10 + $0x3c8] sm:$0xff]  ;;  %4630 = vmatpush3.msra.mxu0 %v1831_v1  ;;  %4705 = vmatprep.subr.mxu1 %v2182_v2  ;;  %v1846_v8 = vld [vmem:[#allocation2 + $0x2d8] sm:$0xff] }
 0x13a   : > { %876 = vst.msk [vmem:[#allocation2 + $0x3c8] sm:$0xff] %vm754_vm0, %v619_v7  ;;  %4706 = vmatpush3.msra.mxu1 %v2166_v3  ;;  %v1830_v9 = vld [vmem:[#allocation2 + $0x258] sm:$0xff]  ;;  %v2181_v10 = vld [vmem:[#allocation2 + $0x3e8] sm:$0xff]  ;;  %3982 = vmatmul.mubr.msk.f32.gmra.mxu0 %vm1049_vm14, %v5231_v5  ;;  %v1845_v13 = vld [vmem:[#allocation2 + $0x2d0] sm:$0xff]  ;;  %vm1058_vm14 = vcmp.eq.s32.totalorder %v5713_v55, %v5959_v45  ;;  %v6025_v3 = vadd.s32 80, %v5675_v28 }
 0x13b   : > { %4042 = vmatprep.mubr.msk.f32.mxu1 %vm1378_vm15, %v5231_v5  ;;  %v2165_v11 = vld [vmem:[#allocation2 + $0x368] sm:$0xff]  ;;  %4631 = vmatprep.subr.mxu0 %v1846_v8  ;;  %v1829_v14 = vld [vmem:[#allocation2 + $0x250] sm:$0xff]  ;;  %v2180_v15 = vld [vmem:[#allocation2 + $0x3e0] sm:$0xff]  ;;  %vm1057_vm15 = vcmp.eq.s32.totalorder %v5716_v56, %v5959_v45 }
 0x13c   : > { %4043 = vmatmul.mubr.msk.f32.gmra.mxu1 %vm1377_vm1, %v5231_v5  ;;  %4632 = vmatpush3.msra.mxu0 %v1830_v9  ;;  %v2164_v16 = vld [vmem:[#allocation2 + $0x360] sm:$0xff]  ;;  %v603_v17 = vld [vmem:[%s5309_s10 + $0x348] sm:$0xff]  ;;  %v584_v19 = vld [vmem:[%s5309_s10 + $0x2b0] sm:$0xff]  ;;  %vm1386_vm1 = vcmp.eq.s32.totalorder %v5758_v24, %v5884_v12 }
 0x13d   : > { %4707 = vmatprep.subr.mxu1 %v2181_v10  ;;  %3983 = vmatprep.mubr.msk.f32.mxu0 %vm1052_vm2, %v5231_v5  ;;  %860 = vst.msk [vmem:[#allocation2 + $0x348] sm:$0xff] %vm754_vm0, %v603_v17  ;;  %v568_v20 = vld [vmem:[%s5309_s10 + $0x230] sm:$0xff]  ;;  %v618_v21 = vld [vmem:[%s5309_s10 + $0x3c0] sm:$0xff]  ;;  %v1844_v22 = vld [vmem:[#allocation2 + $0x2c8] sm:$0xff]  ;;  %vm1385_vm2 = vcmp.eq.s32.totalorder %v5762_v27, %v5884_v12  ;;  %v6051_v17 = vadd.s32 88, %v5675_v28 }
 0x13e   : > { %4708 = vmatpush3.msra.mxu1 %v2165_v11  ;;  %3984 = vmatmul.mubr.msk.f32.gmra.mxu0 %vm1051_vm3, %v5231_v5  ;;  %841 = vst.msk [vmem:[#allocation2 + $0x2b0] sm:$0xff] %vm754_vm0, %v584_v19  ;;  %825 = vst.msk [vmem:[#allocation2 + $0x230] sm:$0xff] %vm754_vm0, %v568_v20  ;;  %v602_v25 = vld [vmem:[%s5309_s10 + $0x340] sm:$0xff]  ;;  %v583_v26 = vld [vmem:[%s5309_s10 + $0x2a8] sm:$0xff]  ;;  %vm1060_vm3 = vcmp.eq.s32.totalorder %v5713_v55, %v6005_v61 }
 0x13f   : > { %4044 = vmatprep.mubr.msk.f32.mxu1 %vm1380_vm4, %v5231_v5  ;;  %875 = vst.msk [vmem:[#allocation2 + $0x3c0] sm:$0xff] %vm754_vm0, %v618_v21  ;;  %v567_v29 = vld [vmem:[%s5309_s10 + $0x228] sm:$0xff]  ;;  %4633 = vmatprep.subr.mxu0 %v1845_v13  ;;  %v2179_v31 = vld [vmem:[#allocation2 + $0x3d8] sm:$0xff]  ;;  %859 = vst.msk [vmem:[#allocation2 + $0x340] sm:$0xff] %vm754_vm0, %v602_v25  ;;  %vm1059_vm4 = vcmp.eq.s32.totalorder %v5716_v56, %v6005_v61 }
 0x140   : > { %4045 = vmatmul.mubr.msk.f32.gmra.mxu1 %vm1379_vm5, %v5231_v5  ;;  %v1828_v30 = vld [vmem:[#allocation2 + $0x248] sm:$0xff]  ;;  %840 = vst.msk [vmem:[#allocation2 + $0x2a8] sm:$0xff] %vm754_vm0, %v583_v26  ;;  %824 = vst.msk [vmem:[#allocation2 + $0x228] sm:$0xff] %vm754_vm0, %v567_v29  ;;  %v617_v32 = vld [vmem:[%s5309_s10 + $0x3b8] sm:$0xff]  ;;  %4634 = vmatpush3.msra.mxu0 %v1829_v14  ;;  %vm1388_vm5 = vcmp.eq.s32.totalorder %v5758_v24, %v5910_v23 }
 0x141   : > { %v601_v33 = vld [vmem:[%s5309_s10 + $0x338] sm:$0xff]  ;;  %4709 = vmatprep.subr.mxu1 %v2180_v15  ;;  %874 = vst.msk [vmem:[#allocation2 + $0x3b8] sm:$0xff] %vm754_vm0, %v617_v32  ;;  %v582_v36 = vld [vmem:[%s5309_s10 + $0x2a0] sm:$0xff]  ;;  %v616_v38 = vld [vmem:[%s5309_s10 + $0x3b0] sm:$0xff]  ;;  %3985 = vmatprep.mubr.msk.f32.mxu0 %vm1054_vm6, %v5231_v5  ;;  %vm1387_vm6 = vcmp.eq.s32.totalorder %v5762_v27, %v5910_v23 }
 0x142   : > { %v2163_v34 = vld [vmem:[#allocation2 + $0x358] sm:$0xff]  ;;  %858 = vst.msk [vmem:[#allocation2 + $0x338] sm:$0xff] %vm754_vm0, %v601_v33  ;;  %v566_v37 = vld [vmem:[%s5309_s10 + $0x220] sm:$0xff]  ;;  %4710 = vmatpush3.msra.mxu1 %v2164_v16  ;;  %839 = vst.msk [vmem:[#allocation2 + $0x2a0] sm:$0xff] %vm754_vm0, %v582_v36  ;;  %3986 = vmatmul.mubr.msk.f32.gmra.mxu0 %vm1053_vm7, %v5231_v5  ;;  %vm1062_vm7 = vcmp.eq.s32.totalorder %v5713_v55, %v6025_v3  ;;  %v6097_v36 = vadd.s32 96, %v5675_v28 }
 0x143   : > { %823 = vst.msk [vmem:[#allocation2 + $0x220] sm:$0xff] %vm754_vm0, %v566_v37  ;;  %873 = vst.msk [vmem:[#allocation2 + $0x3b0] sm:$0xff] %vm754_vm0, %v616_v38  ;;  %v600_v40 = vld [vmem:[%s5309_s10 + $0x330] sm:$0xff]  ;;  %v581_v41 = vld [vmem:[%s5309_s10 + $0x298] sm:$0xff]  ;;  %4046 = vmatprep.mubr.msk.f32.mxu1 %vm1382_vm8, %v5231_v5  ;;  %4635 = vmatprep.subr.mxu0 %v1844_v22  ;;  %vm1061_vm8 = vcmp.eq.s32.totalorder %v5716_v56, %v6025_v3 }
 0x144   : > { %v565_v42 = vld [vmem:[%s5309_s10 + $0x218] sm:$0xff]  ;;  %857 = vst.msk [vmem:[#allocation2 + $0x330] sm:$0xff] %vm754_vm0, %v600_v40  ;;  %838 = vst.msk [vmem:[#allocation2 + $0x298] sm:$0xff] %vm754_vm0, %v581_v41  ;;  %v615_v46 = vld [vmem:[%s5309_s10 + $0x3a8] sm:$0xff]  ;;  %4047 = vmatmul.mubr.msk.f32.gmra.mxu1 %vm1381_vm9, %v5231_v5  ;;  %4636 = vmatpush3.msra.mxu0 %v1828_v30  ;;  %vm1390_vm9 = vcmp.eq.s32.totalorder %v5758_v24, %v5959_v45 }
 0x145   : > { %822 = vst.msk [vmem:[#allocation2 + $0x218] sm:$0xff] %vm754_vm0, %v565_v42  ;;  %v599_v47 = vld [vmem:[%s5309_s10 + $0x328] sm:$0xff]  ;;  %v580_v48 = vld [vmem:[%s5309_s10 + $0x290] sm:$0xff]  ;;  %872 = vst.msk [vmem:[#allocation2 + $0x3a8] sm:$0xff] %vm754_vm0, %v615_v46  ;;  %4711 = vmatprep.subr.mxu1 %v2179_v31  ;;  %3987 = vmatprep.mubr.msk.f32.mxu0 %vm1056_vm10, %v5231_v5  ;;  %vm1389_vm10 = vcmp.eq.s32.totalorder %v5762_v27, %v5959_v45 }
 0x146   : > { %856 = vst.msk [vmem:[#allocation2 + $0x328] sm:$0xff] %vm754_vm0, %v599_v47  ;;  %837 = vst.msk [vmem:[#allocation2 + $0x290] sm:$0xff] %vm754_vm0, %v580_v48  ;;  %v564_v49 = vld [vmem:[%s5309_s10 + $0x210] sm:$0xff]  ;;  %v614_v50 = vld [vmem:[%s5309_s10 + $0x3a0] sm:$0xff]  ;;  %4712 = vmatpush3.msra.mxu1 %v2163_v34  ;;  %3988 = vmatmul.mubr.msk.f32.gmra.mxu0 %vm1055_vm11, %v5231_v5  ;;  %vm1064_vm11 = vcmp.eq.s32.totalorder %v5713_v55, %v6051_v17 }
 0x147   : > { %v598_v51 = vld [vmem:[%s5309_s10 + $0x320] sm:$0xff]  ;;  %821 = vst.msk [vmem:[#allocation2 + $0x210] sm:$0xff] %vm754_vm0, %v564_v49  ;;  %871 = vst.msk [vmem:[#allocation2 + $0x3a0] sm:$0xff] %vm754_vm0, %v614_v50  ;;  %v579_v54 = vld [vmem:[%s5309_s10 + $0x288] sm:$0xff]  ;;  %4048 = vmatprep.mubr.msk.f32.mxu1 %vm1384_vm12, %v5231_v5  ;;  %3989 = vmatprep.mubr.msk.f32.mxu0 %vm1058_vm14, %v5231_v5  ;;  %vm1063_vm12 = vcmp.eq.s32.totalorder %v5716_v56, %v6051_v17  ;;  %vm1391_vm14 = vcmp.eq.s32.totalorder %v5762_v27, %v6005_v61 }
 0x148   : > { %v1843_v53 = vld [vmem:[#allocation2 + $0x2c0] sm:$0xff]  ;;  %855 = vst.msk [vmem:[#allocation2 + $0x320] sm:$0xff] %vm754_vm0, %v598_v51  ;;  %v563_v57 = vld [vmem:[%s5309_s10 + $0x208] sm:$0xff]  ;;  %v2178_v59 = vld [vmem:[#allocation2 + $0x3d0] sm:$0xff]  ;;  %4049 = vmatmul.mubr.msk.f32.gmra.mxu1 %vm1383_vm13, %v5231_v5  ;;  %vm1392_vm13 = vcmp.eq.s32.totalorder %v5758_v24, %v6005_v61 }
 0x149   : > { %v1827_v58 = vld [vmem:[#allocation2 + $0x240] sm:$0xff]  ;;  %836 = vst.msk [vmem:[#allocation2 + $0x288] sm:$0xff] %vm754_vm0, %v579_v54  ;;  %820 = vst.msk [vmem:[#allocation2 + $0x208] sm:$0xff] %vm754_vm0, %v563_v57  ;;  %v2162_v60 = vld [vmem:[#allocation2 + $0x350] sm:$0xff]  ;;  %4637 = vmatprep.subr.mxu0 %v1843_v53  ;;  %4713 = vmatprep.subr.mxu1 %v2178_v59  ;;  %v6142_v54 = vadd.s32 104, %v5675_v28 }
 0x14a   : > { %v613_v62 = vld [vmem:[%s5309_s10 + $0x398] sm:$0xff]  ;;  %4638 = vmatpush3.msra.mxu0 %v1827_v58  ;;  %4714 = vmatpush3.msra.mxu1 %v2162_v60  ;;  %v2177_v1 = vld [vmem:[#allocation2 + $0x3c8] sm:$0xff]  ;;  %v1841_v7 = vld [vmem:[#allocation2 + $0x2b0] sm:$0xff] }
 0x14b   : > { %v1842_v63 = vld [vmem:[#allocation2 + $0x2b8] sm:$0xff]  ;;  %870 = vst.msk [vmem:[#allocation2 + $0x398] sm:$0xff] %vm754_vm0, %v613_v62  ;;  %3990 = vmatmul.mubr.msk.f32.gmra.mxu0 %vm1057_vm15, %v5231_v5  ;;  %4050 = vmatprep.mubr.msk.f32.mxu1 %vm1386_vm1, %v5231_v5  ;;  %v2161_v2 = vld [vmem:[#allocation2 + $0x348] sm:$0xff]  ;;  %v1825_v8 = vld [vmem:[#allocation2 + $0x230] sm:$0xff]  ;;  %vm1066_vm15 = vcmp.eq.s32.totalorder %v5713_v55, %v6097_v36  ;;  %vm1065_vm1 = vcmp.eq.s32.totalorder %v5716_v56, %v6097_v36 }
 0x14c   : > { %v1826_v0 = vld [vmem:[#allocation2 + $0x238] sm:$0xff]  ;;  %4639 = vmatprep.subr.mxu0 %v1842_v63  ;;  %4051 = vmatmul.mubr.msk.f32.gmra.mxu1 %vm1385_vm2, %v5231_v5  ;;  %v2176_v9 = vld [vmem:[#allocation2 + $0x3c0] sm:$0xff]  ;;  %v612_v15 = vld [vmem:[%s5309_s10 + $0x390] sm:$0xff]  ;;  %vm1394_vm2 = vcmp.eq.s32.totalorder %v5758_v24, %v6025_v3 }
 0x14d   : > { %4640 = vmatpush3.msra.mxu0 %v1826_v0  ;;  %4715 = vmatprep.subr.mxu1 %v2177_v1  ;;  %v2160_v10 = vld [vmem:[#allocation2 + $0x340] sm:$0xff]  ;;  %v597_v11 = vld [vmem:[%s5309_s10 + $0x318] sm:$0xff]  ;;  %v1840_v16 = vld [vmem:[#allocation2 + $0x2a8] sm:$0xff]  ;;  %869 = vst.msk [vmem:[#allocation2 + $0x390] sm:$0xff] %vm754_vm0, %v612_v15  ;;  %v6165_v1 = vadd.s32 112, %v5675_v28 }
 0x14e   : > { %3991 = vmatprep.mubr.msk.f32.mxu0 %vm1060_vm3, %v5231_v5  ;;  %4716 = vmatpush3.msra.mxu1 %v2161_v2  ;;  %854 = vst.msk [vmem:[#allocation2 + $0x318] sm:$0xff] %vm754_vm0, %v597_v11  ;;  %v578_v13 = vld [vmem:[%s5309_s10 + $0x280] sm:$0xff]  ;;  %v596_v19 = vld [vmem:[%s5309_s10 + $0x310] sm:$0xff]  ;;  %v657_v20 = vld [vmem:[%s5309_s10 + $0x4f8] sm:$0xff]  ;;  %vm1393_vm3 = vcmp.eq.s32.totalorder %v5762_v27, %v6025_v3 }
 0x14f   : > { %v562_v14 = vld [vmem:[%s5309_s10 + $0x200] sm:$0xff]  ;;  %3992 = vmatmul.mubr.msk.f32.gmra.mxu0 %vm1059_vm4, %v5231_v5  ;;  %4052 = vmatprep.mubr.msk.f32.mxu1 %vm1388_vm5, %v5231_v5  ;;  %835 = vst.msk [vmem:[#allocation2 + $0x280] sm:$0xff] %vm754_vm0, %v578_v13  ;;  %v1824_v21 = vld [vmem:[#allocation2 + $0x228] sm:$0xff]  ;;  %v2175_v22 = vld [vmem:[#allocation2 + $0x3b8] sm:$0xff]  ;;  %vm1068_vm4 = vcmp.eq.s32.totalorder %v5713_v55, %v6142_v54  ;;  %vm1067_vm5 = vcmp.eq.s32.totalorder %v5716_v56, %v6142_v54 }
 0x150   : > { %819 = vst.msk [vmem:[#allocation2 + $0x200] sm:$0xff] %vm754_vm0, %v562_v14  ;;  %4641 = vmatprep.subr.mxu0 %v1841_v7  ;;  %4053 = vmatmul.mubr.msk.f32.gmra.mxu1 %vm1387_vm6, %v5231_v5  ;;  %853 = vst.msk [vmem:[#allocation2 + $0x310] sm:$0xff] %vm754_vm0, %v596_v19  ;;  %v641_v25 = vld [vmem:[%s5309_s10 + $0x478] sm:$0xff]  ;;  %v611_v26 = vld [vmem:[%s5309_s10 + $0x388] sm:$0xff]  ;;  %vm1396_vm6 = vcmp.eq.s32.totalorder %v5758_v24, %v6051_v17  ;;  %v6196_v19 = vadd.s32 120, %v5675_v28 }
 0x151   : > { %914 = vst.msk [vmem:[#allocation2 + $0x4f8] sm:$0xff] %vm754_vm0, %v657_v20  ;;  %4642 = vmatpush3.msra.mxu0 %v1825_v8  ;;  %4717 = vmatprep.subr.mxu1 %v2176_v9  ;;  %898 = vst.msk [vmem:[#allocation2 + $0x478] sm:$0xff] %vm754_vm0, %v641_v25  ;;  %v595_v29 = vld [vmem:[%s5309_s10 + $0x308] sm:$0xff]  ;;  %v656_v30 = vld [vmem:[%s5309_s10 + $0x4f0] sm:$0xff] }
 0x152   : > { %868 = vst.msk [vmem:[#allocation2 + $0x388] sm:$0xff] %vm754_vm0, %v611_v26  ;;  %v640_v31 = vld [vmem:[%s5309_s10 + $0x470] sm:$0xff]  ;;  %3993 = vmatprep.mubr.msk.f32.mxu0 %vm1062_vm7, %v5231_v5  ;;  %4718 = vmatpush3.msra.mxu1 %v2160_v10  ;;  %v2159_v32 = vld [vmem:[#allocation2 + $0x338] sm:$0xff]  ;;  %852 = vst.msk [vmem:[#allocation2 + $0x308] sm:$0xff] %vm754_vm0, %v595_v29  ;;  %vm1395_vm7 = vcmp.eq.s32.totalorder %v5762_v27, %v6051_v17 }
 0x153   : > { %913 = vst.msk [vmem:[#allocation2 + $0x4f0] sm:$0xff] %vm754_vm0, %v656_v30  ;;  %897 = vst.msk [vmem:[#allocation2 + $0x470] sm:$0xff] %vm754_vm0, %v640_v31  ;;  %v610_v33 = vld [vmem:[%s5309_s10 + $0x380] sm:$0xff]  ;;  %3994 = vmatmul.mubr.msk.f32.gmra.mxu0 %vm1061_vm8, %v5231_v5  ;;  %4054 = vmatprep.mubr.msk.f32.mxu1 %vm1390_vm9, %v5231_v5  ;;  %v655_v37 = vld [vmem:[%s5309_s10 + $0x4e8] sm:$0xff]  ;;  %vm1070_vm8 = vcmp.eq.s32.totalorder %v5713_v55, %v6165_v1  ;;  %vm1069_vm9 = vcmp.eq.s32.totalorder %v5716_v56, %v6165_v1 }
 0x154   : > { %v594_v34 = vld [vmem:[%s5309_s10 + $0x300] sm:$0xff]  ;;  %867 = vst.msk [vmem:[#allocation2 + $0x380] sm:$0xff] %vm754_vm0, %v610_v33  ;;  %v639_v38 = vld [vmem:[%s5309_s10 + $0x468] sm:$0xff]  ;;  %v689_v40 = vld [vmem:[%s5309_s10 + $0x5f8] sm:$0xff]  ;;  %4643 = vmatprep.subr.mxu0 %v1840_v16  ;;  %4055 = vmatmul.mubr.msk.f32.gmra.mxu1 %vm1389_vm10, %v5231_v5  ;;  %vm1398_vm10 = vcmp.eq.s32.totalorder %v5758_v24, %v6097_v36 }
 0x155   : > { %851 = vst.msk [vmem:[#allocation2 + $0x300] sm:$0xff] %vm754_vm0, %v594_v34  ;;  %912 = vst.msk [vmem:[#allocation2 + $0x4e8] sm:$0xff] %vm754_vm0, %v655_v37  ;;  %v673_v41 = vld [vmem:[%s5309_s10 + $0x578] sm:$0xff]  ;;  %v654_v42 = vld [vmem:[%s5309_s10 + $0x4e0] sm:$0xff]  ;;  %4644 = vmatpush3.msra.mxu0 %v1824_v21  ;;  %4719 = vmatprep.subr.mxu1 %v2175_v22 }
 0x156   : > { %896 = vst.msk [vmem:[#allocation2 + $0x468] sm:$0xff] %vm754_vm0, %v639_v38  ;;  %946 = vst.msk [vmem:[#allocation2 + $0x5f8] sm:$0xff] %vm754_vm0, %v689_v40  ;;  %v638_v46 = vld [vmem:[%s5309_s10 + $0x460] sm:$0xff]  ;;  %v688_v48 = vld [vmem:[%s5309_s10 + $0x5f0] sm:$0xff]  ;;  %3995 = vmatprep.mubr.msk.f32.mxu0 %vm1064_vm11, %v5231_v5  ;;  %4720 = vmatpush3.msra.mxu1 %v2159_v32  ;;  %vm1397_vm11 = vcmp.eq.s32.totalorder %v5762_v27, %v6097_v36 }
 0x157   : > { %v1839_v47 = vld [vmem:[#allocation2 + $0x2a0] sm:$0xff]  ;;  %930 = vst.msk [vmem:[#allocation2 + $0x578] sm:$0xff] %vm754_vm0, %v673_v41  ;;  %911 = vst.msk [vmem:[#allocation2 + $0x4e0] sm:$0xff] %vm754_vm0, %v654_v42  ;;  %v672_v49 = vld [vmem:[%s5309_s10 + $0x570] sm:$0xff]  ;;  %3996 = vmatmul.mubr.msk.f32.gmra.mxu0 %vm1063_vm12, %v5231_v5  ;;  %4056 = vmatprep.mubr.msk.f32.mxu1 %vm1392_vm13, %v5231_v5  ;;  %vm1072_vm12 = vcmp.eq.s32.totalorder %v5713_v55, %v6196_v19  ;;  %vm1071_vm13 = vcmp.eq.s32.totalorder %v5716_v56, %v6196_v19 }
 0x158   : > { %895 = vst.msk [vmem:[#allocation2 + $0x460] sm:$0xff] %vm754_vm0, %v638_v46  ;;  %v1823_v50 = vld [vmem:[#allocation2 + $0x220] sm:$0xff]  ;;  %v2174_v51 = vld [vmem:[#allocation2 + $0x3b0] sm:$0xff]  ;;  %945 = vst.msk [vmem:[#allocation2 + $0x5f0] sm:$0xff] %vm754_vm0, %v688_v48  ;;  %4645 = vmatprep.subr.mxu0 %v1839_v47  ;;  %4057 = vmatmul.mubr.msk.f32.gmra.mxu1 %vm1391_vm14, %v5231_v5  ;;  %vm1400_vm14 = vcmp.eq.s32.totalorder %v5758_v24, %v6142_v54 }
 0x159   : > { %929 = vst.msk [vmem:[#allocation2 + $0x570] sm:$0xff] %vm754_vm0, %v672_v49  ;;  %v2158_v53 = vld [vmem:[#allocation2 + $0x330] sm:$0xff]  ;;  %v653_v57 = vld [vmem:[%s5309_s10 + $0x4d8] sm:$0xff]  ;;  %4646 = vmatpush3.msra.mxu0 %v1823_v50  ;;  %4721 = vmatprep.subr.mxu1 %v2174_v51  ;;  %v2173_v62 = vld [vmem:[#allocation2 + $0x3a8] sm:$0xff] }
 0x15a   : > { %910 = vst.msk [vmem:[#allocation2 + $0x4d8] sm:$0xff] %vm754_vm0, %v653_v57  ;;  %v637_v58 = vld [vmem:[%s5309_s10 + $0x458] sm:$0xff]  ;;  %3997 = vmatprep.mubr.msk.f32.mxu0 %vm1066_vm15, %v5231_v5  ;;  %4722 = vmatpush3.msra.mxu1 %v2158_v53  ;;  %v687_v63 = vld [vmem:[%s5309_s10 + $0x5e8] sm:$0xff]  ;;  %v1837_v2 = vld [vmem:[#allocation2 + $0x290] sm:$0xff]  ;;  %vm1399_vm15 = vcmp.eq.s32.totalorder %v5762_v27, %v6142_v54 }
 0x15b   : > { %v1838_v59 = vld [vmem:[#allocation2 + $0x298] sm:$0xff]  ;;  %894 = vst.msk [vmem:[#allocation2 + $0x458] sm:$0xff] %vm754_vm0, %v637_v58  ;;  %3998 = vmatmul.mubr.msk.f32.gmra.mxu0 %vm1065_vm1, %v5231_v5  ;;  %4058 = vmatprep.mubr.msk.f32.mxu1 %vm1394_vm2, %v5231_v5  ;;  %v2157_v0 = vld [vmem:[#allocation2 + $0x328] sm:$0xff]  ;;  %944 = vst.msk [vmem:[#allocation2 + $0x5e8] sm:$0xff] %vm754_vm0, %v687_v63  ;;  %vm1402_vm2 = vcmp.eq.s32.totalorder %v5758_v24, %v6165_v1 }
 0x15c   : > { %v1822_v60 = vld [vmem:[#allocation2 + $0x218] sm:$0xff]  ;;  %4647 = vmatprep.subr.mxu0 %v1838_v59  ;;  %4059 = vmatmul.mubr.msk.f32.gmra.mxu1 %vm1393_vm3, %v5231_v5  ;;  %v1821_v7 = vld [vmem:[#allocation2 + $0x210] sm:$0xff]  ;;  %v4070_v8 = vld [vmem:[%s5304_s8 + $0x4] sm:$0x3] }
 0x15d   : > { %4648 = vmatpush3.msra.mxu0 %v1822_v60  ;;  %4723 = vmatprep.subr.mxu1 %v2173_v62  ;;  %v2172_v9 = vld [vmem:[#allocation2 + $0x3a0] sm:$0xff]  ;;  %v671_v11 = vld [vmem:[%s5309_s10 + $0x568] sm:$0xff]  ;;  %v652_v13 = vld [vmem:[%s5309_s10 + $0x4d0] sm:$0xff]  ;;  %v1697_v20 = vsub.s32 %v4070_v8, %v5680_v39 }
 0x15e   : > { %v2156_v10 = vld [vmem:[#allocation2 + $0x320] sm:$0xff]  ;;  %3999 = vmatprep.mubr.msk.f32.mxu0 %vm1068_vm4, %v5231_v5  ;;  %4724 = vmatpush3.msra.mxu1 %v2157_v0  ;;  %928 = vst.msk [vmem:[#allocation2 + $0x568] sm:$0xff] %vm754_vm0, %v671_v11  ;;  %v636_v14 = vld [vmem:[%s5309_s10 + $0x450] sm:$0xff]  ;;  %v1836_v16 = vld [vmem:[#allocation2 + $0x288] sm:$0xff]  ;;  %vm1401_vm4 = vcmp.eq.s32.totalorder %v5762_v27, %v6165_v1 }
 0x15f   : > { %v686_v15 = vld [vmem:[%s5309_s10 + $0x5e0] sm:$0xff]  ;;  %4000 = vmatmul.mubr.msk.f32.gmra.mxu0 %vm1067_vm5, %v5231_v5  ;;  %4060 = vmatprep.mubr.msk.f32.mxu1 %vm1396_vm6, %v5231_v5  ;;  %909 = vst.msk [vmem:[#allocation2 + $0x4d0] sm:$0xff] %vm754_vm0, %v652_v13  ;;  %893 = vst.msk [vmem:[#allocation2 + $0x450] sm:$0xff] %vm754_vm0, %v636_v14  ;;  %v651_v22 = vld [vmem:[%s5309_s10 + $0x4c8] sm:$0xff]  ;;  %v6243_v40 = vrot.slane %v1697_v20, %v5689_v43  ;;  %v6260_v48 = vrot.slane %v1697_v20, %v5692_v44 }
 0x160   : > { %943 = vst.msk [vmem:[#allocation2 + $0x5e0] sm:$0xff] %vm754_vm0, %v686_v15  ;;  %v670_v21 = vld [vmem:[%s5309_s10 + $0x560] sm:$0xff]  ;;  %4649 = vmatprep.subr.mxu0 %v1837_v2  ;;  %4061 = vmatmul.mubr.msk.f32.gmra.mxu1 %vm1395_vm7, %v5231_v5  ;;  %v1820_v25 = vld [vmem:[#allocation2 + $0x208] sm:$0xff]  ;;  %v2171_v26 = vld [vmem:[#allocation2 + $0x398] sm:$0xff]  ;;  %vm1404_vm6 = vcmp.eq.s32.totalorder %v5758_v24, %v6196_v19 }
 0x161   : > { %927 = vst.msk [vmem:[#allocation2 + $0x560] sm:$0xff] %vm754_vm0, %v670_v21  ;;  %908 = vst.msk [vmem:[#allocation2 + $0x4c8] sm:$0xff] %vm754_vm0, %v651_v22  ;;  %v635_v29 = vld [vmem:[%s5309_s10 + $0x448] sm:$0xff]  ;;  %v685_v30 = vld [vmem:[%s5309_s10 + $0x5d8] sm:$0xff]  ;;  %4650 = vmatpush3.msra.mxu0 %v1821_v7  ;;  %4725 = vmatprep.subr.mxu1 %v2172_v9  ;;  %vm1707_vm1 = vcmp.eq.s32.totalorder %v6243_v40, %v5675_v28  ;;  %vm1706_vm3 = vcmp.eq.s32.totalorder %v6260_v48, %v5675_v28 }
 0x162   : > { %892 = vst.msk [vmem:[#allocation2 + $0x448] sm:$0xff] %vm754_vm0, %v635_v29  ;;  %942 = vst.msk [vmem:[#allocation2 + $0x5d8] sm:$0xff] %vm754_vm0, %v685_v30  ;;  %v669_v31 = vld [vmem:[%s5309_s10 + $0x558] sm:$0xff]  ;;  %v650_v32 = vld [vmem:[%s5309_s10 + $0x4c0] sm:$0xff]  ;;  %4001 = vmatprep.mubr.msk.f32.mxu0 %vm1070_vm8, %v5231_v5  ;;  %4726 = vmatpush3.msra.mxu1 %v2156_v10  ;;  %vm1709_vm5 = vcmp.eq.s32.totalorder %v6243_v40, %v5740_v6  ;;  %vm1708_vm7 = vcmp.eq.s32.totalorder %v6260_v48, %v5740_v6 }
 0x163   : > { %v634_v33 = vld [vmem:[%s5309_s10 + $0x440] sm:$0xff]  ;;  %v2155_v34 = vld [vmem:[#allocation2 + $0x318] sm:$0xff]  ;;  %926 = vst.msk [vmem:[#allocation2 + $0x558] sm:$0xff] %vm754_vm0, %v669_v31  ;;  %907 = vst.msk [vmem:[#allocation2 + $0x4c0] sm:$0xff] %vm754_vm0, %v650_v32  ;;  %4002 = vmatmul.mubr.msk.f32.gmra.mxu0 %vm1069_vm9, %v5231_v5  ;;  %4062 = vmatprep.mubr.msk.f32.mxu1 %vm1398_vm10, %v5231_v5  ;;  %vm1403_vm8 = vcmp.eq.s32.totalorder %v5762_v27, %v6196_v19  ;;  %vm1711_vm9 = vcmp.eq.s32.totalorder %v6243_v40, %v5753_v18 }
 0x164   : > { %891 = vst.msk [vmem:[#allocation2 + $0x440] sm:$0xff] %vm754_vm0, %v634_v33  ;;  %v684_v37 = vld [vmem:[%s5309_s10 + $0x5d0] sm:$0xff]  ;;  %v4135_v41 = vld [vmem:[%s5304_s8 + $0x6] sm:$0x3]  ;;  %v649_v42 = vld [vmem:[%s5309_s10 + $0x4b8] sm:$0xff]  ;;  %4651 = vmatprep.subr.mxu0 %v1836_v16  ;;  %4063 = vmatmul.mubr.msk.f32.gmra.mxu1 %vm1397_vm11, %v5231_v5  ;;  %vm1710_vm10 = vcmp.eq.s32.totalorder %v6260_v48, %v5753_v18 }
 0x165   : > { %v668_v38 = vld [vmem:[%s5309_s10 + $0x550] sm:$0xff]  ;;  %941 = vst.msk [vmem:[#allocation2 + $0x5d0] sm:$0xff] %vm754_vm0, %v684_v37  ;;  %v633_v46 = vld [vmem:[%s5309_s10 + $0x438] sm:$0xff]  ;;  %v683_v47 = vld [vmem:[%s5309_s10 + $0x5c8] sm:$0xff]  ;;  %4652 = vmatpush3.msra.mxu0 %v1820_v25  ;;  %4727 = vmatprep.subr.mxu1 %v2171_v26  ;;  %v2030_v56 = vsub.s32 %v4135_v41, %v5680_v39 }
 0x166   : > { %925 = vst.msk [vmem:[#allocation2 + $0x550] sm:$0xff] %vm754_vm0, %v668_v38  ;;  %906 = vst.msk [vmem:[#allocation2 + $0x4b8] sm:$0xff] %vm754_vm0, %v649_v42  ;;  %v667_v49 = vld [vmem:[%s5309_s10 + $0x548] sm:$0xff]  ;;  %v648_v50 = vld [vmem:[%s5309_s10 + $0x4b0] sm:$0xff]  ;;  %4003 = vmatprep.mubr.msk.f32.mxu0 %vm1072_vm12, %v5231_v5  ;;  %4728 = vmatpush3.msra.mxu1 %v2155_v34 }
 0x167   : > { %890 = vst.msk [vmem:[#allocation2 + $0x438] sm:$0xff] %vm754_vm0, %v633_v46  ;;  %940 = vst.msk [vmem:[#allocation2 + $0x5c8] sm:$0xff] %vm754_vm0, %v683_v47  ;;  %v632_v51 = vld [vmem:[%s5309_s10 + $0x430] sm:$0xff]  ;;  %v1835_v53 = vld [vmem:[#allocation2 + $0x280] sm:$0xff]  ;;  %4004 = vmatmul.mubr.msk.f32.gmra.mxu0 %vm1071_vm13, %v5231_v5  ;;  %4064 = vmatprep.mubr.msk.f32.mxu1 %vm1400_vm14, %v5231_v5  ;;  %v6319_v13 = vrot.slane %v2030_v56, %v5689_v43  ;;  %v6324_v16 = vrot.slane %v2030_v56, %v5692_v44 }
 0x168   : > { %924 = vst.msk [vmem:[#allocation2 + $0x548] sm:$0xff] %vm754_vm0, %v667_v49  ;;  %905 = vst.msk [vmem:[#allocation2 + $0x4b0] sm:$0xff] %vm754_vm0, %v648_v50  ;;  %v682_v57 = vld [vmem:[%s5309_s10 + $0x5c0] sm:$0xff]  ;;  %v2170_v60 = vld [vmem:[#allocation2 + $0x390] sm:$0xff]  ;;  %4653 = vmatprep.subr.mxu0 %v1835_v53  ;;  %4065 = vmatmul.mubr.msk.f32.gmra.mxu1 %vm1399_vm15, %v5231_v5  ;;  %vm1713_vm13 = vcmp.eq.s32.totalorder %v6243_v40, %v5775_v35  ;;  %vm1712_vm14 = vcmp.eq.s32.totalorder %v6260_v48, %v5775_v35 }
 0x169   : > { %889 = vst.msk [vmem:[#allocation2 + $0x430] sm:$0xff] %vm754_vm0, %v632_v51  ;;  %v666_v58 = vld [vmem:[%s5309_s10 + $0x540] sm:$0xff]  ;;  %939 = vst.msk [vmem:[#allocation2 + $0x5c0] sm:$0xff] %vm754_vm0, %v682_v57  ;;  %v2154_v55 = vld [vmem:[#allocation2 + $0x310] sm:$0xff]  ;;  %4729 = vmatprep.subr.mxu1 %v2170_v60  ;;  %4103 = vmatprep.mubr.msk.f32.mxu0 %vm1707_vm1, %v5231_v5  ;;  %vm2040_vm11 = vcmp.eq.s32.totalorder %v6319_v13, %v5675_v28  ;;  %vm2039_vm12 = vcmp.eq.s32.totalorder %v6324_v16, %v5675_v28 }
 0x16a   : > { %v1819_v59 = vld [vmem:[#allocation2 + $0x200] sm:$0xff]  ;;  %923 = vst.msk [vmem:[#allocation2 + $0x540] sm:$0xff] %vm754_vm0, %v666_v58  ;;  %v647_v62 = vld [vmem:[%s5309_s10 + $0x4a8] sm:$0xff]  ;;  %v2516_v0 = vld [vmem:[#allocation2 + $0x4f8] sm:$0xff]  ;;  %4730 = vmatpush3.msra.mxu1 %v2154_v55  ;;  %4066 = vmatprep.mubr.msk.f32.mxu1 %vm1402_vm2, %v5231_v5  ;;  %vm2042_vm15 = vcmp.eq.s32.totalorder %v6319_v13, %v5740_v6  ;;  %vm2041_vm1 = vcmp.eq.s32.totalorder %v6324_v16, %v5740_v6 }
 0x16b   : > { %904 = vst.msk [vmem:[#allocation2 + $0x4a8] sm:$0xff] %vm754_vm0, %v647_v62  ;;  %v631_v63 = vld [vmem:[%s5309_s10 + $0x428] sm:$0xff]  ;;  %4654 = vmatpush3.msra.mxu0 %v1819_v59  ;;  %v2500_v2 = vld [vmem:[#allocation2 + $0x478] sm:$0xff]  ;;  %v2515_v10 = vld [vmem:[#allocation2 + $0x4f0] sm:$0xff]  ;;  %vm1715_vm2 = vcmp.eq.s32.totalorder %v6243_v40, %v5818_v52 }
 0x16c   : > { %888 = vst.msk [vmem:[#allocation2 + $0x428] sm:$0xff] %vm754_vm0, %v631_v63  ;;  %v2169_v7 = vld [vmem:[#allocation2 + $0x388] sm:$0xff]  ;;  %v681_v8 = vld [vmem:[%s5309_s10 + $0x5b8] sm:$0xff]  ;;  %4104 = vmatmul.mubr.msk.f32.vlgmr.msra.gmra.mxu0 %vm1706_vm3, %v5231_v5  ;;  %4783 = vmatprep.subr.mxu0 %v2516_v0  ;;  %v2499_v11 = vld [vmem:[#allocation2 + $0x470] sm:$0xff]  ;;  %vm1714_vm3 = vcmp.eq.s32.totalorder %v6260_v48, %v5818_v52 }
 0x16d   : > { %v2153_v9 = vld [vmem:[#allocation2 + $0x308] sm:$0xff]  ;;  %938 = vst.msk [vmem:[#allocation2 + $0x5b8] sm:$0xff] %vm754_vm0, %v681_v8  ;;  %4067 = vmatmul.mubr.msk.f32.gmra.mxu1 %vm1401_vm4, %v5231_v5  ;;  %4784 = vmatpush3.msra.mxu0 %v2500_v2  ;;  %v2168_v14 = vld [vmem:[#allocation2 + $0x380] sm:$0xff]  ;;  %v665_v20 = vld [vmem:[%s5309_s10 + $0x538] sm:$0xff]  ;;  %vm2044_vm4 = vcmp.eq.s32.totalorder %v6319_v13, %v5753_v18 }
 0x16e   : > { %4731 = vmatprep.subr.mxu1 %v2169_v7  ;;  %v2152_v15 = vld [vmem:[#allocation2 + $0x300] sm:$0xff]  ;;  %4105 = vmatprep.mubr.msk.f32.mxu0 %vm1709_vm5, %v5231_v5  ;;  %922 = vst.msk [vmem:[#allocation2 + $0x538] sm:$0xff] %vm754_vm0, %v665_v20  ;;  %v680_v25 = vld [vmem:[%s5309_s10 + $0x5b0] sm:$0xff]  ;;  %v2514_v26 = vld [vmem:[#allocation2 + $0x4e8] sm:$0xff]  ;;  %vm2043_vm5 = vcmp.eq.s32.totalorder %v6324_v16, %v5753_v18 }
 0x16f   : > { %4732 = vmatpush3.msra.mxu1 %v2153_v9  ;;  %v646_v21 = vld [vmem:[%s5309_s10 + $0x4a0] sm:$0xff]  ;;  %4068 = vmatprep.mubr.msk.f32.mxu1 %vm1404_vm6, %v5231_v5  ;;  %937 = vst.msk [vmem:[#allocation2 + $0x5b0] sm:$0xff] %vm754_vm0, %v680_v25  ;;  %v664_v29 = vld [vmem:[%s5309_s10 + $0x530] sm:$0xff]  ;;  %v645_v24 = vld [vmem:[%s5309_s10 + $0x498] sm:$0xff]  ;;  %vm1717_vm6 = vcmp.eq.s32.totalorder %v6243_v40, %v5864_v4 }
 0x170   : > { %v630_v22 = vld [vmem:[%s5309_s10 + $0x420] sm:$0xff]  ;;  %4106 = vmatmul.mubr.msk.f32.gmra.mxu0 %vm1708_vm7, %v5231_v5  ;;  %903 = vst.msk [vmem:[#allocation2 + $0x4a0] sm:$0xff] %vm754_vm0, %v646_v21  ;;  %4785 = vmatprep.subr.mxu0 %v2515_v10  ;;  %v2498_v30 = vld [vmem:[#allocation2 + $0x468] sm:$0xff]  ;;  %v2849_v31 = vld [vmem:[#allocation2 + $0x5f8] sm:$0xff]  ;;  %vm1716_vm7 = vcmp.eq.s32.totalorder %v6260_v48, %v5864_v4 }
 0x171   : > { %887 = vst.msk [vmem:[#allocation2 + $0x420] sm:$0xff] %vm754_vm0, %v630_v22  ;;  %4069 = vmatmul.mubr.msk.f32.gmra.mxu1 %vm1403_vm8, %v5231_v5  ;;  %921 = vst.msk [vmem:[#allocation2 + $0x530] sm:$0xff] %vm754_vm0, %v664_v29  ;;  %v629_v32 = vld [vmem:[%s5309_s10 + $0x418] sm:$0xff]  ;;  %v679_v33 = vld [vmem:[%s5309_s10 + $0x5a8] sm:$0xff]  ;;  %4786 = vmatpush3.msra.mxu0 %v2499_v11  ;;  %vm2046_vm8 = vcmp.eq.s32.totalorder %v6319_v13, %v5775_v35 }
 0x172   : > { %902 = vst.msk [vmem:[#allocation2 + $0x498] sm:$0xff] %vm754_vm0, %v645_v24  ;;  %4733 = vmatprep.subr.mxu1 %v2168_v14  ;;  %886 = vst.msk [vmem:[#allocation2 + $0x418] sm:$0xff] %vm754_vm0, %v629_v32  ;;  %v663_v27 = vld [vmem:[%s5309_s10 + $0x528] sm:$0xff]  ;;  %v644_v34 = vld [vmem:[%s5309_s10 + $0x490] sm:$0xff]  ;;  %4107 = vmatprep.mubr.msk.f32.mxu0 %vm1711_vm9, %v5231_v5  ;;  %vm2045_vm9 = vcmp.eq.s32.totalorder %v6324_v16, %v5775_v35 }
 0x173   : > { %936 = vst.msk [vmem:[#allocation2 + $0x5a8] sm:$0xff] %vm754_vm0, %v679_v33  ;;  %v628_v37 = vld [vmem:[%s5309_s10 + $0x410] sm:$0xff]  ;;  %4734 = vmatpush3.msra.mxu1 %v2152_v15  ;;  %v2833_v38 = vld [vmem:[#allocation2 + $0x578] sm:$0xff]  ;;  %920 = vst.msk [vmem:[#allocation2 + $0x528] sm:$0xff] %vm754_vm0, %v663_v27  ;;  %4168 = vmatprep.mubr.msk.f32.mxu1 %vm2040_vm11, %v5231_v5  ;;  %vm1718_vm11 = vcmp.eq.s32.totalorder %v6260_v48, %v5884_v12 }
 0x174   : > { %901 = vst.msk [vmem:[#allocation2 + $0x490] sm:$0xff] %vm754_vm0, %v644_v34  ;;  %885 = vst.msk [vmem:[#allocation2 + $0x410] sm:$0xff] %vm754_vm0, %v628_v37  ;;  %v678_v41 = vld [vmem:[%s5309_s10 + $0x5a0] sm:$0xff]  ;;  %4108 = vmatmul.mubr.msk.f32.gmra.mxu0 %vm1710_vm10, %v5231_v5  ;;  %v643_v46 = vld [vmem:[%s5309_s10 + $0x488] sm:$0xff]  ;;  %4787 = vmatprep.subr.mxu0 %v2514_v26  ;;  %vm1719_vm10 = vcmp.eq.s32.totalorder %v6243_v40, %v5884_v12 }
 0x175   : > { %v662_v42 = vld [vmem:[%s5309_s10 + $0x520] sm:$0xff]  ;;  %935 = vst.msk [vmem:[#allocation2 + $0x5a0] sm:$0xff] %vm754_vm0, %v678_v41  ;;  %v627_v47 = vld [vmem:[%s5309_s10 + $0x408] sm:$0xff]  ;;  %v677_v49 = vld [vmem:[%s5309_s10 + $0x598] sm:$0xff]  ;;  %4169 = vmatmul.mubr.msk.f32.vlgmr.msra.gmra.mxu1 %vm2039_vm12, %v5231_v5  ;;  %4788 = vmatpush3.msra.mxu0 %v2498_v30  ;;  %vm2048_vm12 = vcmp.eq.s32.totalorder %v6319_v13, %v5818_v52 }
 0x176   : > { %919 = vst.msk [vmem:[#allocation2 + $0x520] sm:$0xff] %vm754_vm0, %v662_v42  ;;  %900 = vst.msk [vmem:[#allocation2 + $0x488] sm:$0xff] %vm754_vm0, %v643_v46  ;;  %v661_v50 = vld [vmem:[%s5309_s10 + $0x518] sm:$0xff]  ;;  %v642_v51 = vld [vmem:[%s5309_s10 + $0x480] sm:$0xff]  ;;  %4863 = vmatprep.subr.mxu1 %v2849_v31  ;;  %4109 = vmatprep.mubr.msk.f32.mxu0 %vm1713_vm13, %v5231_v5  ;;  %vm2047_vm13 = vcmp.eq.s32.totalorder %v6324_v16, %v5818_v52 }
 0x177   : > { %884 = vst.msk [vmem:[#allocation2 + $0x408] sm:$0xff] %vm754_vm0, %v627_v47  ;;  %934 = vst.msk [vmem:[#allocation2 + $0x598] sm:$0xff] %vm754_vm0, %v677_v49  ;;  %v626_v53 = vld [vmem:[%s5309_s10 + $0x400] sm:$0xff]  ;;  %v676_v58 = vld [vmem:[%s5309_s10 + $0x590] sm:$0xff]  ;;  %4864 = vmatpush3.msra.mxu1 %v2833_v38  ;;  %4170 = vmatprep.mubr.msk.f32.mxu1 %vm2042_vm15, %v5231_v5  ;;  %vm1720_vm15 = vcmp.eq.s32.totalorder %v6260_v48, %v5910_v23 }
 0x178   : > { %v2513_v57 = vld [vmem:[#allocation2 + $0x4e0] sm:$0xff]  ;;  %918 = vst.msk [vmem:[#allocation2 + $0x518] sm:$0xff] %vm754_vm0, %v661_v50  ;;  %899 = vst.msk [vmem:[#allocation2 + $0x480] sm:$0xff] %vm754_vm0, %v642_v51  ;;  %v2848_v60 = vld [vmem:[#allocation2 + $0x5f0] sm:$0xff]  ;;  %4110 = vmatmul.mubr.msk.f32.gmra.mxu0 %vm1712_vm14, %v5231_v5  ;;  %vm1721_vm14 = vcmp.eq.s32.totalorder %v6243_v40, %v5910_v23 }
 0x179   : > { %883 = vst.msk [vmem:[#allocation2 + $0x400] sm:$0xff] %vm754_vm0, %v626_v53  ;;  %v2497_v59 = vld [vmem:[#allocation2 + $0x460] sm:$0xff]  ;;  %933 = vst.msk [vmem:[#allocation2 + $0x590] sm:$0xff] %vm754_vm0, %v676_v58  ;;  %v2832_v55 = vld [vmem:[#allocation2 + $0x570] sm:$0xff]  ;;  %4789 = vmatprep.subr.mxu0 %v2513_v57  ;;  %4171 = vmatmul.mubr.msk.f32.gmra.mxu1 %vm2041_vm1, %v5231_v5  ;;  %vm2050_vm1 = vcmp.eq.s32.totalorder %v6319_v13, %v5864_v4 }
 0x17a   : > { %v660_v62 = vld [vmem:[%s5309_s10 + $0x510] sm:$0xff]  ;;  %v721_v56 = vld [vmem:[%s5309_s10 + $0x6f8] sm:$0xff]  ;;  %4790 = vmatpush3.msra.mxu0 %v2497_v59  ;;  %4865 = vmatprep.subr.mxu1 %v2848_v60  ;;  %v2847_v2 = vld [vmem:[#allocation2 + $0x5e8] sm:$0xff] }
 0x17b   : > { %917 = vst.msk [vmem:[#allocation2 + $0x510] sm:$0xff] %vm754_vm0, %v660_v62  ;;  %v2512_v63 = vld [vmem:[#allocation2 + $0x4d8] sm:$0xff]  ;;  %978 = vst.msk [vmem:[#allocation2 + $0x6f8] sm:$0xff] %vm754_vm0, %v721_v56  ;;  %4111 = vmatprep.mubr.msk.f32.mxu0 %vm1715_vm2, %v5231_v5  ;;  %4866 = vmatpush3.msra.mxu1 %v2832_v55  ;;  %v2831_v8 = vld [vmem:[#allocation2 + $0x568] sm:$0xff]  ;;  %vm2049_vm2 = vcmp.eq.s32.totalorder %v6324_v16, %v5864_v4 }
 0x17c   : > { %v2496_v0 = vld [vmem:[#allocation2 + $0x458] sm:$0xff]  ;;  %4112 = vmatmul.mubr.msk.f32.gmra.mxu0 %vm1714_vm3, %v5231_v5  ;;  %4172 = vmatprep.mubr.msk.f32.mxu1 %vm2044_vm4, %v5231_v5  ;;  %v2511_v9 = vld [vmem:[#allocation2 + $0x4d0] sm:$0xff]  ;;  %v2846_v11 = vld [vmem:[#allocation2 + $0x5e0] sm:$0xff]  ;;  %vm1723_vm3 = vcmp.eq.s32.totalorder %v6243_v40, %v5959_v45  ;;  %vm1722_vm4 = vcmp.eq.s32.totalorder %v6260_v48, %v5959_v45 }
 0x17d   : > { %v705_v7 = vld [vmem:[%s5309_s10 + $0x678] sm:$0xff]  ;;  %4791 = vmatprep.subr.mxu0 %v2512_v63  ;;  %4173 = vmatmul.mubr.msk.f32.gmra.mxu1 %vm2043_vm5, %v5231_v5  ;;  %v2495_v10 = vld [vmem:[#allocation2 + $0x450] sm:$0xff]  ;;  %v675_v14 = vld [vmem:[%s5309_s10 + $0x588] sm:$0xff]  ;;  %vm2052_vm5 = vcmp.eq.s32.totalorder %v6319_v13, %v5884_v12 }
 0x17e   : > { %962 = vst.msk [vmem:[#allocation2 + $0x678] sm:$0xff] %vm754_vm0, %v705_v7  ;;  %4792 = vmatpush3.msra.mxu0 %v2496_v0  ;;  %4867 = vmatprep.subr.mxu1 %v2847_v2  ;;  %v659_v15 = vld [vmem:[%s5309_s10 + $0x508] sm:$0xff]  ;;  %932 = vst.msk [vmem:[#allocation2 + $0x588] sm:$0xff] %vm754_vm0, %v675_v14  ;;  %v720_v20 = vld [vmem:[%s5309_s10 + $0x6f0] sm:$0xff] }
 0x17f   : > { %4113 = vmatprep.mubr.msk.f32.mxu0 %vm1717_vm6, %v5231_v5  ;;  %4868 = vmatpush3.msra.mxu1 %v2831_v8  ;;  %916 = vst.msk [vmem:[#allocation2 + $0x508] sm:$0xff] %vm754_vm0, %v659_v15  ;;  %v704_v21 = vld [vmem:[%s5309_s10 + $0x670] sm:$0xff]  ;;  %v674_v22 = vld [vmem:[%s5309_s10 + $0x580] sm:$0xff]  ;;  %v2510_v26 = vld [vmem:[#allocation2 + $0x4c8] sm:$0xff]  ;;  %vm2051_vm6 = vcmp.eq.s32.totalorder %v6324_v16, %v5884_v12 }
 0x180   : > { %4114 = vmatmul.mubr.msk.f32.gmra.mxu0 %vm1716_vm7, %v5231_v5  ;;  %4174 = vmatprep.mubr.msk.f32.mxu1 %vm2046_vm8, %v5231_v5  ;;  %v2830_v25 = vld [vmem:[#allocation2 + $0x560] sm:$0xff]  ;;  %977 = vst.msk [vmem:[#allocation2 + $0x6f0] sm:$0xff] %vm754_vm0, %v720_v20  ;;  %961 = vst.msk [vmem:[#allocation2 + $0x670] sm:$0xff] %vm754_vm0, %v704_v21  ;;  %v2494_v24 = vld [vmem:[#allocation2 + $0x448] sm:$0xff]  ;;  %vm1725_vm7 = vcmp.eq.s32.totalorder %v6243_v40, %v6005_v61  ;;  %vm1724_vm8 = vcmp.eq.s32.totalorder %v6260_v48, %v6005_v61 }
 0x181   : > { %931 = vst.msk [vmem:[#allocation2 + $0x580] sm:$0xff] %vm754_vm0, %v674_v22  ;;  %v658_v29 = vld [vmem:[%s5309_s10 + $0x500] sm:$0xff]  ;;  %4793 = vmatprep.subr.mxu0 %v2511_v9  ;;  %4175 = vmatmul.mubr.msk.f32.gmra.mxu1 %vm2045_vm9, %v5231_v5  ;;  %v2845_v30 = vld [vmem:[#allocation2 + $0x5d8] sm:$0xff]  ;;  %v719_v31 = vld [vmem:[%s5309_s10 + $0x6e8] sm:$0xff]  ;;  %vm2054_vm9 = vcmp.eq.s32.totalorder %v6319_v13, %v5910_v23 }
 0x182   : > { %915 = vst.msk [vmem:[#allocation2 + $0x500] sm:$0xff] %vm754_vm0, %v658_v29  ;;  %v703_v32 = vld [vmem:[%s5309_s10 + $0x668] sm:$0xff]  ;;  %4794 = vmatpush3.msra.mxu0 %v2495_v10  ;;  %4869 = vmatprep.subr.mxu1 %v2846_v11  ;;  %976 = vst.msk [vmem:[#allocation2 + $0x6e8] sm:$0xff] %vm754_vm0, %v719_v31  ;;  %v753_v33 = vld [vmem:[%s5309_s10 + $0x7f8] sm:$0xff] }
 0x183   : > { %960 = vst.msk [vmem:[#allocation2 + $0x668] sm:$0xff] %vm754_vm0, %v703_v32  ;;  %v737_v27 = vld [vmem:[%s5309_s10 + $0x778] sm:$0xff]  ;;  %v718_v34 = vld [vmem:[%s5309_s10 + $0x6e0] sm:$0xff]  ;;  %4115 = vmatprep.mubr.msk.f32.mxu0 %vm1719_vm10, %v5231_v5  ;;  %4870 = vmatpush3.msra.mxu1 %v2830_v25  ;;  %1010 = vst.msk [vmem:[#allocation2 + $0x7f8] sm:$0xff] %vm754_vm0, %v753_v33  ;;  %vm2053_vm10 = vcmp.eq.s32.totalorder %v6324_v16, %v5910_v23 }
 0x184   : > { %v2829_v37 = vld [vmem:[#allocation2 + $0x558] sm:$0xff]  ;;  %994 = vst.msk [vmem:[#allocation2 + $0x778] sm:$0xff] %vm754_vm0, %v737_v27  ;;  %975 = vst.msk [vmem:[#allocation2 + $0x6e0] sm:$0xff] %vm754_vm0, %v718_v34  ;;  %v702_v38 = vld [vmem:[%s5309_s10 + $0x660] sm:$0xff]  ;;  %4116 = vmatmul.mubr.msk.f32.gmra.mxu0 %vm1718_vm11, %v5231_v5  ;;  %4176 = vmatprep.mubr.msk.f32.mxu1 %vm2048_vm12, %v5231_v5  ;;  %vm1727_vm11 = vcmp.eq.s32.totalorder %v6243_v40, %v6025_v3  ;;  %vm1726_vm12 = vcmp.eq.s32.totalorder %v6260_v48, %v6025_v3 }
 0x185   : > { %v752_v41 = vld [vmem:[%s5309_s10 + $0x7f0] sm:$0xff]  ;;  %959 = vst.msk [vmem:[#allocation2 + $0x660] sm:$0xff] %vm754_vm0, %v702_v38  ;;  %v717_v46 = vld [vmem:[%s5309_s10 + $0x6d8] sm:$0xff]  ;;  %4795 = vmatprep.subr.mxu0 %v2510_v26  ;;  %4177 = vmatmul.mubr.msk.f32.gmra.mxu1 %vm2047_vm13, %v5231_v5  ;;  %v751_v49 = vld [vmem:[%s5309_s10 + $0x7e8] sm:$0xff]  ;;  %vm2056_vm13 = vcmp.eq.s32.totalorder %v6319_v13, %v5959_v45 }
 0x186   : > { %1009 = vst.msk [vmem:[#allocation2 + $0x7f0] sm:$0xff] %vm754_vm0, %v752_v41  ;;  %v736_v42 = vld [vmem:[%s5309_s10 + $0x770] sm:$0xff]  ;;  %v701_v47 = vld [vmem:[%s5309_s10 + $0x658] sm:$0xff]  ;;  %974 = vst.msk [vmem:[#allocation2 + $0x6d8] sm:$0xff] %vm754_vm0, %v717_v46  ;;  %4796 = vmatpush3.msra.mxu0 %v2494_v24  ;;  %4871 = vmatprep.subr.mxu1 %v2845_v30 }
 0x187   : > { %993 = vst.msk [vmem:[#allocation2 + $0x770] sm:$0xff] %vm754_vm0, %v736_v42  ;;  %958 = vst.msk [vmem:[#allocation2 + $0x658] sm:$0xff] %vm754_vm0, %v701_v47  ;;  %v735_v50 = vld [vmem:[%s5309_s10 + $0x768] sm:$0xff]  ;;  %v716_v51 = vld [vmem:[%s5309_s10 + $0x6d0] sm:$0xff]  ;;  %4117 = vmatprep.mubr.msk.f32.mxu0 %vm1721_vm14, %v5231_v5  ;;  %4872 = vmatpush3.msra.mxu1 %v2829_v37  ;;  %vm2055_vm14 = vcmp.eq.s32.totalorder %v6324_v16, %v5959_v45 }
 0x188   : > { %v2509_v53 = vld [vmem:[#allocation2 + $0x4c0] sm:$0xff]  ;;  %1008 = vst.msk [vmem:[#allocation2 + $0x7e8] sm:$0xff] %vm754_vm0, %v751_v49  ;;  %992 = vst.msk [vmem:[#allocation2 + $0x768] sm:$0xff] %vm754_vm0, %v735_v50  ;;  %v700_v57 = vld [vmem:[%s5309_s10 + $0x650] sm:$0xff]  ;;  %4118 = vmatmul.mubr.msk.f32.gmra.mxu0 %vm1720_vm15, %v5231_v5  ;;  %4178 = vmatprep.mubr.msk.f32.mxu1 %vm2050_vm1, %v5231_v5  ;;  %vm1729_vm15 = vcmp.eq.s32.totalorder %v6243_v40, %v6051_v17  ;;  %vm1728_vm1 = vcmp.eq.s32.totalorder %v6260_v48, %v6051_v17 }
 0x189   : > { %973 = vst.msk [vmem:[#allocation2 + $0x6d0] sm:$0xff] %vm754_vm0, %v716_v51  ;;  %v2493_v58 = vld [vmem:[#allocation2 + $0x440] sm:$0xff]  ;;  %v2844_v59 = vld [vmem:[#allocation2 + $0x5d0] sm:$0xff]  ;;  %957 = vst.msk [vmem:[#allocation2 + $0x650] sm:$0xff] %vm754_vm0, %v700_v57  ;;  %4797 = vmatprep.subr.mxu0 %v2509_v53  ;;  %4179 = vmatmul.mubr.msk.f32.gmra.mxu1 %vm2049_vm2, %v5231_v5  ;;  %vm2058_vm2 = vcmp.eq.s32.totalorder %v6319_v13, %v6005_v61 }
 0x18a   : > { %v2828_v60 = vld [vmem:[#allocation2 + $0x550] sm:$0xff]  ;;  %v750_v55 = vld [vmem:[%s5309_s10 + $0x7e0] sm:$0xff]  ;;  %v715_v56 = vld [vmem:[%s5309_s10 + $0x6c8] sm:$0xff]  ;;  %4798 = vmatpush3.msra.mxu0 %v2493_v58  ;;  %4873 = vmatprep.subr.mxu1 %v2844_v59 }
 0x18b   : > { %v734_v62 = vld [vmem:[%s5309_s10 + $0x760] sm:$0xff]  ;;  %1007 = vst.msk [vmem:[#allocation2 + $0x7e0] sm:$0xff] %vm754_vm0, %v750_v55  ;;  %v2508_v63 = vld [vmem:[#allocation2 + $0x4b8] sm:$0xff]  ;;  %972 = vst.msk [vmem:[#allocation2 + $0x6c8] sm:$0xff] %vm754_vm0, %v715_v56  ;;  %4119 = vmatprep.mubr.msk.f32.mxu0 %vm1723_vm3, %v5231_v5  ;;  %4874 = vmatpush3.msra.mxu1 %v2828_v60  ;;  %vm2057_vm3 = vcmp.eq.s32.totalorder %v6324_v16, %v6005_v61 }
 0x18c   : > { %991 = vst.msk [vmem:[#allocation2 + $0x760] sm:$0xff] %vm754_vm0, %v734_v62  ;;  %v2492_v0 = vld [vmem:[#allocation2 + $0x438] sm:$0xff]  ;;  %v2843_v2 = vld [vmem:[#allocation2 + $0x5c8] sm:$0xff]  ;;  %4120 = vmatmul.mubr.msk.f32.gmra.mxu0 %vm1722_vm4, %v5231_v5  ;;  %4180 = vmatprep.mubr.msk.f32.mxu1 %vm2052_vm5, %v5231_v5  ;;  %v2507_v9 = vld [vmem:[#allocation2 + $0x4b0] sm:$0xff]  ;;  %vm1731_vm4 = vcmp.eq.s32.totalorder %v6243_v40, %v6097_v36  ;;  %vm1730_vm5 = vcmp.eq.s32.totalorder %v6260_v48, %v6097_v36 }
 0x18d   : > { %v699_v7 = vld [vmem:[%s5309_s10 + $0x648] sm:$0xff]  ;;  %4799 = vmatprep.subr.mxu0 %v2508_v63  ;;  %4181 = vmatmul.mubr.msk.f32.gmra.mxu1 %vm2051_vm6, %v5231_v5  ;;  %v2491_v10 = vld [vmem:[#allocation2 + $0x430] sm:$0xff]  ;;  %v2842_v11 = vld [vmem:[#allocation2 + $0x5c0] sm:$0xff]  ;;  %vm2060_vm6 = vcmp.eq.s32.totalorder %v6319_v13, %v6025_v3 }
 0x18e   : > { %v2827_v8 = vld [vmem:[#allocation2 + $0x548] sm:$0xff]  ;;  %956 = vst.msk [vmem:[#allocation2 + $0x648] sm:$0xff] %vm754_vm0, %v699_v7  ;;  %4800 = vmatpush3.msra.mxu0 %v2492_v0  ;;  %4875 = vmatprep.subr.mxu1 %v2843_v2  ;;  %v749_v14 = vld [vmem:[%s5309_s10 + $0x7d8] sm:$0xff]  ;;  %v714_v20 = vld [vmem:[%s5309_s10 + $0x6c0] sm:$0xff] }
 0x18f   : > { %v733_v15 = vld [vmem:[%s5309_s10 + $0x758] sm:$0xff]  ;;  %4121 = vmatprep.mubr.msk.f32.mxu0 %vm1725_vm7, %v5231_v5  ;;  %4876 = vmatpush3.msra.mxu1 %v2827_v8  ;;  %1006 = vst.msk [vmem:[#allocation2 + $0x7d8] sm:$0xff] %vm754_vm0, %v749_v14  ;;  %v698_v21 = vld [vmem:[%s5309_s10 + $0x640] sm:$0xff]  ;;  %v748_v22 = vld [vmem:[%s5309_s10 + $0x7d0] sm:$0xff]  ;;  %vm2059_vm7 = vcmp.eq.s32.totalorder %v6324_v16, %v6025_v3 }
 0x190   : > { %990 = vst.msk [vmem:[#allocation2 + $0x758] sm:$0xff] %vm754_vm0, %v733_v15  ;;  %4122 = vmatmul.mubr.msk.f32.gmra.mxu0 %vm1724_vm8, %v5231_v5  ;;  %4182 = vmatprep.mubr.msk.f32.mxu1 %vm2054_vm9, %v5231_v5  ;;  %v2826_v25 = vld [vmem:[#allocation2 + $0x540] sm:$0xff]  ;;  %v2506_v26 = vld [vmem:[#allocation2 + $0x4a8] sm:$0xff]  ;;  %971 = vst.msk [vmem:[#allocation2 + $0x6c0] sm:$0xff] %vm754_vm0, %v714_v20  ;;  %vm1733_vm8 = vcmp.eq.s32.totalorder %v6243_v40, %v6142_v54  ;;  %vm1732_vm9 = vcmp.eq.s32.totalorder %v6260_v48, %v6142_v54 }
 0x191   : > { %955 = vst.msk [vmem:[#allocation2 + $0x640] sm:$0xff] %vm754_vm0, %v698_v21  ;;  %1005 = vst.msk [vmem:[#allocation2 + $0x7d0] sm:$0xff] %vm754_vm0, %v748_v22  ;;  %v732_v29 = vld [vmem:[%s5309_s10 + $0x750] sm:$0xff]  ;;  %4801 = vmatprep.subr.mxu0 %v2507_v9  ;;  %4183 = vmatmul.mubr.msk.f32.gmra.mxu1 %vm2053_vm10, %v5231_v5  ;;  %v2490_v24 = vld [vmem:[#allocation2 + $0x428] sm:$0xff]  ;;  %vm2062_vm10 = vcmp.eq.s32.totalorder %v6319_v13, %v6051_v17 }
 0x192   : > { %v2841_v30 = vld [vmem:[#allocation2 + $0x5b8] sm:$0xff]  ;;  %989 = vst.msk [vmem:[#allocation2 + $0x750] sm:$0xff] %vm754_vm0, %v732_v29  ;;  %4802 = vmatpush3.msra.mxu0 %v2491_v10  ;;  %4877 = vmatprep.subr.mxu1 %v2842_v11  ;;  %v747_v33 = vld [vmem:[%s5309_s10 + $0x7c8] sm:$0xff]  ;;  %v712_v34 = vld [vmem:[%s5309_s10 + $0x6b0] sm:$0xff] }
 0x193   : > { %v713_v31 = vld [vmem:[%s5309_s10 + $0x6b8] sm:$0xff]  ;;  %v731_v27 = vld [vmem:[%s5309_s10 + $0x748] sm:$0xff]  ;;  %4123 = vmatprep.mubr.msk.f32.mxu0 %vm1727_vm11, %v5231_v5  ;;  %4878 = vmatpush3.msra.mxu1 %v2826_v25  ;;  %1004 = vst.msk [vmem:[#allocation2 + $0x7c8] sm:$0xff] %vm754_vm0, %v747_v33  ;;  %969 = vst.msk [vmem:[#allocation2 + $0x6b0] sm:$0xff] %vm754_vm0, %v712_v34  ;;  %vm2061_vm11 = vcmp.eq.s32.totalorder %v6324_v16, %v6051_v17 }
 0x194   : > { %v697_v32 = vld [vmem:[%s5309_s10 + $0x638] sm:$0xff]  ;;  %970 = vst.msk [vmem:[#allocation2 + $0x6b8] sm:$0xff] %vm754_vm0, %v713_v31  ;;  %988 = vst.msk [vmem:[#allocation2 + $0x748] sm:$0xff] %vm754_vm0, %v731_v27  ;;  %v696_v38 = vld [vmem:[%s5309_s10 + $0x630] sm:$0xff]  ;;  %4124 = vmatmul.mubr.msk.f32.gmra.mxu0 %vm1726_vm12, %v5231_v5  ;;  %4184 = vmatprep.mubr.msk.f32.mxu1 %vm2056_vm13, %v5231_v5  ;;  %vm1735_vm12 = vcmp.eq.s32.totalorder %v6243_v40, %v6165_v1  ;;  %vm1734_vm13 = vcmp.eq.s32.totalorder %v6260_v48, %v6165_v1 }
 0x195   : > { %954 = vst.msk [vmem:[#allocation2 + $0x638] sm:$0xff] %vm754_vm0, %v697_v32  ;;  %v2825_v37 = vld [vmem:[#allocation2 + $0x538] sm:$0xff]  ;;  %v746_v41 = vld [vmem:[%s5309_s10 + $0x7c0] sm:$0xff]  ;;  %953 = vst.msk [vmem:[#allocation2 + $0x630] sm:$0xff] %vm754_vm0, %v696_v38  ;;  %4803 = vmatprep.subr.mxu0 %v2506_v26  ;;  %4185 = vmatmul.mubr.msk.f32.gmra.mxu1 %vm2055_vm14, %v5231_v5  ;;  %vm2064_vm14 = vcmp.eq.s32.totalorder %v6319_v13, %v6097_v36 }
 0x196   : > { %1003 = vst.msk [vmem:[#allocation2 + $0x7c0] sm:$0xff] %vm754_vm0, %v746_v41  ;;  %v730_v42 = vld [vmem:[%s5309_s10 + $0x740] sm:$0xff]  ;;  %v711_v46 = vld [vmem:[%s5309_s10 + $0x6a8] sm:$0xff]  ;;  %v745_v49 = vld [vmem:[%s5309_s10 + $0x7b8] sm:$0xff]  ;;  %4804 = vmatpush3.msra.mxu0 %v2490_v24  ;;  %4879 = vmatprep.subr.mxu1 %v2841_v30 }
 0x197   : > { %v695_v47 = vld [vmem:[%s5309_s10 + $0x628] sm:$0xff]  ;;  %987 = vst.msk [vmem:[#allocation2 + $0x740] sm:$0xff] %vm754_vm0, %v730_v42  ;;  %968 = vst.msk [vmem:[#allocation2 + $0x6a8] sm:$0xff] %vm754_vm0, %v711_v46  ;;  %v729_v50 = vld [vmem:[%s5309_s10 + $0x738] sm:$0xff]  ;;  %4125 = vmatprep.mubr.msk.f32.mxu0 %vm1729_vm15, %v5231_v5  ;;  %4880 = vmatpush3.msra.mxu1 %v2825_v37  ;;  %vm2063_vm15 = vcmp.eq.s32.totalorder %v6324_v16, %v6097_v36 }
 0x198   : > { %952 = vst.msk [vmem:[#allocation2 + $0x628] sm:$0xff] %vm754_vm0, %v695_v47  ;;  %v710_v51 = vld [vmem:[%s5309_s10 + $0x6a0] sm:$0xff]  ;;  %1002 = vst.msk [vmem:[#allocation2 + $0x7b8] sm:$0xff] %vm754_vm0, %v745_v49  ;;  %v2840_v59 = vld [vmem:[#allocation2 + $0x5b0] sm:$0xff]  ;;  %4126 = vmatmul.mubr.msk.f32.gmra.mxu0 %vm1728_vm1, %v5231_v5  ;;  %4186 = vmatprep.mubr.msk.f32.mxu1 %vm2058_vm2, %v5231_v5  ;;  %vm1737_vm1 = vcmp.eq.s32.totalorder %v6243_v40, %v6196_v19  ;;  %vm1736_vm2 = vcmp.eq.s32.totalorder %v6260_v48, %v6196_v19 }
 0x199   : > { %v2505_v53 = vld [vmem:[#allocation2 + $0x4a0] sm:$0xff]  ;;  %986 = vst.msk [vmem:[#allocation2 + $0x738] sm:$0xff] %vm754_vm0, %v729_v50  ;;  %967 = vst.msk [vmem:[#allocation2 + $0x6a0] sm:$0xff] %vm754_vm0, %v710_v51  ;;  %v2824_v60 = vld [vmem:[#allocation2 + $0x530] sm:$0xff]  ;;  %4187 = vmatmul.mubr.msk.f32.gmra.mxu1 %vm2057_vm3, %v5231_v5  ;;  %4881 = vmatprep.subr.mxu1 %v2840_v59  ;;  %vm2066_vm3 = vcmp.eq.s32.totalorder %v6319_v13, %v6142_v54 }
 0x19a   : > { %v694_v57 = vld [vmem:[%s5309_s10 + $0x620] sm:$0xff]  ;;  %v744_v55 = vld [vmem:[%s5309_s10 + $0x7b0] sm:$0xff]  ;;  %4805 = vmatprep.subr.mxu0 %v2505_v53  ;;  %v709_v56 = vld [vmem:[%s5309_s10 + $0x698] sm:$0xff]  ;;  %4127 = vmatprep.mubr.msk.f32.mxu0 %vm1731_vm4, %v5231_v5  ;;  %vm2065_vm4 = vcmp.eq.s32.totalorder %v6324_v16, %v6142_v54 }
 0x19b   : > { %v2489_v58 = vld [vmem:[#allocation2 + $0x420] sm:$0xff]  ;;  %951 = vst.msk [vmem:[#allocation2 + $0x620] sm:$0xff] %vm754_vm0, %v694_v57  ;;  %v728_v62 = vld [vmem:[%s5309_s10 + $0x730] sm:$0xff]  ;;  %1001 = vst.msk [vmem:[#allocation2 + $0x7b0] sm:$0xff] %vm754_vm0, %v744_v55  ;;  %4882 = vmatpush3.msra.mxu1 %v2824_v60  ;;  %4188 = vmatprep.mubr.msk.f32.mxu1 %vm2060_vm6, %v5231_v5  ;;  %vm2068_vm6 = vcmp.eq.s32.totalorder %v6319_v13, %v6165_v1 }
 0x19c   : > { %985 = vst.msk [vmem:[#allocation2 + $0x730] sm:$0xff] %vm754_vm0, %v728_v62  ;;  %4806 = vmatpush3.msra.mxu0 %v2489_v58  ;;  %v2504_v63 = vld [vmem:[#allocation2 + $0x498] sm:$0xff]  ;;  %966 = vst.msk [vmem:[#allocation2 + $0x698] sm:$0xff] %vm754_vm0, %v709_v56  ;;  %v2839_v2 = vld [vmem:[#allocation2 + $0x5a8] sm:$0xff] }
 0x19d   : > { %v2488_v0 = vld [vmem:[#allocation2 + $0x418] sm:$0xff]  ;;  %4128 = vmatmul.mubr.msk.f32.gmra.mxu0 %vm1730_vm5, %v5231_v5  ;;  %v2823_v8 = vld [vmem:[#allocation2 + $0x528] sm:$0xff]  ;;  %4807 = vmatprep.subr.mxu0 %v2504_v63  ;;  %v2503_v9 = vld [vmem:[#allocation2 + $0x490] sm:$0xff] }
 0x19e   : > { %v693_v7 = vld [vmem:[%s5309_s10 + $0x618] sm:$0xff]  ;;  %4189 = vmatmul.mubr.msk.f32.gmra.mxu1 %vm2059_vm7, %v5231_v5  ;;  %v2487_v10 = vld [vmem:[#allocation2 + $0x410] sm:$0xff]  ;;  %v4200_v11 = vld [vmem:[%s5304_s8 + $0x8] sm:$0x3]  ;;  %4808 = vmatpush3.msra.mxu0 %v2488_v0 }
 0x19f   : > { %950 = vst.msk [vmem:[#allocation2 + $0x618] sm:$0xff] %vm754_vm0, %v693_v7  ;;  %4883 = vmatprep.subr.mxu1 %v2839_v2  ;;  %v2838_v14 = vld [vmem:[#allocation2 + $0x5a0] sm:$0xff]  ;;  %v743_v15 = vld [vmem:[%s5309_s10 + $0x7a8] sm:$0xff]  ;;  %4129 = vmatprep.mubr.msk.f32.mxu0 %vm1733_vm8, %v5231_v5  ;;  %v708_v21 = vld [vmem:[%s5309_s10 + $0x690] sm:$0xff]  ;;  %v2363_v24 = vsub.s32 %v4200_v11, %v5680_v39  ;;  %vm2067_vm8 = vcmp.eq.s32.totalorder %v6324_v16, %v6165_v1 }
 0x1a0   : > { %v727_v20 = vld [vmem:[%s5309_s10 + $0x728] sm:$0xff]  ;;  %4884 = vmatpush3.msra.mxu1 %v2823_v8  ;;  %1000 = vst.msk [vmem:[#allocation2 + $0x7a8] sm:$0xff] %vm754_vm0, %v743_v15  ;;  %v692_v22 = vld [vmem:[%s5309_s10 + $0x610] sm:$0xff]  ;;  %v742_v25 = vld [vmem:[%s5309_s10 + $0x7a0] sm:$0xff]  ;;  %4190 = vmatprep.mubr.msk.f32.mxu1 %vm2062_vm10, %v5231_v5 }
 0x1a1   : > { %984 = vst.msk [vmem:[#allocation2 + $0x728] sm:$0xff] %vm754_vm0, %v727_v20  ;;  %4130 = vmatmul.mubr.msk.f32.gmra.mxu0 %vm1732_vm9, %v5231_v5  ;;  %v2822_v26 = vld [vmem:[#allocation2 + $0x520] sm:$0xff]  ;;  %v2502_v29 = vld [vmem:[#allocation2 + $0x488] sm:$0xff]  ;;  %965 = vst.msk [vmem:[#allocation2 + $0x690] sm:$0xff] %vm754_vm0, %v708_v21  ;;  %4809 = vmatprep.subr.mxu0 %v2503_v9  ;;  %v6785_v47 = vrot.slane %v2363_v24, %v5689_v43  ;;  %v6799_v50 = vrot.slane %v2363_v24, %v5692_v44 }
 0x1a2   : > { %949 = vst.msk [vmem:[#allocation2 + $0x610] sm:$0xff] %vm754_vm0, %v692_v22  ;;  %999 = vst.msk [vmem:[#allocation2 + $0x7a0] sm:$0xff] %vm754_vm0, %v742_v25  ;;  %v726_v30 = vld [vmem:[%s5309_s10 + $0x720] sm:$0xff]  ;;  %4191 = vmatmul.mubr.msk.f32.gmra.mxu1 %vm2061_vm11, %v5231_v5  ;;  %v2486_v31 = vld [vmem:[#allocation2 + $0x408] sm:$0xff]  ;;  %4810 = vmatpush3.msra.mxu0 %v2487_v10  ;;  %vm2069_vm11 = vcmp.eq.s32.totalorder %v6324_v16, %v6196_v19 }
 0x1a3   : > { %983 = vst.msk [vmem:[#allocation2 + $0x720] sm:$0xff] %vm754_vm0, %v726_v30  ;;  %v707_v32 = vld [vmem:[%s5309_s10 + $0x688] sm:$0xff]  ;;  %4885 = vmatprep.subr.mxu1 %v2838_v14  ;;  %v741_v27 = vld [vmem:[%s5309_s10 + $0x798] sm:$0xff]  ;;  %v706_v37 = vld [vmem:[%s5309_s10 + $0x680] sm:$0xff]  ;;  %4131 = vmatprep.mubr.msk.f32.mxu0 %vm1735_vm12, %v5231_v5  ;;  %vm2373_vm5 = vcmp.eq.s32.totalorder %v6785_v47, %v5675_v28  ;;  %vm2372_vm7 = vcmp.eq.s32.totalorder %v6799_v50, %v5675_v28 }
 0x1a4   : > { %v691_v33 = vld [vmem:[%s5309_s10 + $0x608] sm:$0xff]  ;;  %964 = vst.msk [vmem:[#allocation2 + $0x688] sm:$0xff] %vm754_vm0, %v707_v32  ;;  %v725_v34 = vld [vmem:[%s5309_s10 + $0x718] sm:$0xff]  ;;  %4886 = vmatpush3.msra.mxu1 %v2822_v26  ;;  %998 = vst.msk [vmem:[#allocation2 + $0x798] sm:$0xff] %vm754_vm0, %v741_v27  ;;  %4192 = vmatprep.mubr.msk.f32.mxu1 %vm2064_vm14, %v5231_v5  ;;  %vm2375_vm9 = vcmp.eq.s32.totalorder %v6785_v47, %v5740_v6  ;;  %vm2374_vm10 = vcmp.eq.s32.totalorder %v6799_v50, %v5740_v6 }
 0x1a5   : > { %948 = vst.msk [vmem:[#allocation2 + $0x608] sm:$0xff] %vm754_vm0, %v691_v33  ;;  %v2837_v38 = vld [vmem:[#allocation2 + $0x598] sm:$0xff]  ;;  %982 = vst.msk [vmem:[#allocation2 + $0x718] sm:$0xff] %vm754_vm0, %v725_v34  ;;  %v690_v41 = vld [vmem:[%s5309_s10 + $0x600] sm:$0xff]  ;;  %4132 = vmatmul.mubr.msk.f32.gmra.mxu0 %vm1734_vm13, %v5231_v5  ;;  %4811 = vmatprep.subr.mxu0 %v2502_v29  ;;  %vm2377_vm12 = vcmp.eq.s32.totalorder %v6785_v47, %v5753_v18  ;;  %vm2376_vm13 = vcmp.eq.s32.totalorder %v6799_v50, %v5753_v18 }
 0x1a6   : > { %963 = vst.msk [vmem:[#allocation2 + $0x680] sm:$0xff] %vm754_vm0, %v706_v37  ;;  %v740_v42 = vld [vmem:[%s5309_s10 + $0x790] sm:$0xff]  ;;  %v2821_v46 = vld [vmem:[#allocation2 + $0x518] sm:$0xff]  ;;  %947 = vst.msk [vmem:[#allocation2 + $0x600] sm:$0xff] %vm754_vm0, %v690_v41  ;;  %4193 = vmatmul.mubr.msk.f32.gmra.mxu1 %vm2063_vm15, %v5231_v5  ;;  %4812 = vmatpush3.msra.mxu0 %v2486_v31 }
 0x1a7   : > { %997 = vst.msk [vmem:[#allocation2 + $0x790] sm:$0xff] %vm754_vm0, %v740_v42  ;;  %v724_v49 = vld [vmem:[%s5309_s10 + $0x710] sm:$0xff]  ;;  %v739_v51 = vld [vmem:[%s5309_s10 + $0x788] sm:$0xff]  ;;  %4887 = vmatprep.subr.mxu1 %v2837_v38  ;;  %v2501_v57 = vld [vmem:[#allocation2 + $0x480] sm:$0xff]  ;;  %4133 = vmatprep.mubr.msk.f32.mxu0 %vm1737_vm1, %v5231_v5  ;;  %vm2379_vm1 = vcmp.eq.s32.totalorder %v6785_v47, %v5775_v35 }
 0x1a8   : > { %981 = vst.msk [vmem:[#allocation2 + $0x710] sm:$0xff] %vm754_vm0, %v724_v49  ;;  %v723_v53 = vld [vmem:[%s5309_s10 + $0x708] sm:$0xff]  ;;  %996 = vst.msk [vmem:[#allocation2 + $0x788] sm:$0xff] %vm754_vm0, %v739_v51  ;;  %v738_v59 = vld [vmem:[%s5309_s10 + $0x780] sm:$0xff]  ;;  %4888 = vmatpush3.msra.mxu1 %v2821_v46  ;;  %4194 = vmatprep.mubr.msk.f32.mxu1 %vm2066_vm3, %v5231_v5 }
 0x1a9   : > { %v4265_v58 = vld [vmem:[%s5304_s8 + $0xa] sm:$0x3]  ;;  %980 = vst.msk [vmem:[#allocation2 + $0x708] sm:$0xff] %vm754_vm0, %v723_v53  ;;  %v2485_v60 = vld [vmem:[#allocation2 + $0x400] sm:$0xff]  ;;  %v2836_v55 = vld [vmem:[#allocation2 + $0x590] sm:$0xff]  ;;  %4134 = vmatmul.mubr.msk.f32.gmra.mxu0 %vm1736_vm2, %v5231_v5  ;;  %4813 = vmatprep.subr.mxu0 %v2501_v57  ;;  %vm2378_vm2 = vcmp.eq.s32.totalorder %v6799_v50, %v5775_v35 }
 0x1aa   : > { %995 = vst.msk [vmem:[#allocation2 + $0x780] sm:$0xff] %vm754_vm0, %v738_v59  ;;  %v2820_v40 = vld [vmem:[#allocation2 + $0x510] sm:$0xff]  ;;  %v722_v62 = vld [vmem:[%s5309_s10 + $0x700] sm:$0xff]  ;;  %4195 = vmatmul.mubr.msk.f32.gmra.mxu1 %vm2065_vm4, %v5231_v5  ;;  %v2696_v48 = vsub.s32 %v4265_v58, %v5680_v39  ;;  %4814 = vmatpush3.msra.mxu0 %v2485_v60  ;;  %v3182_v56 = vld [vmem:[#allocation2 + $0x6f8] sm:$0xff] }
 0x1ab   : > { %979 = vst.msk [vmem:[#allocation2 + $0x700] sm:$0xff] %vm754_vm0, %v722_v62  ;;  %4889 = vmatprep.subr.mxu1 %v2836_v55  ;;  %4233 = vmatprep.mubr.msk.f32.mxu0 %vm2373_vm5, %v5231_v5  ;;  %v3166_v63 = vld [vmem:[#allocation2 + $0x678] sm:$0xff]  ;;  %v2835_v0 = vld [vmem:[#allocation2 + $0x588] sm:$0xff]  ;;  %vm2070_vm0 = vcmp.eq.s32.totalorder %v6319_v13, %v6196_v19  ;;  %v3181_v8 = vld [vmem:[#allocation2 + $0x6f0] sm:$0xff]  ;;  %vm2381_vm5 = vcmp.eq.s32.totalorder %v6785_v47, %v5818_v52 }
 0x1ac   : > { %4890 = vmatpush3.msra.mxu1 %v2820_v40  ;;  %4196 = vmatprep.mubr.msk.f32.mxu1 %vm2068_vm6, %v5231_v5  ;;  %v2819_v2 = vld [vmem:[#allocation2 + $0x508] sm:$0xff]  ;;  %v6849_v7 = vrot.slane %v2696_v48, %v5689_v43  ;;  %v6854_v9 = vrot.slane %v2696_v48, %v5692_v44  ;;  %v3165_v10 = vld [vmem:[#allocation2 + $0x670] sm:$0xff]  ;;  %v2834_v13 = vld [vmem:[#allocation2 + $0x580] sm:$0xff]  ;;  %vm2380_vm6 = vcmp.eq.s32.totalorder %v6799_v50, %v5818_v52 }
 0x1ad   : > { %4234 = vmatmul.mubr.msk.f32.vlgmr.msra.gmra.mxu0 %vm2372_vm7, %v5231_v5  ;;  %4943 = vmatprep.subr.mxu0 %v3182_v56  ;;  %v2818_v11 = vld [vmem:[#allocation2 + $0x500] sm:$0xff]  ;;  %v3180_v16 = vld [vmem:[#allocation2 + $0x6e8] sm:$0xff]  ;;  %v3515_v15 = vld [vmem:[#allocation2 + $0x7f8] sm:$0xff] }
 0x1ae   : > { %4197 = vmatmul.mubr.msk.f32.gmra.mxu1 %vm2067_vm8, %v5231_v5  ;;  %4944 = vmatpush3.msra.mxu0 %v3166_v63  ;;  %vm2706_vm14 = vcmp.eq.s32.totalorder %v6849_v7, %v5675_v28  ;;  %vm2705_vm15 = vcmp.eq.s32.totalorder %v6854_v9, %v5675_v28  ;;  %v3164_v14 = vld [vmem:[#allocation2 + $0x668] sm:$0xff]  ;;  %v3499_v20 = vld [vmem:[#allocation2 + $0x778] sm:$0xff]  ;;  %vm2708_vm3 = vcmp.eq.s32.totalorder %v6849_v7, %v5740_v6  ;;  %v3179_v21 = vld [vmem:[#allocation2 + $0x6e0] sm:$0xff] }
 0x1af   : > { %4891 = vmatprep.subr.mxu1 %v2835_v0  ;;  %4235 = vmatprep.mubr.msk.f32.mxu0 %vm2375_vm9, %v5231_v5  ;;  %vm2707_vm4 = vcmp.eq.s32.totalorder %v6854_v9, %v5740_v6  ;;  %v3163_v22 = vld [vmem:[#allocation2 + $0x660] sm:$0xff]  ;;  %v3514_v25 = vld [vmem:[#allocation2 + $0x7f0] sm:$0xff]  ;;  %vm2710_vm7 = vcmp.eq.s32.totalorder %v6849_v7, %v5753_v18  ;;  %v3178_v29 = vld [vmem:[#allocation2 + $0x6d8] sm:$0xff]  ;;  %vm2709_vm8 = vcmp.eq.s32.totalorder %v6854_v9, %v5753_v18 }
 0x1b0   : > { %4892 = vmatpush3.msra.mxu1 %v2819_v2  ;;  %4198 = vmatprep.mubr.msk.f32.mxu1 %vm2070_vm0, %v5231_v5  ;;  %v3498_v26 = vld [vmem:[#allocation2 + $0x770] sm:$0xff]  ;;  %v3162_v24 = vld [vmem:[#allocation2 + $0x658] sm:$0xff]  ;;  %v3513_v30 = vld [vmem:[#allocation2 + $0x7e8] sm:$0xff]  ;;  %vm2383_vm9 = vcmp.eq.s32.totalorder %v6785_v47, %v5864_v4  ;;  %vm2382_vm0 = vcmp.eq.s32.totalorder %v6799_v50, %v5864_v4 }
 0x1b1   : > { %4236 = vmatmul.mubr.msk.f32.gmra.mxu0 %vm2374_vm10, %v5231_v5  ;;  %4945 = vmatprep.subr.mxu0 %v3181_v8  ;;  %v3497_v31 = vld [vmem:[#allocation2 + $0x768] sm:$0xff]  ;;  %vm2712_vm10 = vcmp.eq.s32.totalorder %v6849_v7, %v5775_v35  ;;  %v3177_v32 = vld [vmem:[#allocation2 + $0x6d0] sm:$0xff]  ;;  %v3512_v27 = vld [vmem:[#allocation2 + $0x7e0] sm:$0xff] }
 0x1b2   : > { %4199 = vmatmul.mubr.msk.f32.gmra.mxu1 %vm2069_vm11, %v5231_v5  ;;  %4946 = vmatpush3.msra.mxu0 %v3165_v10  ;;  %vm2711_vm11 = vcmp.eq.s32.totalorder %v6854_v9, %v5775_v35  ;;  %v3161_v33 = vld [vmem:[#allocation2 + $0x650] sm:$0xff]  ;;  %v3496_v34 = vld [vmem:[#allocation2 + $0x760] sm:$0xff]  ;;  %v3176_v37 = vld [vmem:[#allocation2 + $0x6c8] sm:$0xff] }
 0x1b3   : > { %4893 = vmatprep.subr.mxu1 %v2834_v13  ;;  %4237 = vmatprep.mubr.msk.f32.mxu0 %vm2377_vm12, %v5231_v5  ;;  %vm2385_vm12 = vcmp.eq.s32.totalorder %v6785_v47, %v5884_v12  ;;  %v3160_v38 = vld [vmem:[#allocation2 + $0x648] sm:$0xff]  ;;  %v3511_v41 = vld [vmem:[#allocation2 + $0x7d8] sm:$0xff]  ;;  %v3175_v46 = vld [vmem:[#allocation2 + $0x6c0] sm:$0xff] }
 0x1b4   : > { %4894 = vmatpush3.msra.mxu1 %v2818_v11  ;;  %4298 = vmatprep.mubr.msk.f32.mxu1 %vm2706_vm14, %v5231_v5  ;;  %vm2714_vm14 = vcmp.eq.s32.totalorder %v6849_v7, %v5818_v52  ;;  %v3495_v42 = vld [vmem:[#allocation2 + $0x758] sm:$0xff]  ;;  %v3159_v49 = vld [vmem:[#allocation2 + $0x640] sm:$0xff]  ;;  %v3510_v51 = vld [vmem:[#allocation2 + $0x7d0] sm:$0xff] }
 0x1b5   : > { %4238 = vmatmul.mubr.msk.f32.gmra.mxu0 %vm2376_vm13, %v5231_v5  ;;  %4947 = vmatprep.subr.mxu0 %v3180_v16  ;;  %vm2384_vm13 = vcmp.eq.s32.totalorder %v6799_v50, %v5884_v12  ;;  %v3494_v53 = vld [vmem:[#allocation2 + $0x750] sm:$0xff]  ;;  %v3174_v57 = vld [vmem:[#allocation2 + $0x6b8] sm:$0xff]  ;;  %v3509_v59 = vld [vmem:[#allocation2 + $0x7c8] sm:$0xff] }
 0x1b6   : > { %4299 = vmatmul.mubr.msk.f32.vlgmr.msra.gmra.mxu1 %vm2705_vm15, %v5231_v5  ;;  %4948 = vmatpush3.msra.mxu0 %v3164_v14  ;;  %vm2713_vm15 = vcmp.eq.s32.totalorder %v6854_v9, %v5818_v52  ;;  %v3158_v58 = vld [vmem:[#allocation2 + $0x638] sm:$0xff]  ;;  %v3493_v60 = vld [vmem:[#allocation2 + $0x748] sm:$0xff]  ;;  %v3173_v55 = vld [vmem:[#allocation2 + $0x6b0] sm:$0xff] }
 0x1b7   : > { %5023 = vmatprep.subr.mxu1 %v3515_v15  ;;  %4239 = vmatprep.mubr.msk.f32.mxu0 %vm2379_vm1, %v5231_v5  ;;  %vm2387_vm1 = vcmp.eq.s32.totalorder %v6785_v47, %v5910_v23  ;;  %v3157_v40 = vld [vmem:[#allocation2 + $0x630] sm:$0xff]  ;;  %v3508_v62 = vld [vmem:[#allocation2 + $0x7c0] sm:$0xff]  ;;  %v3172_v56 = vld [vmem:[#allocation2 + $0x6a8] sm:$0xff] }
 0x1b8   : > { %5024 = vmatpush3.msra.mxu1 %v3499_v20  ;;  %4300 = vmatprep.mubr.msk.f32.mxu1 %vm2708_vm3, %v5231_v5  ;;  %vm2716_vm3 = vcmp.eq.s32.totalorder %v6849_v7, %v5864_v4  ;;  %v3492_v48 = vld [vmem:[#allocation2 + $0x740] sm:$0xff]  ;;  %v3156_v63 = vld [vmem:[#allocation2 + $0x628] sm:$0xff]  ;;  %v3507_v0 = vld [vmem:[#allocation2 + $0x7b8] sm:$0xff] }
 0x1b9   : > { %4240 = vmatmul.mubr.msk.f32.gmra.mxu0 %vm2378_vm2, %v5231_v5  ;;  %4949 = vmatprep.subr.mxu0 %v3179_v21  ;;  %vm2386_vm2 = vcmp.eq.s32.totalorder %v6799_v50, %v5910_v23  ;;  %v3491_v2 = vld [vmem:[#allocation2 + $0x738] sm:$0xff]  ;;  %v3171_v8 = vld [vmem:[#allocation2 + $0x6a0] sm:$0xff]  ;;  %v3506_v13 = vld [vmem:[#allocation2 + $0x7b0] sm:$0xff] }
 0x1ba   : > { %4301 = vmatmul.mubr.msk.f32.gmra.mxu1 %vm2707_vm4, %v5231_v5  ;;  %4950 = vmatpush3.msra.mxu0 %v3163_v22  ;;  %vm2715_vm4 = vcmp.eq.s32.totalorder %v6854_v9, %v5864_v4  ;;  %v3155_v10 = vld [vmem:[#allocation2 + $0x620] sm:$0xff]  ;;  %v3490_v11 = vld [vmem:[#allocation2 + $0x730] sm:$0xff]  ;;  %v3170_v16 = vld [vmem:[#allocation2 + $0x698] sm:$0xff] }
 0x1bb   : > { %5025 = vmatprep.subr.mxu1 %v3514_v25  ;;  %4241 = vmatprep.mubr.msk.f32.mxu0 %vm2381_vm5, %v5231_v5  ;;  %vm2389_vm5 = vcmp.eq.s32.totalorder %v6785_v47, %v5959_v45  ;;  %v3154_v14 = vld [vmem:[#allocation2 + $0x618] sm:$0xff]  ;;  %v3505_v15 = vld [vmem:[#allocation2 + $0x7a8] sm:$0xff]  ;;  %v3169_v22 = vld [vmem:[#allocation2 + $0x690] sm:$0xff] }
 0x1bc   : > { %5026 = vmatpush3.msra.mxu1 %v3498_v26  ;;  %4302 = vmatprep.mubr.msk.f32.mxu1 %vm2710_vm7, %v5231_v5  ;;  %vm2718_vm7 = vcmp.eq.s32.totalorder %v6849_v7, %v5884_v12  ;;  %v3489_v20 = vld [vmem:[#allocation2 + $0x728] sm:$0xff]  ;;  %v3153_v25 = vld [vmem:[#allocation2 + $0x610] sm:$0xff]  ;;  %v3504_v26 = vld [vmem:[#allocation2 + $0x7a0] sm:$0xff] }
 0x1bd   : > { %4242 = vmatmul.mubr.msk.f32.gmra.mxu0 %vm2380_vm6, %v5231_v5  ;;  %4951 = vmatprep.subr.mxu0 %v3178_v29  ;;  %vm2388_vm6 = vcmp.eq.s32.totalorder %v6799_v50, %v5959_v45  ;;  %v4330_v21 = vld [vmem:[%s5304_s8 + $0xc] sm:$0x3]  ;;  %v3488_v29 = vld [vmem:[#allocation2 + $0x720] sm:$0xff] }
 0x1be   : > { %4303 = vmatmul.mubr.msk.f32.gmra.mxu1 %vm2709_vm8, %v5231_v5  ;;  %4952 = vmatpush3.msra.mxu0 %v3162_v24  ;;  %vm2717_vm8 = vcmp.eq.s32.totalorder %v6854_v9, %v5884_v12  ;;  %v3029_v24 = vsub.s32 %v4330_v21, %v5680_v39 }
 0x1bf   : > { %5027 = vmatprep.subr.mxu1 %v3513_v30  ;;  %4243 = vmatprep.mubr.msk.f32.mxu0 %vm2383_vm9, %v5231_v5  ;;  %vm2391_vm9 = vcmp.eq.s32.totalorder %v6785_v47, %v6005_v61  ;;  %v3168_v30 = vld [vmem:[#allocation2 + $0x688] sm:$0xff] }
 0x1c0   : > { %5028 = vmatpush3.msra.mxu1 %v3497_v31  ;;  %4304 = vmatprep.mubr.msk.f32.mxu1 %vm2712_vm10, %v5231_v5  ;;  %vm2720_vm10 = vcmp.eq.s32.totalorder %v6849_v7, %v5910_v23  ;;  %v3152_v31 = vld [vmem:[#allocation2 + $0x608] sm:$0xff] }
 0x1c1   : > { %4244 = vmatmul.mubr.msk.f32.gmra.mxu0 %vm2382_vm0, %v5231_v5  ;;  %4953 = vmatprep.subr.mxu0 %v3177_v32  ;;  %vm2390_vm0 = vcmp.eq.s32.totalorder %v6799_v50, %v6005_v61  ;;  %v3503_v32 = vld [vmem:[#allocation2 + $0x798] sm:$0xff] }
 0x1c2   : > { %4305 = vmatmul.mubr.msk.f32.gmra.mxu1 %vm2711_vm11, %v5231_v5  ;;  %4954 = vmatpush3.msra.mxu0 %v3161_v33  ;;  %vm2719_vm11 = vcmp.eq.s32.totalorder %v6854_v9, %v5910_v23  ;;  %v3487_v33 = vld [vmem:[#allocation2 + $0x718] sm:$0xff] }
 0x1c3   : > { %5029 = vmatprep.subr.mxu1 %v3512_v27  ;;  %4245 = vmatprep.mubr.msk.f32.mxu0 %vm2385_vm12, %v5231_v5  ;;  %vm2393_vm12 = vcmp.eq.s32.totalorder %v6785_v47, %v6025_v3  ;;  %v7020_v27 = vrot.slane %v3029_v24, %v5689_v43 }
 0x1c4   : > { %5030 = vmatpush3.msra.mxu1 %v3496_v34  ;;  %4306 = vmatprep.mubr.msk.f32.mxu1 %vm2714_vm14, %v5231_v5  ;;  %vm2722_vm14 = vcmp.eq.s32.totalorder %v6849_v7, %v5959_v45  ;;  %v4395_v34 = vld [vmem:[%s5304_s8 + $0xe] sm:$0x3] }
 0x1c5   : > { %4246 = vmatmul.mubr.msk.f32.gmra.mxu0 %vm2384_vm13, %v5231_v5  ;;  %4955 = vmatprep.subr.mxu0 %v3176_v37  ;;  %vm2392_vm13 = vcmp.eq.s32.totalorder %v6799_v50, %v6025_v3  ;;  %v7029_v37 = vrot.slane %v3029_v24, %v5692_v44 }
 0x1c6   : > { %4307 = vmatmul.mubr.msk.f32.gmra.mxu1 %vm2713_vm15, %v5231_v5  ;;  %4956 = vmatpush3.msra.mxu0 %v3160_v38  ;;  %vm2721_vm15 = vcmp.eq.s32.totalorder %v6854_v9, %v5959_v45  ;;  %v3151_v38 = vld [vmem:[#allocation2 + $0x600] sm:$0xff] }
 0x1c7   : > { %5031 = vmatprep.subr.mxu1 %v3511_v41  ;;  %4247 = vmatprep.mubr.msk.f32.mxu0 %vm2387_vm1, %v5231_v5  ;;  %vm2395_vm1 = vcmp.eq.s32.totalorder %v6785_v47, %v6051_v17  ;;  %v3502_v41 = vld [vmem:[#allocation2 + $0x790] sm:$0xff] }
 0x1c8   : > { %5032 = vmatpush3.msra.mxu1 %v3495_v42  ;;  %4308 = vmatprep.mubr.msk.f32.mxu1 %vm2716_vm3, %v5231_v5  ;;  %vm2724_vm3 = vcmp.eq.s32.totalorder %v6849_v7, %v6005_v61  ;;  %v3362_v42 = vsub.s32 %v4395_v34, %v5680_v39  ;;  %v3501_v39 = vld [vmem:[#allocation2 + $0x788] sm:$0xff] }
 0x1c9   : > { %4248 = vmatmul.mubr.msk.f32.gmra.mxu0 %vm2386_vm2, %v5231_v5  ;;  %4957 = vmatprep.subr.mxu0 %v3175_v46  ;;  %vm2394_vm2 = vcmp.eq.s32.totalorder %v6799_v50, %v6051_v17 }
 0x1ca   : > { %4309 = vmatmul.mubr.msk.f32.gmra.mxu1 %vm2715_vm4, %v5231_v5  ;;  %4958 = vmatpush3.msra.mxu0 %v3159_v49  ;;  %vm2723_vm4 = vcmp.eq.s32.totalorder %v6854_v9, %v6005_v61  ;;  %v3485_v49 = vld [vmem:[#allocation2 + $0x708] sm:$0xff] }
 0x1cb   : > { %5033 = vmatprep.subr.mxu1 %v3510_v51  ;;  %4249 = vmatprep.mubr.msk.f32.mxu0 %vm2389_vm5, %v5231_v5  ;;  %vm2397_vm5 = vcmp.eq.s32.totalorder %v6785_v47, %v6097_v36  ;;  %v7050_v51 = vrot.slane %v3362_v42, %v5689_v43  ;;  %v3484_v43 = vld [vmem:[#allocation2 + $0x700] sm:$0xff] }
 0x1cc   : > { %5034 = vmatpush3.msra.mxu1 %v3494_v53  ;;  %4310 = vmatprep.mubr.msk.f32.mxu1 %vm2718_vm7, %v5231_v5  ;;  %vm2726_vm7 = vcmp.eq.s32.totalorder %v6849_v7, %v6025_v3  ;;  %v3500_v53 = vld [vmem:[#allocation2 + $0x780] sm:$0xff] }
 0x1cd   : > { %4250 = vmatmul.mubr.msk.f32.gmra.mxu0 %vm2388_vm6, %v5231_v5  ;;  %4959 = vmatprep.subr.mxu0 %v3174_v57  ;;  %vm2396_vm6 = vcmp.eq.s32.totalorder %v6799_v50, %v6097_v36 }
 0x1ce   : > { %4311 = vmatmul.mubr.msk.f32.gmra.mxu1 %vm2717_vm8, %v5231_v5  ;;  %4960 = vmatpush3.msra.mxu0 %v3158_v58  ;;  %vm2725_vm8 = vcmp.eq.s32.totalorder %v6854_v9, %v6025_v3 }
 0x1cf   : > { %5035 = vmatprep.subr.mxu1 %v3509_v59  ;;  %4251 = vmatprep.mubr.msk.f32.mxu0 %vm2391_vm9, %v5231_v5  ;;  %vm2399_vm9 = vcmp.eq.s32.totalorder %v6785_v47, %v6142_v54 }
 0x1d0   : > { %5036 = vmatpush3.msra.mxu1 %v3493_v60  ;;  %4312 = vmatprep.mubr.msk.f32.mxu1 %vm2720_vm10, %v5231_v5  ;;  %vm2728_vm10 = vcmp.eq.s32.totalorder %v6849_v7, %v6051_v17  ;;  %v1137_v60 = vld [vmem:[#allocation3 + $0x30] sm:$0xff] }
 0x1d1   : > { %4252 = vmatmul.mubr.msk.f32.gmra.mxu0 %vm2390_vm0, %v5231_v5  ;;  %4961 = vmatprep.subr.mxu0 %v3173_v55  ;;  %vm2398_vm0 = vcmp.eq.s32.totalorder %v6799_v50, %v6142_v54 }
 0x1d2   : > { %4313 = vmatmul.mubr.msk.f32.gmra.mxu1 %vm2719_vm11, %v5231_v5  ;;  %4962 = vmatpush3.msra.mxu0 %v3157_v40  ;;  %vm2727_vm11 = vcmp.eq.s32.totalorder %v6854_v9, %v6051_v17 }
 0x1d3   : > { %5037 = vmatprep.subr.mxu1 %v3508_v62  ;;  %4253 = vmatprep.mubr.msk.f32.mxu0 %vm2393_vm12, %v5231_v5  ;;  %vm2401_vm12 = vcmp.eq.s32.totalorder %v6785_v47, %v6165_v1 }
 0x1d4   : > { %5038 = vmatpush3.msra.mxu1 %v3492_v48  ;;  %4314 = vmatprep.mubr.msk.f32.mxu1 %vm2722_vm14, %v5231_v5  ;;  %vm2730_vm14 = vcmp.eq.s32.totalorder %v6849_v7, %v6097_v36 }
 0x1d5   : > { %4254 = vmatmul.mubr.msk.f32.gmra.mxu0 %vm2392_vm13, %v5231_v5  ;;  %4963 = vmatprep.subr.mxu0 %v3172_v56  ;;  %vm2400_vm13 = vcmp.eq.s32.totalorder %v6799_v50, %v6165_v1  ;;  %v1138_v56 = vld [vmem:[#allocation3] sm:$0xff] }
 0x1d6   : > { %4315 = vmatmul.mubr.msk.f32.gmra.mxu1 %vm2721_vm15, %v5231_v5  ;;  %4964 = vmatpush3.msra.mxu0 %v3156_v63  ;;  %vm2729_vm15 = vcmp.eq.s32.totalorder %v6854_v9, %v6097_v36 }
 0x1d7   : > { %5039 = vmatprep.subr.mxu1 %v3507_v0  ;;  %4255 = vmatprep.mubr.msk.f32.mxu0 %vm2395_vm1, %v5231_v5  ;;  %vm2403_vm1 = vcmp.eq.s32.totalorder %v6785_v47, %v6196_v19  ;;  %v3167_v47 = vld [vmem:[#allocation2 + $0x680] sm:$0xff] }
 0x1d8   : > { %5040 = vmatpush3.msra.mxu1 %v3491_v2  ;;  %4316 = vmatprep.mubr.msk.f32.mxu1 %vm2724_vm3, %v5231_v5  ;;  %vm2732_vm3 = vcmp.eq.s32.totalorder %v6849_v7, %v6142_v54 }
 0x1d9   : > { %4256 = vmatmul.mubr.msk.f32.gmra.mxu0 %vm2394_vm2, %v5231_v5  ;;  %4965 = vmatprep.subr.mxu0 %v3171_v8  ;;  %vm2402_vm2 = vcmp.eq.s32.totalorder %v6799_v50, %v6196_v19  ;;  %v3486_v50 = vld [vmem:[#allocation2 + $0x710] sm:$0xff] }
 0x1da   : > { %4317 = vmatmul.mubr.msk.f32.gmra.mxu1 %vm2723_vm4, %v5231_v5  ;;  %4966 = vmatpush3.msra.mxu0 %v3155_v10  ;;  %vm2731_vm4 = vcmp.eq.s32.totalorder %v6854_v9, %v6142_v54 }
 0x1db   : > { %5041 = vmatprep.subr.mxu1 %v3506_v13  ;;  %4257 = vmatprep.mubr.msk.f32.mxu0 %vm2397_vm5, %v5231_v5  ;;  %vm3039_vm5 = vcmp.eq.s32.totalorder %v7020_v27, %v5675_v28 }
 0x1dc   : > { %5042 = vmatpush3.msra.mxu1 %v3490_v11  ;;  %4318 = vmatprep.mubr.msk.f32.mxu1 %vm2726_vm7, %v5231_v5  ;;  %vm3038_vm7 = vcmp.eq.s32.totalorder %v7029_v37, %v5675_v28  ;;  %v1139_v11 = vld [vmem:[#allocation3 + $0x58] sm:$0xff] }
 0x1dd   : > { %4258 = vmatmul.mubr.msk.f32.gmra.mxu0 %vm2396_vm6, %v5231_v5  ;;  %4967 = vmatprep.subr.mxu0 %v3170_v16  ;;  %vm2734_vm6 = vcmp.eq.s32.totalorder %v6849_v7, %v6165_v1 }
 0x1de   : > { %4319 = vmatmul.mubr.msk.f32.gmra.mxu1 %vm2725_vm8, %v5231_v5  ;;  %4968 = vmatpush3.msra.mxu0 %v3154_v14  ;;  %vm2733_vm8 = vcmp.eq.s32.totalorder %v6854_v9, %v6165_v1 }
 0x1df   : > { %5043 = vmatprep.subr.mxu1 %v3505_v15  ;;  %4259 = vmatprep.mubr.msk.f32.mxu0 %vm2399_vm9, %v5231_v5  ;;  %vm3041_vm9 = vcmp.eq.s32.totalorder %v7020_v27, %v5740_v6 }
 0x1e0   : > { %5044 = vmatpush3.msra.mxu1 %v3489_v20  ;;  %4320 = vmatprep.mubr.msk.f32.mxu1 %vm2728_vm10, %v5231_v5  ;;  %vm3040_vm10 = vcmp.eq.s32.totalorder %v7029_v37, %v5740_v6 }
 0x1e1   : > { %4260 = vmatmul.mubr.msk.f32.gmra.mxu0 %vm2398_vm0, %v5231_v5  ;;  %4969 = vmatprep.subr.mxu0 %v3169_v22  ;;  %vm2736_vm0 = vcmp.eq.s32.totalorder %v6849_v7, %v6196_v19  ;;  %v7065_v7 = vrot.slane %v3362_v42, %v5692_v44 }
 0x1e2   : > { %4321 = vmatmul.mubr.msk.f32.gmra.mxu1 %vm2727_vm11, %v5231_v5  ;;  %4970 = vmatpush3.msra.mxu0 %v3153_v25  ;;  %vm2735_vm11 = vcmp.eq.s32.totalorder %v6854_v9, %v6196_v19 }
 0x1e3   : > { %5045 = vmatprep.subr.mxu1 %v3504_v26  ;;  %4261 = vmatprep.mubr.msk.f32.mxu0 %vm2401_vm12, %v5231_v5  ;;  %vm3043_vm12 = vcmp.eq.s32.totalorder %v7020_v27, %v5753_v18  ;;  %v1140_v26 = vld [vmem:[#allocation3 + $0x18] sm:$0xff] }
 0x1e4   : > { %5046 = vmatpush3.msra.mxu1 %v3488_v29  ;;  %4322 = vmatprep.mubr.msk.f32.mxu1 %vm2730_vm14, %v5231_v5  ;;  %vm3042_vm14 = vcmp.eq.s32.totalorder %v7029_v37, %v5753_v18 }
 0x1e5   : > { %4262 = vmatmul.mubr.msk.f32.gmra.mxu0 %vm2400_vm13, %v5231_v5  ;;  %4971 = vmatprep.subr.mxu0 %v3168_v30  ;;  %vm3372_vm13 = vcmp.eq.s32.totalorder %v7050_v51, %v5675_v28 }
 0x1e6   : > { %4323 = vmatmul.mubr.msk.f32.gmra.mxu1 %vm2729_vm15, %v5231_v5  ;;  %4972 = vmatpush3.msra.mxu0 %v3152_v31  ;;  %vm3371_vm15 = vcmp.eq.s32.totalorder %v7065_v7, %v5675_v28 }
 0x1e7   : > { %5047 = vmatprep.subr.mxu1 %v3503_v32  ;;  %4263 = vmatprep.mubr.msk.f32.mxu0 %vm2403_vm1, %v5231_v5  ;;  %vm3045_vm1 = vcmp.eq.s32.totalorder %v7020_v27, %v5775_v35 }
 0x1e8   : > { %5048 = vmatpush3.msra.mxu1 %v3487_v33  ;;  %4324 = vmatprep.mubr.msk.f32.mxu1 %vm2732_vm3, %v5231_v5  ;;  %vm3044_vm3 = vcmp.eq.s32.totalorder %v7029_v37, %v5775_v35 }
 0x1e9   : > { %4264 = vmatmul.mubr.msk.f32.gmra.mxu0 %vm2402_vm2, %v5231_v5  ;;  %4973 = vmatprep.subr.mxu0 %v3167_v47  ;;  %v4495_v46 = vpop.f32.mrf.mxu0  ;;  %vm3374_vm2 = vcmp.eq.s32.totalorder %v7050_v51, %v5740_v6  ;;  %v1141_v47 = vld [vmem:[#allocation3 + $0x50] sm:$0xff] }
 0x1ea   : > { %4325 = vmatmul.mubr.msk.f32.gmra.mxu1 %vm2731_vm4, %v5231_v5  ;;  %4974 = vmatpush3.msra.mxu0 %v3151_v38  ;;  %vm3373_vm4 = vcmp.eq.s32.totalorder %v7065_v7, %v5740_v6 }
 0x1eb   : > { %5049 = vmatprep.subr.mxu1 %v3502_v41  ;;  %4363 = vmatprep.mubr.msk.f32.mxu0 %vm3039_vm5, %v5231_v5  ;;  %v4496_v57 = vpop.f32.mrf.mxu0  ;;  %vm3047_vm5 = vcmp.eq.s32.totalorder %v7020_v27, %v5818_v52 }
 0x1ec   : > { %5050 = vmatpush3.msra.mxu1 %v3486_v50  ;;  %4326 = vmatprep.mubr.msk.f32.mxu1 %vm2734_vm6, %v5231_v5  ;;  %v4497_v58 = vadd.f32 %v4496_v57, %v4495_v46  ;;  %vm3376_vm6 = vcmp.eq.s32.totalorder %v7050_v51, %v5753_v18 }
 0x1ed   : > { %4364 = vmatmul.mubr.msk.f32.vlgmr.msra.gmra.mxu0 %vm3038_vm7, %v5231_v5  ;;  %5051 = vmatprep.subr.mxu1 %v3501_v39  ;;  %v4498_v59 = vpop.f32.mrf.mxu0  ;;  %vm3046_vm7 = vcmp.eq.s32.totalorder %v7029_v37, %v5818_v52 }
 0x1ee   : > { %4327 = vmatmul.mubr.msk.f32.gmra.mxu1 %vm2733_vm8, %v5231_v5  ;;  %4365 = vmatprep.mubr.msk.f32.mxu0 %vm3041_vm9, %v5231_v5  ;;  %v1330_v28 = vadd.f32 %v4497_v58, %v1137_v60  ;;  %vm3375_vm8 = vcmp.eq.s32.totalorder %v7065_v7, %v5753_v18  ;;  %vm3049_vm9 = vcmp.eq.s32.totalorder %v7020_v27, %v5864_v4 }
 0x1ef   : > { %5052 = vmatpush3.msra.mxu1 %v3485_v49  ;;  %4328 = vmatprep.mubr.msk.f32.mxu1 %vm2736_vm0, %v5231_v5  ;;  %v4499_v9 = vpop.f32.mrf.mxu0  ;;  %vm3378_vm0 = vcmp.eq.s32.totalorder %v7050_v51, %v5775_v35 }
 0x1f0   : > { %5053 = vmatprep.subr.mxu1 %v3500_v53  ;;  %v4500_v44 = vadd.f32 %v4499_v9, %v4498_v59  ;;  %v1142_v53 = vld [vmem:[#allocation3 + $0x68] sm:$0xff] }
 0x1f1   : > { %4366 = vmatmul.mubr.msk.f32.gmra.mxu0 %vm3040_vm10, %v5231_v5  ;;  %5054 = vmatpush3.msra.mxu1 %v3484_v43  ;;  %v4501_v55 = vpop.f32.mrf.mxu0  ;;  %vm3048_vm10 = vcmp.eq.s32.totalorder %v7029_v37, %v5864_v4 }
 0x1f2   : > { %4329 = vmatmul.mubr.msk.f32.gmra.mxu1 %vm2735_vm11, %v5231_v5  ;;  %4367 = vmatprep.mubr.msk.f32.mxu0 %vm3043_vm12, %v5231_v5  ;;  %v1331_v6 = vadd.f32 %v4500_v44, %v1138_v56  ;;  %vm3377_vm11 = vcmp.eq.s32.totalorder %v7065_v7, %v5775_v35  ;;  %vm3051_vm12 = vcmp.eq.s32.totalorder %v7020_v27, %v5884_v12 }
 0x1f3   : > { %4428 = vmatprep.mubr.msk.f32.mxu1 %vm3372_vm13, %v5231_v5  ;;  %v4575_v40 = vpop.f32.mrf.mxu1  ;;  %v4502_v62 = vpop.f32.mrf.mxu0  ;;  %vm3380_vm13 = vcmp.eq.s32.totalorder %v7050_v51, %v5818_v52 }
 0x1f4   : > { %v4503_v48 = vadd.f32 %v4502_v62, %v4501_v55  ;;  %v1143_v55 = vld [vmem:[#allocation3 + $0x8] sm:$0xff] }
 0x1f5   : > { %4368 = vmatmul.mubr.msk.f32.gmra.mxu0 %vm3042_vm14, %v5231_v5  ;;  %v4576_v63 = vpop.f32.mrf.mxu1  ;;  %vm3050_vm14 = vcmp.eq.s32.totalorder %v7029_v37, %v5884_v12 }
 0x1f6   : > { %4429 = vmatmul.mubr.msk.f32.vlgmr.msra.gmra.mxu1 %vm3371_vm15, %v5231_v5  ;;  %4369 = vmatprep.mubr.msk.f32.mxu0 %vm3045_vm1, %v5231_v5  ;;  %v4577_v0 = vadd.f32 %v4576_v63, %v4575_v40  ;;  %v4504_v2 = vpop.f32.mrf.mxu0  ;;  %v1332_v18 = vadd.f32 %v4503_v48, %v1139_v11  ;;  %vm3379_vm15 = vcmp.eq.s32.totalorder %v7065_v7, %v5818_v52 }
 0x1f7   : > { %4430 = vmatprep.mubr.msk.f32.mxu1 %vm3374_vm2, %v5231_v5  ;;  %vm3053_vm1 = vcmp.eq.s32.totalorder %v7020_v27, %v5910_v23  ;;  %vm3382_vm2 = vcmp.eq.s32.totalorder %v7050_v51, %v5864_v4 }
 0x1f8   : > { %v4578_v8 = vpop.f32.mrf.mxu1  ;;  %v7099_v10 = vadd.f32 %v4577_v0, %v1330_v28  ;;  %v4505_v13 = vpop.f32.mrf.mxu0 }
 0x1f9   : > { %4370 = vmatmul.mubr.msk.f32.gmra.mxu0 %vm3044_vm3, %v5231_v5  ;;  %v4506_v16 = vadd.f32 %v4505_v13, %v4504_v2  ;;  %vm3052_vm3 = vcmp.eq.s32.totalorder %v7029_v37, %v5910_v23  ;;  %v1144_v2 = vld [vmem:[#allocation3 + $0x48] sm:$0xff] }
 0x1fa   : > { %4431 = vmatmul.mubr.msk.f32.gmra.mxu1 %vm3373_vm4, %v5231_v5  ;;  %4371 = vmatprep.mubr.msk.f32.mxu0 %vm3047_vm5, %v5231_v5  ;;  %v4579_v14 = vpop.f32.mrf.mxu1  ;;  %v4507_v20 = vpop.f32.mrf.mxu0  ;;  %vm3381_vm4 = vcmp.eq.s32.totalorder %v7065_v7, %v5864_v4  ;;  %vm3055_vm5 = vcmp.eq.s32.totalorder %v7020_v27, %v5959_v45 }
 0x1fb   : > { %4432 = vmatprep.mubr.msk.f32.mxu1 %vm3376_vm6, %v5231_v5  ;;  %v4580_v15 = vadd.f32 %v4579_v14, %v4578_v8  ;;  %v1333_v35 = vadd.f32 %v4506_v16, %v1140_v26  ;;  %vm3384_vm6 = vcmp.eq.s32.totalorder %v7050_v51, %v5884_v12 }
 0x1fc   : > { %v4581_v21 = vpop.f32.mrf.mxu1  ;;  %v4508_v25 = vpop.f32.mrf.mxu0 }
 0x1fd   : > { %4372 = vmatmul.mubr.msk.f32.gmra.mxu0 %vm3046_vm7, %v5231_v5  ;;  %v7113_v22 = vadd.f32 %v4580_v15, %v1331_v6  ;;  %v4509_v29 = vadd.f32 %v4508_v25, %v4507_v20  ;;  %vm3054_vm7 = vcmp.eq.s32.totalorder %v7029_v37, %v5959_v45  ;;  %v1145_v20 = vld [vmem:[#allocation3 + $0x40] sm:$0xff] }
 0x1fe   : > { %4433 = vmatmul.mubr.msk.f32.gmra.mxu1 %vm3375_vm8, %v5231_v5  ;;  %4373 = vmatprep.mubr.msk.f32.mxu0 %vm3049_vm9, %v5231_v5  ;;  %v4582_v24 = vpop.f32.mrf.mxu1  ;;  %v4510_v31 = vpop.f32.mrf.mxu0  ;;  %vm3383_vm8 = vcmp.eq.s32.totalorder %v7065_v7, %v5884_v12  ;;  %vm3057_vm9 = vcmp.eq.s32.totalorder %v7020_v27, %v6005_v61 }
 0x1ff   : > { %4434 = vmatprep.mubr.msk.f32.mxu1 %vm3378_vm0, %v5231_v5  ;;  %v4583_v30 = vadd.f32 %v4582_v24, %v4581_v21  ;;  %v1334_v52 = vadd.f32 %v4509_v29, %v1141_v47  ;;  %vm3386_vm0 = vcmp.eq.s32.totalorder %v7050_v51, %v5910_v23 }
 0x200   : > { %v4584_v32 = vpop.f32.mrf.mxu1  ;;  %v4511_v34 = vpop.f32.mrf.mxu0 }
 0x201   : > { %4374 = vmatmul.mubr.msk.f32.gmra.mxu0 %vm3048_vm10, %v5231_v5  ;;  %v7127_v33 = vadd.f32 %v4583_v30, %v1332_v18  ;;  %v4512_v38 = vadd.f32 %v4511_v34, %v4510_v31  ;;  %vm3056_vm10 = vcmp.eq.s32.totalorder %v7029_v37, %v6005_v61  ;;  %v1146_v31 = vld [vmem:[#allocation3 + $0x20] sm:$0xff] }
 0x202   : > { %4435 = vmatmul.mubr.msk.f32.gmra.mxu1 %vm3377_vm11, %v5231_v5  ;;  %4375 = vmatprep.mubr.msk.f32.mxu0 %vm3051_vm12, %v5231_v5  ;;  %v4585_v41 = vpop.f32.mrf.mxu1  ;;  %v4513_v50 = vpop.f32.mrf.mxu0  ;;  %vm3385_vm11 = vcmp.eq.s32.totalorder %v7065_v7, %v5910_v23  ;;  %vm3059_vm12 = vcmp.eq.s32.totalorder %v7020_v27, %v6025_v3 }
 0x203   : > { %4436 = vmatprep.mubr.msk.f32.mxu1 %vm3380_vm13, %v5231_v5  ;;  %v4586_v42 = vadd.f32 %v4585_v41, %v4584_v32  ;;  %v1335_v4 = vadd.f32 %v4512_v38, %v1142_v53  ;;  %vm3388_vm13 = vcmp.eq.s32.totalorder %v7050_v51, %v5959_v45 }
 0x204   : > { %v4587_v39 = vpop.f32.mrf.mxu1  ;;  %v4514_v49 = vpop.f32.mrf.mxu0 }
 0x205   : > { %4376 = vmatmul.mubr.msk.f32.gmra.mxu0 %vm3050_vm14, %v5231_v5  ;;  %v7141_v46 = vadd.f32 %v4586_v42, %v1333_v35  ;;  %v4515_v57 = vadd.f32 %v4514_v49, %v4513_v50  ;;  %vm3058_vm14 = vcmp.eq.s32.totalorder %v7029_v37, %v6025_v3  ;;  %v1147_v50 = vld [vmem:[#allocation3 + $0x10] sm:$0xff] }
 0x206   : > { %4437 = vmatmul.mubr.msk.f32.gmra.mxu1 %vm3379_vm15, %v5231_v5  ;;  %4377 = vmatprep.mubr.msk.f32.mxu0 %vm3053_vm1, %v5231_v5  ;;  %v4588_v43 = vpop.f32.mrf.mxu1  ;;  %v4516_v59 = vpop.f32.mrf.mxu0  ;;  %vm3387_vm15 = vcmp.eq.s32.totalorder %v7065_v7, %v5959_v45  ;;  %vm3061_vm1 = vcmp.eq.s32.totalorder %v7020_v27, %v6051_v17 }
 0x207   : > { %4438 = vmatprep.mubr.msk.f32.mxu1 %vm3382_vm2, %v5231_v5  ;;  %v4589_v58 = vadd.f32 %v4588_v43, %v4587_v39  ;;  %v1336_v12 = vadd.f32 %v4515_v57, %v1143_v55  ;;  %vm3390_vm2 = vcmp.eq.s32.totalorder %v7050_v51, %v6005_v61 }
 0x208   : > { %v4590_v9 = vpop.f32.mrf.mxu1  ;;  %v4517_v60 = vpop.f32.mrf.mxu0 }
 0x209   : > { %4378 = vmatmul.mubr.msk.f32.gmra.mxu0 %vm3052_vm3, %v5231_v5  ;;  %v7155_v44 = vadd.f32 %v4589_v58, %v1334_v52  ;;  %v4518_v40 = vadd.f32 %v4517_v60, %v4516_v59  ;;  %vm3060_vm3 = vcmp.eq.s32.totalorder %v7029_v37, %v6051_v17  ;;  %v1148_v59 = vld [vmem:[#allocation3 + $0x38] sm:$0xff] }
 0x20a   : > { %4439 = vmatmul.mubr.msk.f32.gmra.mxu1 %vm3381_vm4, %v5231_v5  ;;  %4379 = vmatprep.mubr.msk.f32.mxu0 %vm3055_vm5, %v5231_v5  ;;  %v4591_v62 = vpop.f32.mrf.mxu1  ;;  %vm3389_vm4 = vcmp.eq.s32.totalorder %v7065_v7, %v6005_v61  ;;  %vm3063_vm5 = vcmp.eq.s32.totalorder %v7020_v27, %v6097_v36 }
 0x20b   : > { %4440 = vmatprep.mubr.msk.f32.mxu1 %vm3384_vm6, %v5231_v5  ;;  %v4592_v28 = vadd.f32 %v4591_v62, %v4590_v9  ;;  %v4519_v48 = vpop.f32.mrf.mxu0  ;;  %v1337_v23 = vadd.f32 %v4518_v40, %v1144_v2  ;;  %vm3392_vm6 = vcmp.eq.s32.totalorder %v7050_v51, %v6025_v3 }
 0x20c   : > { %v4593_v56 = vpop.f32.mrf.mxu1 }
 0x20d   : > { %4380 = vmatmul.mubr.msk.f32.gmra.mxu0 %vm3054_vm7, %v5231_v5  ;;  %v7169_v63 = vadd.f32 %v4592_v28, %v1335_v4  ;;  %v4520_v0 = vpop.f32.mrf.mxu0  ;;  %vm3062_vm7 = vcmp.eq.s32.totalorder %v7029_v37, %v6097_v36 }
 0x20e   : > { %4441 = vmatmul.mubr.msk.f32.gmra.mxu1 %vm3383_vm8, %v5231_v5  ;;  %4381 = vmatprep.mubr.msk.f32.mxu0 %vm3057_vm9, %v5231_v5  ;;  %v4521_v8 = vadd.f32 %v4520_v0, %v4519_v48  ;;  %v4594_v6 = vpop.f32.mrf.mxu1  ;;  %vm3391_vm8 = vcmp.eq.s32.totalorder %v7065_v7, %v6025_v3  ;;  %vm3065_vm9 = vcmp.eq.s32.totalorder %v7020_v27, %v6142_v54  ;;  %v1149_v48 = vld [vmem:[#allocation3 + $0x60] sm:$0xff] }
 0x20f   : > { %4442 = vmatprep.mubr.msk.f32.mxu1 %vm3386_vm0, %v5231_v5  ;;  %v4595_v13 = vadd.f32 %v4594_v6, %v4593_v56  ;;  %v4522_v11 = vpop.f32.mrf.mxu0  ;;  %vm3394_vm0 = vcmp.eq.s32.totalorder %v7050_v51, %v6051_v17 }
 0x210   : > { %v4596_v16 = vpop.f32.mrf.mxu1  ;;  %v1338_v45 = vadd.f32 %v4521_v8, %v1145_v20 }
 0x211   : > { %4382 = vmatmul.mubr.msk.f32.gmra.mxu0 %vm3056_vm10, %v5231_v5  ;;  %v7183_v14 = vadd.f32 %v4595_v13, %v1336_v12  ;;  %v4523_v15 = vpop.f32.mrf.mxu0  ;;  %vm3064_vm10 = vcmp.eq.s32.totalorder %v7029_v37, %v6142_v54  ;;  %v1150_v13 = vld [vmem:[#allocation3 + $0x70] sm:$0xff] }
 0x212   : > { %4443 = vmatmul.mubr.msk.f32.gmra.mxu1 %vm3385_vm11, %v5231_v5  ;;  %4383 = vmatprep.mubr.msk.f32.mxu0 %vm3059_vm12, %v5231_v5  ;;  %v4524_v21 = vadd.f32 %v4523_v15, %v4522_v11  ;;  %v4597_v18 = vpop.f32.mrf.mxu1  ;;  %vm3393_vm11 = vcmp.eq.s32.totalorder %v7065_v7, %v6051_v17  ;;  %vm3067_vm12 = vcmp.eq.s32.totalorder %v7020_v27, %v6165_v1 }
 0x213   : > { %4444 = vmatprep.mubr.msk.f32.mxu1 %vm3388_vm13, %v5231_v5  ;;  %v4598_v25 = vadd.f32 %v4597_v18, %v4596_v16  ;;  %v4525_v26 = vpop.f32.mrf.mxu0  ;;  %vm3396_vm13 = vcmp.eq.s32.totalorder %v7050_v51, %v6097_v36 }
 0x214   : > { %v4599_v29 = vpop.f32.mrf.mxu1  ;;  %v1339_v61 = vadd.f32 %v4524_v21, %v1146_v31 }
 0x215   : > { %4384 = vmatmul.mubr.msk.f32.gmra.mxu0 %vm3058_vm14, %v5231_v5  ;;  %v7197_v24 = vadd.f32 %v4598_v25, %v1337_v23  ;;  %v4526_v30 = vpop.f32.mrf.mxu0  ;;  %vm3066_vm14 = vcmp.eq.s32.totalorder %v7029_v37, %v6165_v1 }
 0x216   : > { %4445 = vmatmul.mubr.msk.f32.gmra.mxu1 %vm3387_vm15, %v5231_v5  ;;  %4385 = vmatprep.mubr.msk.f32.mxu0 %vm3061_vm1, %v5231_v5  ;;  %v4527_v32 = vadd.f32 %v4526_v30, %v4525_v26  ;;  %v4600_v35 = vpop.f32.mrf.mxu1  ;;  %vm3395_vm15 = vcmp.eq.s32.totalorder %v7065_v7, %v6097_v36  ;;  %vm3069_vm1 = vcmp.eq.s32.totalorder %v7020_v27, %v6196_v19 }
 0x217   : > { %4446 = vmatprep.mubr.msk.f32.mxu1 %vm3390_vm2, %v5231_v5  ;;  %v4601_v34 = vadd.f32 %v4600_v35, %v4599_v29  ;;  %v4528_v47 = vpop.f32.mrf.mxu0  ;;  %vm3398_vm2 = vcmp.eq.s32.totalorder %v7050_v51, %v6142_v54 }
 0x218   : > { %v4602_v38 = vpop.f32.mrf.mxu1  ;;  %v1340_v3 = vadd.f32 %v4527_v32, %v1147_v50 }
 0x219   : > { %4386 = vmatmul.mubr.msk.f32.gmra.mxu0 %vm3060_vm3, %v5231_v5  ;;  %v7211_v41 = vadd.f32 %v4601_v34, %v1338_v45  ;;  %v4529_v42 = vpop.f32.mrf.mxu0  ;;  %vm3068_vm3 = vcmp.eq.s32.totalorder %v7029_v37, %v6196_v19 }
 0x21a   : > { %4447 = vmatmul.mubr.msk.f32.gmra.mxu1 %vm3389_vm4, %v5231_v5  ;;  %4387 = vmatprep.mubr.msk.f32.mxu0 %vm3063_vm5, %v5231_v5  ;;  %v4530_v39 = vadd.f32 %v4529_v42, %v4528_v47  ;;  %v4603_v52 = vpop.f32.mrf.mxu1  ;;  %vm3397_vm4 = vcmp.eq.s32.totalorder %v7065_v7, %v6142_v54  ;;  %vm3400_vm5 = vcmp.eq.s32.totalorder %v7050_v51, %v6165_v1  ;;  %v1151_v54 = vld [vmem:[#allocation3 + $0x78] sm:$0xff] }
 0x21b   : > { %4448 = vmatprep.mubr.msk.f32.mxu1 %vm3392_vm6, %v5231_v5  ;;  %v4604_v49 = vadd.f32 %v4603_v52, %v4602_v38  ;;  %v4531_v53 = vpop.f32.mrf.mxu0  ;;  %vm3399_vm6 = vcmp.eq.s32.totalorder %v7065_v7, %v6165_v1  ;;  %v1152_v1 = vld [vmem:[#allocation3 + $0x28] sm:$0xff] }
 0x21c   : > { %v4605_v57 = vpop.f32.mrf.mxu1  ;;  %v1341_v17 = vadd.f32 %v4530_v39, %v1148_v59 }
 0x21d   : > { %4388 = vmatmul.mubr.msk.f32.gmra.mxu0 %vm3062_vm7, %v5231_v5  ;;  %v7225_v43 = vadd.f32 %v4604_v49, %v1339_v61  ;;  %v4532_v58 = vpop.f32.mrf.mxu0  ;;  %vm3402_vm7 = vcmp.eq.s32.totalorder %v7050_v51, %v6196_v19 }
 0x21e   : > { %4449 = vmatmul.mubr.msk.f32.gmra.mxu1 %vm3391_vm8, %v5231_v5  ;;  %4389 = vmatprep.mubr.msk.f32.mxu0 %vm3065_vm9, %v5231_v5  ;;  %v4533_v9 = vadd.f32 %v4532_v58, %v4531_v53  ;;  %v4606_v4 = vpop.f32.mrf.mxu1  ;;  %vm3401_vm8 = vcmp.eq.s32.totalorder %v7065_v7, %v6196_v19 }
 0x21f   : > { %4450 = vmatprep.mubr.msk.f32.mxu1 %vm3394_vm0, %v5231_v5  ;;  %v4607_v60 = vadd.f32 %v4606_v4, %v4605_v57  ;;  %v4534_v55 = vpop.f32.mrf.mxu0 }
 0x220   : > { %v4608_v40 = vpop.f32.mrf.mxu1  ;;  %v1342_v36 = vadd.f32 %v4533_v9, %v1149_v48 }
 0x221   : > { %4390 = vmatmul.mubr.msk.f32.gmra.mxu0 %vm3064_vm10, %v5231_v5  ;;  %v7239_v62 = vadd.f32 %v4607_v60, %v1340_v3  ;;  %v4535_v28 = vpop.f32.mrf.mxu0 }
 0x222   : > { %4451 = vmatmul.mubr.msk.f32.gmra.mxu1 %vm3393_vm11, %v5231_v5  ;;  %4391 = vmatprep.mubr.msk.f32.mxu0 %vm3067_vm12, %v5231_v5  ;;  %v4536_v56 = vadd.f32 %v4535_v28, %v4534_v55  ;;  %v4609_v12 = vpop.f32.mrf.mxu1 }
 0x223   : > { %4452 = vmatprep.mubr.msk.f32.mxu1 %vm3396_vm13, %v5231_v5  ;;  %v4610_v0 = vadd.f32 %v4609_v12, %v4608_v40  ;;  %v4537_v2 = vpop.f32.mrf.mxu0 }
 0x224   : > { %v4611_v8 = vpop.f32.mrf.mxu1  ;;  %v1343_v20 = vadd.f32 %v4536_v56, %v1150_v13 }
 0x225   : > { %4392 = vmatmul.mubr.msk.f32.gmra.mxu0 %vm3066_vm14, %v5231_v5  ;;  %v7253_v27 = vadd.f32 %v4610_v0, %v1341_v17  ;;  %v4538_v6 = vpop.f32.mrf.mxu0 }
 0x226   : > { %4453 = vmatmul.mubr.msk.f32.gmra.mxu1 %vm3395_vm15, %v5231_v5  ;;  %4393 = vmatprep.mubr.msk.f32.mxu0 %vm3069_vm1, %v5231_v5  ;;  %v4539_v11 = vadd.f32 %v4538_v6, %v4537_v2  ;;  %v4612_v16 = vpop.f32.mrf.mxu1 }
 0x227   : > { %4454 = vmatprep.mubr.msk.f32.mxu1 %vm3398_vm2, %v5231_v5  ;;  %v4613_v23 = vadd.f32 %v4612_v16, %v4611_v8  ;;  %v4540_v15 = vpop.f32.mrf.mxu0 }
 0x228   : > { %v4614_v37 = vpop.f32.mrf.mxu1  ;;  %v1344_v31 = vadd.f32 %v4539_v11, %v1151_v54 }
 0x229   : > { %4394 = vmatmul.mubr.msk.f32.gmra.mxu0 %vm3068_vm3, %v5231_v5  ;;  %v7262_v21 = vadd.f32 %v4613_v23, %v1342_v36  ;;  %v4541_v18 = vpop.f32.mrf.mxu0 }
 0x22a   : > { %4455 = vmatmul.mubr.msk.f32.gmra.mxu1 %vm3397_vm4, %v5231_v5  ;;  %v4542_v25 = vadd.f32 %v4541_v18, %v4540_v15  ;;  %v4615_v26 = vpop.f32.mrf.mxu1 }
 0x22b   : > { %4456 = vmatprep.mubr.msk.f32.mxu1 %vm3400_vm5, %v5231_v5  ;;  %v4616_v29 = vadd.f32 %v4615_v26, %v4614_v37 }
 0x22c   : > { %v4655_v45 = vpop.f32.mrf.mxu0  ;;  %v1345_v50 = vadd.f32 %v4542_v25, %v1152_v1 }
 0x22d   : > { %v4617_v30 = vpop.f32.mrf.mxu1  ;;  %v7270_v32 = vadd.f32 %v4616_v29, %v1343_v20 }
 0x22e   : > { %4457 = vmatmul.mubr.msk.f32.gmra.mxu1 %vm3399_vm6, %v5231_v5  ;;  %v4656_v35 = vpop.f32.mrf.mxu0 }
 0x22f   : > { %4458 = vmatprep.mubr.msk.f32.mxu1 %vm3402_vm7, %v5231_v5  ;;  %v4657_v34 = vadd.f32 %v4656_v35, %v4655_v45  ;;  %v4618_v47 = vpop.f32.mrf.mxu1 }
 0x230   : > { %v4619_v38 = vadd.f32 %v4618_v47, %v4617_v30  ;;  %v4658_v61 = vpop.f32.mrf.mxu0 }
 0x231   : > { %v1996_v51 = vadd.f32 %v4657_v34, %v7099_v10  ;;  %v4620_v42 = vpop.f32.mrf.mxu1 }
 0x232   : > { %4459 = vmatmul.mubr.msk.f32.gmra.mxu1 %vm3401_vm8, %v5231_v5  ;;  %v7277_v39 = vadd.f32 %v4619_v38, %v1344_v31  ;;  %v4659_v52 = vpop.f32.mrf.mxu0 }
 0x233   : > { %v4660_v49 = vadd.f32 %v4659_v52, %v4658_v61  ;;  %v4621_v53 = vpop.f32.mrf.mxu1 }
 0x234   : > { %v4622_v57 = vadd.f32 %v4621_v53, %v4620_v42  ;;  %v4661_v3 = vpop.f32.mrf.mxu0 }
 0x235   : > { %v1997_v19 = vadd.f32 %v4660_v49, %v7113_v22  ;;  %v4735_v7 = vpop.f32.mrf.mxu1 }
 0x236   : > { %v7280_v58 = vadd.f32 %v4622_v57, %v1345_v50  ;;  %v4662_v59 = vpop.f32.mrf.mxu0 }
 0x237   : > { %v4663_v9 = vadd.f32 %v4662_v59, %v4661_v3  ;;  %v4736_v4 = vpop.f32.mrf.mxu1 }
 0x238   : > { %v4737_v10 = vadd.f32 %v4736_v4, %v4735_v7  ;;  %v4664_v60 = vpop.f32.mrf.mxu0 }
 0x239   : > { %v1998_v5 = vadd.f32 %v4663_v9, %v7127_v33  ;;  %v4738_v55 = vpop.f32.mrf.mxu1 }
 0x23a   : > { %v7283_v40 = vadd.f32 %v4737_v10, %v1996_v51  ;;  %v4665_v17 = vpop.f32.mrf.mxu0 }
 0x23b   : > { %v4666_v28 = vadd.f32 %v4665_v17, %v4664_v60  ;;  %v4739_v48 = vpop.f32.mrf.mxu1 }
 0x23c   : > { %v4740_v56 = vadd.f32 %v4739_v48, %v4738_v55  ;;  %v4667_v12 = vpop.f32.mrf.mxu0 }
 0x23d   : > { %v1999_v22 = vadd.f32 %v4666_v28, %v7141_v46  ;;  %v4741_v0 = vpop.f32.mrf.mxu1 }
 0x23e   : > { %v7286_v2 = vadd.f32 %v4740_v56, %v1997_v19  ;;  %v4668_v8 = vpop.f32.mrf.mxu0 }
 0x23f   : > { %v4669_v36 = vadd.f32 %v4668_v8, %v4667_v12  ;;  %v4742_v6 = vpop.f32.mrf.mxu1 }
 0x240   : > { %v4743_v13 = vadd.f32 %v4742_v6, %v4741_v0  ;;  %v4670_v11 = vpop.f32.mrf.mxu0 }
 0x241   : > { %v2000_v33 = vadd.f32 %v4669_v36, %v7155_v44  ;;  %v4744_v16 = vpop.f32.mrf.mxu1 }
 0x242   : > { %v7289_v23 = vadd.f32 %v4743_v13, %v1998_v5  ;;  %v4671_v15 = vpop.f32.mrf.mxu0 }
 0x243   : > { %v4672_v37 = vadd.f32 %v4671_v15, %v4670_v11  ;;  %v4745_v20 = vpop.f32.mrf.mxu1 }
 0x244   : > { %v4746_v18 = vadd.f32 %v4745_v20, %v4744_v16  ;;  %v4673_v54 = vpop.f32.mrf.mxu0 }
 0x245   : > { %v2001_v46 = vadd.f32 %v4672_v37, %v7169_v63  ;;  %v4747_v25 = vpop.f32.mrf.mxu1 }
 0x246   : > { %v7292_v26 = vadd.f32 %v4746_v18, %v1999_v22  ;;  %v4674_v29 = vpop.f32.mrf.mxu0 }
 0x247   : > { %v4675_v45 = vadd.f32 %v4674_v29, %v4673_v54  ;;  %v4748_v30 = vpop.f32.mrf.mxu1 }
 0x248   : > { %v4749_v31 = vadd.f32 %v4748_v30, %v4747_v25  ;;  %v4676_v35 = vpop.f32.mrf.mxu0 }
 0x249   : > { %v2002_v44 = vadd.f32 %v4675_v45, %v7183_v14  ;;  %v4750_v1 = vpop.f32.mrf.mxu1 }
 0x24a   : > { %v7295_v34 = vadd.f32 %v4749_v31, %v2000_v33  ;;  %v4677_v47 = vpop.f32.mrf.mxu0 }
 0x24b   : > { %v4678_v38 = vadd.f32 %v4677_v47, %v4676_v35  ;;  %v4751_v61 = vpop.f32.mrf.mxu1 }
 0x24c   : > { %v4752_v51 = vadd.f32 %v4751_v61, %v4750_v1  ;;  %v4679_v42 = vpop.f32.mrf.mxu0 }
 0x24d   : > { %v2003_v63 = vadd.f32 %v4678_v38, %v7197_v24  ;;  %v4753_v50 = vpop.f32.mrf.mxu1 }
 0x24e   : > { %v7298_v52 = vadd.f32 %v4752_v51, %v2001_v46  ;;  %v4680_v49 = vpop.f32.mrf.mxu0 }
 0x24f   : > { %v4681_v53 = vadd.f32 %v4680_v49, %v4679_v42  ;;  %v4754_v57 = vpop.f32.mrf.mxu1 }
 0x250   : > { %v4755_v3 = vadd.f32 %v4754_v57, %v4753_v50  ;;  %v4682_v19 = vpop.f32.mrf.mxu0 }
 0x251   : > { %v2004_v14 = vadd.f32 %v4681_v53, %v7211_v41  ;;  %v4756_v7 = vpop.f32.mrf.mxu1 }
 0x252   : > { %v7301_v59 = vadd.f32 %v4755_v3, %v2002_v44  ;;  %v4683_v9 = vpop.f32.mrf.mxu0 }
 0x253   : > { %v4684_v4 = vadd.f32 %v4683_v9, %v4682_v19  ;;  %v4757_v10 = vpop.f32.mrf.mxu1 }
 0x254   : > { %v4758_v60 = vadd.f32 %v4757_v10, %v4756_v7  ;;  %v4685_v5 = vpop.f32.mrf.mxu0 }
 0x255   : > { %v2005_v24 = vadd.f32 %v4684_v4, %v7225_v43  ;;  %v4759_v55 = vpop.f32.mrf.mxu1 }
 0x256   : > { %v7304_v17 = vadd.f32 %v4758_v60, %v2003_v63  ;;  %v4686_v28 = vpop.f32.mrf.mxu0 }
 0x257   : > { %v4687_v48 = vadd.f32 %v4686_v28, %v4685_v5  ;;  %v4760_v56 = vpop.f32.mrf.mxu1 }
 0x258   : > { %v4761_v12 = vadd.f32 %v4760_v56, %v4759_v55  ;;  %v4688_v22 = vpop.f32.mrf.mxu0 }
 0x259   : > { %v2006_v41 = vadd.f32 %v4687_v48, %v7239_v62  ;;  %v4762_v0 = vpop.f32.mrf.mxu1 }
 0x25a   : > { %v7307_v8 = vadd.f32 %v4761_v12, %v2004_v14  ;;  %v4689_v36 = vpop.f32.mrf.mxu0 }
 0x25b   : > { %v4690_v6 = vadd.f32 %v4689_v36, %v4688_v22  ;;  %v4763_v13 = vpop.f32.mrf.mxu1 }
 0x25c   : > { %v4764_v11 = vadd.f32 %v4763_v13, %v4762_v0 }
 0x25d   : > { %v4691_v33 = vpop.f32.mrf.mxu0  ;;  %v2007_v43 = vadd.f32 %v4690_v6, %v7253_v27 }
 0x25e   : > { %v4765_v16 = vpop.f32.mrf.mxu1  ;;  %v7310_v15 = vadd.f32 %v4764_v11, %v2005_v24 }
 0x25f   : > { %v4692_v37 = vpop.f32.mrf.mxu0 }
 0x260   : > { %v4693_v20 = vadd.f32 %v4692_v37, %v4691_v33  ;;  %v4766_v18 = vpop.f32.mrf.mxu1 }
 0x261   : > { %v4767_v54 = vadd.f32 %v4766_v18, %v4765_v16  ;;  %v4694_v46 = vpop.f32.mrf.mxu0 }
 0x262   : > { %v2008_v62 = vadd.f32 %v4693_v20, %v7262_v21  ;;  %v4768_v25 = vpop.f32.mrf.mxu1 }
 0x263   : > { %v7313_v29 = vadd.f32 %v4767_v54, %v2006_v41  ;;  %v4695_v45 = vpop.f32.mrf.mxu0 }
 0x264   : > { %v4696_v30 = vadd.f32 %v4695_v45, %v4694_v46  ;;  %v4769_v31 = vpop.f32.mrf.mxu1 }
 0x265   : > { %7641 = vst [vmem:[#allocation11_spill] sm:$0xff] %v7313_v29  ;;  %v4770_v35 = vadd.f32 %v4769_v31, %v4768_v25  ;;  %v4697_v44 = vpop.f32.mrf.mxu0 }
 0x266   : > { %v2009_v27 = vadd.f32 %v4696_v30, %v7270_v32  ;;  %v4771_v1 = vpop.f32.mrf.mxu1 }
 0x267   : > { %v7316_v47 = vadd.f32 %v4770_v35, %v2007_v43  ;;  %v4698_v38 = vpop.f32.mrf.mxu0 }
 0x268   : > { %v4699_v61 = vadd.f32 %v4698_v38, %v4697_v44  ;;  %v4772_v51 = vpop.f32.mrf.mxu1 }
 0x269   : > { %7642 = vst [vmem:[#allocation12_spill] sm:$0xff] %v7316_v47  ;;  %v4773_v42 = vadd.f32 %v4772_v51, %v4771_v1  ;;  %v4700_v63 = vpop.f32.mrf.mxu0 }
 0x26a   : > { %v2010_v21 = vadd.f32 %v4699_v61, %v7277_v39  ;;  %v4774_v50 = vpop.f32.mrf.mxu1 }
 0x26b   : > { %v7319_v49 = vadd.f32 %v4773_v42, %v2008_v62  ;;  %v4701_v53 = vpop.f32.mrf.mxu0 }
 0x26c   : > { %v4702_v57 = vadd.f32 %v4701_v53, %v4700_v63  ;;  %v4775_v3 = vpop.f32.mrf.mxu1 }
 0x26d   : > { %7643 = vst [vmem:[#allocation13_spill] sm:$0xff] %v7319_v49  ;;  %v4776_v19 = vadd.f32 %v4775_v3, %v4774_v50  ;;  %v7321_v14 = vpop.f32.mrf.mxu0 }
 0x26e   : > { %v2011_v32 = vadd.f32 %v4702_v57, %v7280_v58  ;;  %v4777_v7 = vpop.f32.mrf.mxu1 }
 0x26f   : > { %v7324_v9 = vadd.f32 %v4776_v19, %v2009_v27  ;;  %v7326_v4 = vpop.f32.mrf.mxu0 }
 0x270   : > { %v4778_v10 = vpop.f32.mrf.mxu1 }
 0x271   : > { %7644 = vst [vmem:[#allocation14_spill] sm:$0xff] %v7324_v9  ;;  %v4779_v60 = vadd.f32 %v4778_v10, %v4777_v7  ;;  %v7328_v5 = vpop.f32.mrf.mxu0 }
 0x272   : > { %v4780_v39 = vpop.f32.mrf.mxu1 }
 0x273   : > { %v7330_v24 = vadd.f32 %v4779_v60, %v2010_v21  ;;  %v7332_v55 = vpop.f32.mrf.mxu0 }
 0x274   : > { %v4781_v28 = vpop.f32.mrf.mxu1 }
 0x275   : > { %7645 = vst [vmem:[#allocation15_spill] sm:$0xff] %v7330_v24  ;;  %v4782_v48 = vadd.f32 %v4781_v28, %v4780_v39  ;;  %v7334_v56 = vpop.f32.mrf.mxu0 }
 0x276   : > { %v7336_v12 = vpop.f32.mrf.mxu1 }
 0x277   : > { %v7338_v58 = vadd.f32 %v4782_v48, %v2011_v32  ;;  %v7340_v22 = vpop.f32.mrf.mxu0 }
 0x278   : > { %v4896_v41 = vpop.f32.mrf.mxu1 }
 0x279   : > { %7646 = vst [vmem:[#allocation16_spill] sm:$0xff] %v7338_v58  ;;  %v7342_v0 = vpop.f32.mrf.mxu0 }
 0x27a   : > { %v7344_v36 = vpop.f32.mrf.mxu1 }
 0x27b   : > { %v7346_v6 = vpop.f32.mrf.mxu0 }
 0x27c   : > { %v7348_v13 = vpop.f32.mrf.mxu1 }
 0x27d   : > { %v7350_v11 = vpop.f32.mrf.mxu0 }
 0x27e   : > { %v7352_v33 = vpop.f32.mrf.mxu1 }
 0x27f   : > { %v7354_v43 = vpop.f32.mrf.mxu0 }
 0x280   : > { %v7356_v16 = vpop.f32.mrf.mxu1 }
 0x281   : > { %v7358_v37 = vpop.f32.mrf.mxu0 }
 0x282   : > { %v7360_v20 = vpop.f32.mrf.mxu1 }
 0x283   : > { %v7362_v18 = vpop.f32.mrf.mxu0 }
 0x284   : > { %v7364_v54 = vpop.f32.mrf.mxu1 }
 0x285   : > { %v7366_v46 = vpop.f32.mrf.mxu0 }
 0x286   : > { %v7368_v62 = vpop.f32.mrf.mxu1 }
 0x287   : > { %v7370_v25 = vpop.f32.mrf.mxu0 }
 0x288   : > { %v7372_v45 = vpop.f32.mrf.mxu1 }
 0x289   : > { %v7374_v30 = vpop.f32.mrf.mxu0 }
 0x28a   : > { %v7376_v31 = vpop.f32.mrf.mxu1 }
 0x28b   : > { %v7378_v35 = vpop.f32.mrf.mxu0 }
 0x28c   : > { %v7380_v44 = vpop.f32.mrf.mxu1 }
 0x28d   : > { %v7382_v27 = vpop.f32.mrf.mxu0 }
 0x28e   : > { %v7384_v1 = vpop.f32.mrf.mxu1 }
 0x28f   : > { %v7386_v38 = vpop.f32.mrf.mxu0 }
 0x290   : > { %v7388_v61 = vpop.f32.mrf.mxu1 }
 0x291   : > { %v7390_v51 = vpop.f32.mrf.mxu0 }
 0x292   : > { %v7392_v42 = vpop.f32.mrf.mxu1 }
 0x293   : > { %v7394_v63 = vpop.f32.mrf.mxu0 }
 0x294   : > { %v7396_v21 = vpop.f32.mrf.mxu1 }
 0x295   : > { %v7398_v50 = vpop.f32.mrf.mxu0 }
 0x296   : > { %v7400_v53 = vpop.f32.mrf.mxu1 }
 0x297   : > { %v7402_v57 = vpop.f32.mrf.mxu0 }
 0x298   : > { %v7404_v3 = vpop.f32.mrf.mxu1 }
 0x299   : > { %v7406_v19 = vpop.f32.mrf.mxu0 }
 0x29a   : > { %7647 = vst [vmem:[#allocation17_spill] sm:$0xff] %v7406_v19  ;;  %v7408_v32 = vpop.f32.mrf.mxu1 }
 0x29b   : > { %7648 = vst [vmem:[#allocation18_spill] sm:$0xff] %v7408_v32  ;;  %v7410_v7 = vpop.f32.mrf.mxu0 }
 0x29c   : > { %7649 = vst [vmem:[#allocation19_spill] sm:$0xff] %v7410_v7  ;;  %v7412_v10 = vpop.f32.mrf.mxu1 }
 0x29d   : > { %7650 = vst [vmem:[#allocation20_spill] sm:$0xff] %v7412_v10  ;;  %v7414_v60 = vpop.f32.mrf.mxu0 }
 0x29e   : > { %7651 = vst [vmem:[#allocation21_spill] sm:$0xff] %v7414_v60  ;;  %v7416_v39 = vpop.f32.mrf.mxu1 }
 0x29f   : > { %7652 = vst [vmem:[#allocation22_spill] sm:$0xff] %v7416_v39  ;;  %v7418_v28 = vpop.f32.mrf.mxu0 }
 0x2a0   : > { %7653 = vst [vmem:[#allocation23_spill] sm:$0xff] %v7418_v28  ;;  %v7420_v48 = vpop.f32.mrf.mxu1 }
 0x2a1   : > { %7654 = vst [vmem:[#allocation24_spill] sm:$0xff] %v7420_v48  ;;  %v7422_v58 = vpop.f32.mrf.mxu0 }
 0x2a2   : > { %7655 = vst [vmem:[#allocation25_spill] sm:$0xff] %v7422_v58  ;;  %v7424_v24 = vpop.f32.mrf.mxu1 }
 0x2a3   : > { %7656 = vst [vmem:[#allocation26_spill] sm:$0xff] %v7424_v24  ;;  %v7426_v9 = vpop.f32.mrf.mxu0 }
 0x2a4   : > { %7657 = vst [vmem:[#allocation27_spill] sm:$0xff] %v7426_v9  ;;  %v7428_v49 = vpop.f32.mrf.mxu1  ;;  %v4817_v9 = vadd.f32 %v7326_v4, %v7321_v14  ;;  %v4823_v4 = vadd.f32 %v7340_v22, %v7334_v56  ;;  %v4903_v56 = vadd.f32 %v7356_v16, %v7352_v33 }
 0x2a5   : > { %7658 = vst [vmem:[#allocation28_spill] sm:$0xff] %v7428_v49  ;;  %v7430_v47 = vpop.f32.mrf.mxu0 }
 0x2a6   : > { %7659 = vst [vmem:[#allocation29_spill] sm:$0xff] %v7430_v47  ;;  %v7432_v7 = vpop.f32.mrf.mxu1 }
 0x2a7   : > { %7660 = vst [vmem:[#allocation30_spill] sm:$0xff] %v7432_v7  ;;  %v7434_v19 = vpop.f32.mrf.mxu0 }
 0x2a8   : > { %7661 = vst [vmem:[#allocation31_spill] sm:$0xff] %v7434_v19  ;;  %v7436_v60 = vpop.f32.mrf.mxu1  ;;  %v2662_v19 = vadd.f32 %v4817_v9, %v7283_v40  ;;  %v4900_v9 = vadd.f32 %v7348_v13, %v7344_v36 }
 0x2a9   : > { %7662 = vst [vmem:[#allocation32_spill] sm:$0xff] %v7436_v60  ;;  %v7438_v39 = vpop.f32.mrf.mxu0 }
 0x2aa   : > { %7663 = vst [vmem:[#allocation33_spill] sm:$0xff] %v7438_v39  ;;  %v7440_v28 = vpop.f32.mrf.mxu1  ;;  %v4820_v39 = vadd.f32 %v7332_v55, %v7328_v5 }
 0x2ab   : > { %7664 = vst [vmem:[#allocation34_spill] sm:$0xff] %v7440_v28  ;;  %v7442_v48 = vpop.f32.mrf.mxu0 }
 0x2ac   : > { %7665 = vst [vmem:[#allocation35_spill] sm:$0xff] %v7442_v48  ;;  %v7444_v58 = vpop.f32.mrf.mxu1  ;;  %v4897_v48 = vadd.f32 %v4896_v41, %v7336_v12  ;;  %v2663_v14 = vadd.f32 %v4820_v39, %v7286_v2 }
 0x2ad   : > { %7666 = vst [vmem:[#allocation36_spill] sm:$0xff] %v7444_v58  ;;  %v4975_v49 = vpop.f32.mrf.mxu0 }
 0x2ae   : > { %v7448_v24 = vpop.f32.mrf.mxu1  ;;  %v2996_v12 = vadd.f32 %v4900_v9, %v2663_v14  ;;  %v4909_v9 = vadd.f32 %v7372_v45, %v7368_v62 }
 0x2af   : > { %7667 = vst [vmem:[#allocation37_spill] sm:$0xff] %v7448_v24  ;;  %v4976_v47 = vpop.f32.mrf.mxu0 }
 0x2b0   : > { %v7450_v7 = vpop.f32.mrf.mxu1  ;;  %v4977_v58 = vadd.f32 %v4976_v47, %v4975_v49  ;;  %v2664_v47 = vadd.f32 %v4823_v4, %v7289_v23  ;;  %v4826_v49 = vadd.f32 %v7346_v6, %v7342_v0  ;;  %v4829_v23 = vadd.f32 %v7354_v43, %v7350_v11 }
 0x2b1   : > { %7668 = vst [vmem:[#allocation38_spill] sm:$0xff] %v7450_v7  ;;  %v4978_v60 = vpop.f32.mrf.mxu0  ;;  %v2995_v7 = vadd.f32 %v4897_v48, %v2662_v19 }
 0x2b2   : > { %v7455_v28 = vpop.f32.mrf.mxu1  ;;  %v2997_v13 = vadd.f32 %v4903_v56, %v2664_v47  ;;  %v2666_v14 = vadd.f32 %v4829_v23, %v7295_v34  ;;  %v4835_v34 = vadd.f32 %v7370_v25, %v7366_v46 }
 0x2b3   : > { %7669 = vst [vmem:[#allocation39_spill] sm:$0xff] %v7455_v28  ;;  %v4979_v29 = vpop.f32.mrf.mxu0  ;;  %v3328_v5 = vadd.f32 %v4977_v58, %v2995_v7  ;;  %v4906_v7 = vadd.f32 %v7364_v54, %v7360_v20 }
 0x2b4   : > { %v7458_v10 = vpop.f32.mrf.mxu1  ;;  %v4980_v55 = vadd.f32 %v4979_v29, %v4978_v60  ;;  %v2665_v29 = vadd.f32 %v4826_v49, %v7292_v26  ;;  %v4832_v26 = vadd.f32 %v7362_v18, %v7358_v37 }
 0x2b5   : > { %v4981_v24 = vpop.f32.mrf.mxu0 }
 0x2b6   : > { %v5055_v40 = vpop.f32.mrf.mxu1  ;;  %v3329_v22 = vadd.f32 %v4980_v55, %v2996_v12  ;;  %v2998_v4 = vadd.f32 %v4906_v7, %v2665_v29  ;;  %v2667_v49 = vadd.f32 %v4832_v26, %v7298_v52  ;;  %v2999_v12 = vadd.f32 %v4909_v9, %v2666_v14 }
 0x2b7   : > { %v4982_v28 = vpop.f32.mrf.mxu0  ;;  %v4838_v52 = vadd.f32 %v7378_v35, %v7374_v30  ;;  %v4918_v7 = vadd.f32 %v7396_v21, %v7392_v42  ;;  %v4921_v26 = vadd.f32 %v7404_v3, %v7400_v53 }
 0x2b8   : > { %v5056_v32 = vpop.f32.mrf.mxu1  ;;  %v4983_v19 = vadd.f32 %v4982_v28, %v4981_v24 }
 0x2b9   : > { %v5057_v2 = vadd.f32 %v5056_v32, %v5055_v40  ;;  %v4984_v41 = vpop.f32.mrf.mxu0 }
 0x2ba   : > { %v5058_v39 = vpop.f32.mrf.mxu1  ;;  %v3330_v60 = vadd.f32 %v4983_v19, %v2997_v13  ;;  %v2668_v19 = vadd.f32 %v4835_v34, %v7301_v59  ;;  %v4841_v59 = vadd.f32 %v7386_v38, %v7382_v27 }
 0x2bb   : > { %v3661_v48 = vadd.f32 %v5057_v2, %v3328_v5  ;;  %v4985_v36 = vpop.f32.mrf.mxu0 }
 0x2bc   : > { %v5059_v58 = vpop.f32.mrf.mxu1  ;;  %v4986_v33 = vadd.f32 %v4985_v36, %v4984_v41  ;;  %v4912_v41 = vadd.f32 %v7380_v44, %v7376_v31 }
 0x2bd   : > { %3677 = vst [vmem:[#allocation3 + $0x30] sm:$0xff] %v3661_v48  ;;  %v5060_v0 = vadd.f32 %v5059_v58, %v5058_v39  ;;  %v4987_v6 = vpop.f32.mrf.mxu0  ;;  %v4915_v58 = vadd.f32 %v7388_v61, %v7384_v1 }
 0x2be   : > { %v5061_v32 = vpop.f32.mrf.mxu1  ;;  %v3331_v5 = vadd.f32 %v4986_v33, %v2998_v4  ;;  %v3000_v48 = vadd.f32 %v4912_v41, %v2667_v49 }
 0x2bf   : > { %v3662_v16 = vadd.f32 %v5060_v0, %v3329_v22  ;;  %v4988_v24 = vpop.f32.mrf.mxu0  ;;  %v2669_v0 = vadd.f32 %v4838_v52, %v7304_v17  ;;  %v4844_v17 = vadd.f32 %v7394_v63, %v7390_v51 }
 0x2c0   : > { %v5062_v28 = vpop.f32.mrf.mxu1  ;;  %v4989_v20 = vadd.f32 %v4988_v24, %v4987_v6  ;;  %v3001_v6 = vadd.f32 %v4915_v58, %v2668_v19  ;;  %v2670_v24 = vadd.f32 %v4841_v59, %v7307_v8  ;;  %v4847_v8 = vadd.f32 %v7402_v57, %v7398_v50  ;;  %v7678_v58 = vld [vmem:[#allocation21_spill] sm:$0xff]  ;;  %v7680_v59 = vld [vmem:[#allocation26_spill] sm:$0xff] }
 0x2c1   : > { %3678 = vst [vmem:[#allocation3] sm:$0xff] %v3662_v16  ;;  %v5063_v11 = vadd.f32 %v5062_v28, %v5061_v32  ;;  %v4990_v43 = vpop.f32.mrf.mxu0  ;;  %v3002_v28 = vadd.f32 %v4918_v7, %v2669_v0 }
 0x2c2   : > { %v5064_v40 = vpop.f32.mrf.mxu1  ;;  %v3332_v39 = vadd.f32 %v4989_v20, %v2999_v12  ;;  %v3003_v9 = vadd.f32 %v4921_v26, %v2670_v24  ;;  %v7670_v20 = vld [vmem:[#allocation18_spill] sm:$0xff]  ;;  %v7672_v12 = vld [vmem:[#allocation11_spill] sm:$0xff] }
 0x2c3   : > { %v3663_v54 = vadd.f32 %v5063_v11, %v3330_v60  ;;  %v4991_v55 = vpop.f32.mrf.mxu0  ;;  %v7684_v24 = vld [vmem:[#allocation27_spill] sm:$0xff]  ;;  %v7685_v26 = vld [vmem:[#allocation30_spill] sm:$0xff] }
 0x2c4   : > { %v5065_v47 = vpop.f32.mrf.mxu1  ;;  %v4992_v62 = vadd.f32 %v4991_v55, %v4990_v43 }
 0x2c5   : > { %3679 = vst [vmem:[#allocation3 + $0x58] sm:$0xff] %v3663_v54  ;;  %v5066_v37 = vadd.f32 %v5065_v47, %v5064_v40  ;;  %v4993_v18 = vpop.f32.mrf.mxu0  ;;  %v2671_v40 = vadd.f32 %v4844_v17, %v7310_v15  ;;  %v7671_v54 = vld [vmem:[#allocation20_spill] sm:$0xff]  ;;  %v7674_v15 = vld [vmem:[#allocation19_spill] sm:$0xff] }
 0x2c6   : > { %v5067_v2 = vpop.f32.mrf.mxu1  ;;  %v3333_v29 = vadd.f32 %v4992_v62, %v3000_v48  ;;  %v4924_v55 = vadd.f32 %v7671_v54, %v7670_v20  ;;  %v7675_v62 = vld [vmem:[#allocation22_spill] sm:$0xff] }
 0x2c7   : > { %v3664_v45 = vadd.f32 %v5066_v37, %v3331_v5  ;;  %v4994_v56 = vpop.f32.mrf.mxu0  ;;  %v2672_v37 = vadd.f32 %v4847_v8, %v7672_v12 }
 0x2c8   : > { %v5068_v22 = vpop.f32.mrf.mxu1  ;;  %v4995_v31 = vadd.f32 %v4994_v56, %v4993_v18  ;;  %v7673_v18 = vld [vmem:[#allocation17_spill] sm:$0xff]  ;;  %v3004_v41 = vadd.f32 %v4924_v55, %v2671_v40 }
 0x2c9   : > { %3680 = vst [vmem:[#allocation3 + $0x18] sm:$0xff] %v3664_v45  ;;  %v5069_v46 = vadd.f32 %v5068_v22, %v5067_v2  ;;  %v4996_v25 = vpop.f32.mrf.mxu0  ;;  %v4850_v2 = vadd.f32 %v7674_v15, %v7673_v18  ;;  %v7676_v45 = vld [vmem:[#allocation24_spill] sm:$0xff] }
 0x2ca   : > { %v5070_v36 = vpop.f32.mrf.mxu1  ;;  %v3334_v60 = vadd.f32 %v4995_v31, %v3001_v6  ;;  %v4927_v56 = vadd.f32 %v7676_v45, %v7675_v62  ;;  %v7681_v6 = vld [vmem:[#allocation28_spill] sm:$0xff] }
 0x2cb   : > { %v3665_v44 = vadd.f32 %v5069_v46, %v3332_v39  ;;  %v4997_v23 = vpop.f32.mrf.mxu0 }
 0x2cc   : > { %v5071_v13 = vpop.f32.mrf.mxu1  ;;  %v4998_v1 = vadd.f32 %v4997_v23, %v4996_v25  ;;  %v7677_v25 = vld [vmem:[#allocation12_spill] sm:$0xff] }
 0x2cd   : > { %3681 = vst [vmem:[#allocation3 + $0x50] sm:$0xff] %v3665_v44  ;;  %v5072_v30 = vadd.f32 %v5071_v13, %v5070_v36  ;;  %v4999_v35 = vpop.f32.mrf.mxu0  ;;  %v2673_v36 = vadd.f32 %v4850_v2, %v7677_v25  ;;  %v3005_v44 = vadd.f32 %v4927_v56, %v2672_v37 }
 0x2ce   : > { %v5073_v32 = vpop.f32.mrf.mxu1  ;;  %v3335_v4 = vadd.f32 %v4998_v1, %v3002_v28 }
 0x2cf   : > { %v3666_v61 = vadd.f32 %v5072_v30, %v3333_v29  ;;  %v5000_v33 = vpop.f32.mrf.mxu0  ;;  %v7679_v29 = vld [vmem:[#allocation23_spill] sm:$0xff]  ;;  %v4930_v30 = vadd.f32 %v7681_v6, %v7680_v59 }
 0x2d0   : > { %v5074_v16 = vpop.f32.mrf.mxu1  ;;  %v5001_v42 = vadd.f32 %v5000_v33, %v4999_v35  ;;  %v4853_v31 = vadd.f32 %v7679_v29, %v7678_v58  ;;  %v7698_v6 = vld [vmem:[#allocation39_spill] sm:$0xff] }
 0x2d1   : > { %3682 = vst [vmem:[#allocation3 + $0x68] sm:$0xff] %v3666_v61  ;;  %v5075_v27 = vadd.f32 %v5074_v16, %v5073_v32  ;;  %v5002_v38 = vpop.f32.mrf.mxu0  ;;  %v7682_v61 = vld [vmem:[#allocation13_spill] sm:$0xff]  ;;  %v3006_v28 = vadd.f32 %v4930_v30, %v2673_v36  ;;  %v4942_v30 = vadd.f32 %v7458_v10, %v7698_v6 }
 0x2d2   : > { %v5076_v14 = vpop.f32.mrf.mxu1  ;;  %v3336_v47 = vadd.f32 %v5001_v42, %v3003_v9  ;;  %v2674_v33 = vadd.f32 %v4853_v31, %v7682_v61  ;;  %v7683_v16 = vld [vmem:[#allocation25_spill] sm:$0xff]  ;;  %v7687_v9 = vld [vmem:[#allocation14_spill] sm:$0xff] }
 0x2d3   : > { %v3667_v21 = vadd.f32 %v5075_v27, %v3334_v60  ;;  %v5003_v11 = vpop.f32.mrf.mxu0  ;;  %v4856_v17 = vadd.f32 %v7684_v24, %v7683_v16 }
 0x2d4   : > { %v5077_v43 = vpop.f32.mrf.mxu1  ;;  %v5004_v53 = vadd.f32 %v5003_v11, %v5002_v38 }
 0x2d5   : > { %3683 = vst [vmem:[#allocation3 + $0x8] sm:$0xff] %v3667_v21  ;;  %v5078_v51 = vadd.f32 %v5077_v43, %v5076_v14  ;;  %v5005_v63 = vpop.f32.mrf.mxu0 }
 0x2d6   : > { %v5079_v5 = vpop.f32.mrf.mxu1  ;;  %v3337_v22 = vadd.f32 %v5004_v53, %v3004_v41  ;;  %v7692_v41 = vld [vmem:[#allocation15_spill] sm:$0xff] }
 0x2d7   : > { %v3668_v3 = vadd.f32 %v5078_v51, %v3335_v4  ;;  %v5006_v49 = vpop.f32.mrf.mxu0  ;;  %v7686_v4 = vld [vmem:[#allocation32_spill] sm:$0xff]  ;;  %v2675_v51 = vadd.f32 %v4856_v17, %v7687_v9 }
 0x2d8   : > { %v5080_v34 = vpop.f32.mrf.mxu1  ;;  %v5007_v19 = vadd.f32 %v5006_v49, %v5005_v63  ;;  %v4933_v42 = vadd.f32 %v7686_v4, %v7685_v26  ;;  %v7688_v63 = vld [vmem:[#allocation29_spill] sm:$0xff]  ;;  %v7691_v49 = vld [vmem:[#allocation36_spill] sm:$0xff] }
 0x2d9   : > { %3684 = vst [vmem:[#allocation3 + $0x48] sm:$0xff] %v3668_v3  ;;  %v5081_v50 = vadd.f32 %v5080_v34, %v5079_v5  ;;  %v5008_v57 = vpop.f32.mrf.mxu0  ;;  %v7689_v5 = vld [vmem:[#allocation31_spill] sm:$0xff]  ;;  %v7690_v3 = vld [vmem:[#allocation34_spill] sm:$0xff] }
 0x2da   : > { %v5082_v39 = vpop.f32.mrf.mxu1  ;;  %v3338_v35 = vadd.f32 %v5007_v19, %v3005_v44  ;;  %v4859_v20 = vadd.f32 %v7689_v5, %v7688_v63  ;;  %v3007_v54 = vadd.f32 %v4933_v42, %v2674_v33  ;;  %v4936_v34 = vadd.f32 %v7691_v49, %v7690_v3  ;;  %v7697_v44 = vld [vmem:[#allocation16_spill] sm:$0xff] }
 0x2db   : > { %v3669_v52 = vadd.f32 %v5081_v50, %v3336_v47  ;;  %v5009_v48 = vpop.f32.mrf.mxu0 }
 0x2dc   : > { %v5083_v46 = vpop.f32.mrf.mxu1  ;;  %v5010_v32 = vadd.f32 %v5009_v48, %v5008_v57  ;;  %v2676_v50 = vadd.f32 %v4859_v20, %v7692_v41  ;;  %v7693_v57 = vld [vmem:[#allocation33_spill] sm:$0xff]  ;;  %v3008_v45 = vadd.f32 %v4936_v34, %v2675_v51  ;;  %v7696_v48 = vld [vmem:[#allocation38_spill] sm:$0xff] }
 0x2dd   : > { %3685 = vst [vmem:[#allocation3 + $0x40] sm:$0xff] %v3669_v52  ;;  %v5084_v23 = vadd.f32 %v5083_v46, %v5082_v39  ;;  %v5011_v13 = vpop.f32.mrf.mxu0  ;;  %v7694_v39 = vld [vmem:[#allocation35_spill] sm:$0xff]  ;;  %v7695_v52 = vld [vmem:[#allocation37_spill] sm:$0xff] }
 0x2de   : > { %v5085_v0 = vpop.f32.mrf.mxu1  ;;  %v3339_v21 = vadd.f32 %v5010_v32, %v3006_v28  ;;  %v4862_v62 = vadd.f32 %v7694_v39, %v7693_v57  ;;  %v4939_v46 = vadd.f32 %v7696_v48, %v7695_v52 }
 0x2df   : > { %v3670_v7 = vadd.f32 %v5084_v23, %v3337_v22  ;;  %v5012_v60 = vpop.f32.mrf.mxu0 }
 0x2e0   : > { %v5086_v1 = vpop.f32.mrf.mxu1  ;;  %v5013_v11 = vadd.f32 %v5012_v60, %v5011_v13  ;;  %v2677_v23 = vadd.f32 %v4862_v62, %v7697_v44  ;;  %v3009_v13 = vadd.f32 %v4939_v46, %v2676_v50 }
 0x2e1   : > { %3686 = vst [vmem:[#allocation3 + $0x20] sm:$0xff] %v3670_v7  ;;  %v5087_v27 = vadd.f32 %v5086_v1, %v5085_v0  ;;  %v5014_v38 = vpop.f32.mrf.mxu0 }
 0x2e2   : > { %v5088_v14 = vpop.f32.mrf.mxu1  ;;  %v3340_v12 = vadd.f32 %v5013_v11, %v3007_v54  ;;  %v3010_v1 = vadd.f32 %v4942_v30, %v2677_v23 }
 0x2e3   : > { %v3671_v43 = vadd.f32 %v5087_v27, %v3338_v35  ;;  %v5015_v40 = vpop.f32.mrf.mxu0 }
 0x2e4   : > { %v5089_v8 = vpop.f32.mrf.mxu1  ;;  %v5016_v37 = vadd.f32 %v5015_v40, %v5014_v38 }
 0x2e5   : > { %3687 = vst [vmem:[#allocation3 + $0x10] sm:$0xff] %v3671_v43  ;;  %v5090_v55 = vadd.f32 %v5089_v8, %v5088_v14  ;;  %v5017_v47 = vpop.f32.mrf.mxu0 }
 0x2e6   : > { %v5091_v53 = vpop.f32.mrf.mxu1  ;;  %v3341_v25 = vadd.f32 %v5016_v37, %v3008_v45 }
 0x2e7   : > { %v3672_v18 = vadd.f32 %v5090_v55, %v3339_v21  ;;  %v5018_v15 = vpop.f32.mrf.mxu0 }
 0x2e8   : > { %v5092_v2 = vpop.f32.mrf.mxu1  ;;  %v5019_v36 = vadd.f32 %v5018_v15, %v5017_v47 }
 0x2e9   : > { %3688 = vst [vmem:[#allocation3 + $0x38] sm:$0xff] %v3672_v18  ;;  %v5093_v56 = vadd.f32 %v5092_v2, %v5091_v53  ;;  %v5020_v22 = vpop.f32.mrf.mxu0 }
 0x2ea   : > { %v5094_v19 = vpop.f32.mrf.mxu1  ;;  %v3342_v35 = vadd.f32 %v5019_v36, %v3009_v13 }
 0x2eb   : > { %v3673_v58 = vadd.f32 %v5093_v56, %v3340_v12  ;;  %v5021_v29 = vpop.f32.mrf.mxu0 }
 0x2ec   : > { %v5095_v31 = vpop.f32.mrf.mxu1  ;;  %v5022_v32 = vadd.f32 %v5021_v29, %v5020_v22 }
 0x2ed   : > { %3689 = vst [vmem:[#allocation3 + $0x60] sm:$0xff] %v3673_v58  ;;  %v5096_v0 = vadd.f32 %v5095_v31, %v5094_v19 }
 0x2ee   : > { %v5097_v59 = vpop.f32.mrf.mxu1  ;;  %v3343_v16 = vadd.f32 %v5022_v32, %v3010_v1 }
 0x2ef   : > { %v3674_v7 = vadd.f32 %v5096_v0, %v3341_v25 }
 0x2f0   : > { %v5098_v60 = vpop.f32.mrf.mxu1 }
 0x2f1   : > { %3690 = vst [vmem:[#allocation3 + $0x70] sm:$0xff] %v3674_v7  ;;  %v5099_v61 = vadd.f32 %v5098_v60, %v5097_v59 }
 0x2f2   : > { %v5100_v33 = vpop.f32.mrf.mxu1 }
 0x2f3   : > { %v3675_v24 = vadd.f32 %v5099_v61, %v3342_v35 }
 0x2f4   : > { %v5101_v17 = vpop.f32.mrf.mxu1 }
 0x2f5   : > { %3691 = vst [vmem:[#allocation3 + $0x78] sm:$0xff] %v3675_v24  ;;  %v5102_v28 = vadd.f32 %v5101_v17, %v5100_v33 }
 0x2f7   : > { %v3676_v27 = vadd.f32 %v5102_v28, %v3343_v16 }
 0x2f9   : > { %3692 = vst [vmem:[#allocation3 + $0x28] sm:$0xff] %v3676_v27 }
 0x2fa PF: > { %s3693_s3 = sld [smem:[#allocation8 + %s5294_s4]] }
 0x300   : > { %p4460_p6 = scmp.ne.s32.totalorder %s3693_s3, 1 }
 0x302   : > { %3697 = sbr.rel (%p4460_p6) target bundleno = 948 (0x3b4), region = 44 }
 0x307   : > { %v7534_v10 = vld [vmem:[#allocation3 + $0x58] sm:$0xff]  ;;  %v7536_v38 = vld [vmem:[#allocation3 + $0x30] sm:$0xff]  ;;  %v5232_v26 = vmov 8   ;;  %v7543_v11 = vld [vmem:[#allocation3] sm:$0xff]  ;;  %vm3842_vm9 = vcmask 72704  }
 0x308   : > { %v7538_v14 = vld [vmem:[#allocation3 + $0x18] sm:$0xff]  ;;  %5121 = vset.pattern.permute.xlu1 %v5232_v26  ;;  %5120 = vset.pattern.permute.xlu0 %v5232_v26  ;;  %v3716_v4 = vmax.f32 %v7534_v10, 1.0  ;;  %v3714_v42 = vmax.f32 %v7536_v38, 1.0  ;;  %v3715_v43 = vmax.f32 %v7543_v11, 1.0  ;;  %v7546_v40 = vld [vmem:[#allocation3 + $0x68] sm:$0xff]  ;;  %v7548_v8 = vld [vmem:[#allocation3 + $0x50] sm:$0xff] }
 0x309   : > { %v3717_v21 = vmax.f32 %v7538_v14, 1.0  ;;  %v3719_v9 = vmax.f32 %v7546_v40, 1.0  ;;  %v3718_v51 = vmax.f32 %v7548_v8, 1.0  ;;  %v7552_v63 = vld [vmem:[#allocation3 + $0x48] sm:$0xff]  ;;  %v7558_v55 = vld [vmem:[#allocation3 + $0x20] sm:$0xff]  ;;  %v7564_v49 = vld [vmem:[#allocation3 + $0x38] sm:$0xff] }
 0x30a   : > { %5122 = vrcp.f32 %v3716_v4  ;;  %v7554_v5 = vld [vmem:[#allocation3 + $0x8] sm:$0xff]  ;;  %v3721_v20 = vmax.f32 %v7552_v63, 1.0  ;;  %v7560_v47 = vld [vmem:[#allocation3 + $0x40] sm:$0xff]  ;;  %v3723_v53 = vmax.f32 %v7558_v55, 1.0  ;;  %v7566_v34 = vld [vmem:[#allocation3 + $0x10] sm:$0xff]  ;;  %v3725_v18 = vmax.f32 %v7564_v49, 1.0 }
 0x30b   : > { %5124 = vrcp.f32 %v3714_v42  ;;  %v3720_v54 = vmax.f32 %v7554_v5, 1.0  ;;  %v3722_v3 = vmax.f32 %v7560_v47, 1.0  ;;  %v3724_v2 = vmax.f32 %v7566_v34, 1.0  ;;  %v7570_v41 = vld [vmem:[#allocation3 + $0x70] sm:$0xff]  ;;  %v7572_v57 = vld [vmem:[#allocation3 + $0x60] sm:$0xff]  ;;  %v7576_v56 = vld [vmem:[#allocation3 + $0x28] sm:$0xff] }
 0x30c   : > { %5126 = vrcp.f32 %v3717_v21  ;;  %v3727_v39 = vmax.f32 %v7570_v41, 1.0  ;;  %v3726_v45 = vmax.f32 %v7572_v57, 1.0  ;;  %v7578_v19 = vld [vmem:[#allocation3 + $0x78] sm:$0xff]  ;;  %v3729_v52 = vmax.f32 %v7576_v56, 1.0 }
 0x30d   : > { %5128 = vrcp.f32 %v3715_v43  ;;  %v3728_v46 = vmax.f32 %v7578_v19, 1.0 }
 0x30e   : > { %5130 = vrcp.f32 %v3719_v9 }
 0x30f   : > { %5132 = vrcp.f32 %v3718_v51 }
 0x310   : > { %5134 = vrcp.f32 %v3721_v20 }
 0x311   : > { %5136 = vrcp.f32 %v3720_v54 }
 0x312   : > { %5138 = vrcp.f32 %v3723_v53 }
 0x313   : > { %5140 = vrcp.f32 %v3722_v3 }
 0x314   : > { %5142 = vrcp.f32 %v3725_v18 }
 0x315   : > { %5144 = vrcp.f32 %v3724_v2 }
 0x316   : > { %5146 = vrcp.f32 %v3727_v39 }
 0x317   : > { %v5123_v12 = vpop.eup %5122  ;;  %5148 = vrcp.f32 %v3726_v45 }
 0x318   : > { %v5125_v37 = vpop.eup %5124  ;;  %3758 = vperm.xlu1 %5121, %v5123_v12   ;;  %5150 = vrcp.f32 %v3729_v52 }
 0x319   : > { %v5127_v15 = vpop.eup %5126  ;;  %3748 = vperm.xlu0 %5120, %v5125_v37   ;;  %5152 = vrcp.f32 %v3728_v46 }
 0x31a   : > { %v5129_v50 = vpop.eup %5128 }
 0x31b   : > { %v5131_v62 = vpop.eup %5130 }
 0x31c   : > { %3763 = vperm.xlu1 %5121, %v5127_v15   ;;  %v5133_v22 = vpop.eup %5132 }
 0x31d   : > { %3753 = vperm.xlu0 %5120, %v5129_v50   ;;  %v5135_v48 = vpop.eup %5134 }
 0x31e   : > { %v5137_v25 = vpop.eup %5136 }
 0x31f   : > { %v5139_v36 = vpop.eup %5138 }
 0x320   : > { %3773 = vperm.xlu1 %5121, %v5131_v62   ;;  %v5141_v58 = vpop.eup %5140 }
 0x321   : > { %3768 = vperm.xlu0 %5120, %v5133_v22   ;;  %v5143_v29 = vpop.eup %5142 }
 0x322   : > { %v5145_v31 = vpop.eup %5144 }
 0x323   : > { %v5147_v44 = vpop.eup %5146 }
 0x324   : > { %3783 = vperm.xlu1 %5121, %v5135_v48   ;;  %v5149_v23 = vpop.eup %5148 }
 0x325   : > { %3778 = vperm.xlu0 %5120, %v5137_v25   ;;  %v5151_v13 = vpop.eup %5150 }
 0x326   : > { %v5153_v0 = vpop.eup %5152 }
 0x328   : > { %3793 = vperm.xlu1 %5121, %v5139_v36  }
 0x329   : > { %3788 = vperm.xlu0 %5120, %v5141_v58  }
 0x32c   : > { %3803 = vperm.xlu1 %5121, %v5143_v29  }
 0x32d   : > { %3798 = vperm.xlu0 %5120, %v5145_v31  }
 0x330   : > { %3813 = vperm.xlu1 %5121, %v5147_v44  }
 0x331   : > { %3808 = vperm.xlu0 %5120, %v5149_v23  }
 0x334   : > { %3823 = vperm.xlu1 %5121, %v5151_v13  }
 0x335   : > { %3818 = vperm.xlu0 %5120, %v5153_v0  }
 0x393   : > { %v3759_v59 = vpop.permute.xlu1 %3758 }
 0x394   : > { %v3828_v6 = vmul.f32 %v3759_v59, %v7534_v10  ;;  %v3749_v30 = vpop.permute.xlu0 %3748 }
 0x395   : > { %v3826_v35 = vmul.f32 %v3749_v30, %v7536_v38 }
 0x396   : > { %3845 = vst.msk [vmem:[%s5314_s14 + $0x10] sm:$0xff] %vm3842_vm9, %v3828_v6 }
 0x397   : > { %3843 = vst.msk [vmem:[%s5314_s14] sm:$0xff] %vm3842_vm9, %v3826_v35  ;;  %v3764_v32 = vpop.permute.xlu1 %3763 }
 0x398   : > { %v3829_v7 = vmul.f32 %v3764_v32, %v7538_v14  ;;  %v3754_v60 = vpop.permute.xlu0 %3753 }
 0x399   : > { %v3827_v1 = vmul.f32 %v3754_v60, %v7543_v11 }
 0x39a   : > { %3846 = vst.msk [vmem:[%s5314_s14 + $0x18] sm:$0xff] %vm3842_vm9, %v3829_v7 }
 0x39b   : > { %3844 = vst.msk [vmem:[%s5314_s14 + $0x8] sm:$0xff] %vm3842_vm9, %v3827_v1  ;;  %v3774_v61 = vpop.permute.xlu1 %3773 }
 0x39c   : > { %v3831_v33 = vmul.f32 %v3774_v61, %v7546_v40  ;;  %v3769_v16 = vpop.permute.xlu0 %3768 }
 0x39d   : > { %v3830_v24 = vmul.f32 %v3769_v16, %v7548_v8 }
 0x39e   : > { %3848 = vst.msk [vmem:[%s5314_s14 + $0x28] sm:$0xff] %vm3842_vm9, %v3831_v33 }
 0x39f   : > { %3847 = vst.msk [vmem:[%s5314_s14 + $0x20] sm:$0xff] %vm3842_vm9, %v3830_v24  ;;  %v3784_v17 = vpop.permute.xlu1 %3783 }
 0x3a0   : > { %v3833_v28 = vmul.f32 %v3784_v17, %v7552_v63  ;;  %v3779_v27 = vpop.permute.xlu0 %3778 }
 0x3a1   : > { %v3832_v10 = vmul.f32 %v3779_v27, %v7554_v5 }
 0x3a2   : > { %3850 = vst.msk [vmem:[%s5314_s14 + $0x38] sm:$0xff] %vm3842_vm9, %v3833_v28 }
 0x3a3   : > { %3849 = vst.msk [vmem:[%s5314_s14 + $0x30] sm:$0xff] %vm3842_vm9, %v3832_v10  ;;  %v3794_v38 = vpop.permute.xlu1 %3793 }
 0x3a4   : > { %v3835_v14 = vmul.f32 %v3794_v38, %v7558_v55  ;;  %v3789_v26 = vpop.permute.xlu0 %3788 }
 0x3a5   : > { %v3834_v4 = vmul.f32 %v3789_v26, %v7560_v47 }
 0x3a6   : > { %3852 = vst.msk [vmem:[%s5314_s14 + $0x48] sm:$0xff] %vm3842_vm9, %v3835_v14 }
 0x3a7   : > { %3851 = vst.msk [vmem:[%s5314_s14 + $0x40] sm:$0xff] %vm3842_vm9, %v3834_v4  ;;  %v3804_v42 = vpop.permute.xlu1 %3803 }
 0x3a8   : > { %v3837_v21 = vmul.f32 %v3804_v42, %v7564_v49  ;;  %v3799_v11 = vpop.permute.xlu0 %3798 }
 0x3a9   : > { %v3836_v43 = vmul.f32 %v3799_v11, %v7566_v34 }
 0x3aa   : > { %3854 = vst.msk [vmem:[%s5314_s14 + $0x58] sm:$0xff] %vm3842_vm9, %v3837_v21 }
 0x3ab   : > { %3853 = vst.msk [vmem:[%s5314_s14 + $0x50] sm:$0xff] %vm3842_vm9, %v3836_v43  ;;  %v3814_v40 = vpop.permute.xlu1 %3813 }
 0x3ac   : > { %v3839_v8 = vmul.f32 %v3814_v40, %v7570_v41  ;;  %v3809_v9 = vpop.permute.xlu0 %3808 }
 0x3ad   : > { %v3838_v51 = vmul.f32 %v3809_v9, %v7572_v57 }
 0x3ae   : > { %3856 = vst.msk [vmem:[%s5314_s14 + $0x68] sm:$0xff] %vm3842_vm9, %v3839_v8 }
 0x3af   : > { %3855 = vst.msk [vmem:[%s5314_s14 + $0x60] sm:$0xff] %vm3842_vm9, %v3838_v51  ;;  %v3824_v63 = vpop.permute.xlu1 %3823 }
 0x3b0   : > { %v3841_v5 = vmul.f32 %v3824_v63, %v7576_v56  ;;  %v3819_v20 = vpop.permute.xlu0 %3818 }
 0x3b1   : > { %v3840_v54 = vmul.f32 %v3819_v20, %v7578_v19 }
 0x3b2   : > { %3858 = vst.msk [vmem:[%s5314_s14 + $0x78] sm:$0xff] %vm3842_vm9, %v3841_v5 }
 0x3b3   : > { %3857 = vst.msk [vmem:[%s5314_s14 + $0x70] sm:$0xff] %vm3842_vm9, %v3840_v54 }
 0x3b4 PF: > { %s39_s22 = sadd.s32 1, %s5222_s22  }
 0x3b5   : > { %p36_p7 = scmp.ge.s32.totalorder %s39_s22, 4  }
 0x3b7   :  { %38 = sbr.rel (!%p36_p7) target bundleno = 57 (0x39), region = 91 }

</bundles_post_ra>
